<compile_context>
chip_gen: v7x
topology: tpu7x:2x2x1
jax: 0.10.0
libtpu: 0.0.40
codegen_flags: <defaults>
</compile_context>

<pallas_src>
import functools

import jax
import jax.numpy as jnp
from jax.experimental import pallas as pl
from jax.experimental.pallas import tpu as pltpu


# ----------------------------------------------------------------------------
# Fused per-layer kernel: one (b, t) grid step of a ConvLSTM layer.
#   combined_conv = Conv2d(cat(x_t, h), W, b)   (same zero padding)
#   i, f, o, g    = split(combined_conv)         (channel order i|f|o|g)
#   c_next        = sigmoid(f) * c + sigmoid(i) * tanh(g)
#   h_next        = sigmoid(o) * tanh(c_next)
# ----------------------------------------------------------------------------
def _convlstm_layer_kernel(x_ref, mask_ref, w_ref, b_ref,
                           y_ref, h_ref, c_ref, *, Ch, KH, KW, H, W):
    """Refs:
      x_ref:    (1, 1, Cx, HW)    bf16  current input frame (channels, flat spatial)
      mask_ref: (KH*KW, HW)       f32   0/1 tap-validity mask ("same" zero padding)
      w_ref:    (4*Ch, KH*KW*Cc)  bf16  packed conv weight (tap-major, channel-minor)
      b_ref:    (4*Ch, 1)         f32   conv bias
      y_ref:    (1, 1, Ch, HW)    f32   per-step layer output h_t
      h_ref:    (1, Ch, HW)       f32   last hidden state (VMEM-resident across T)
      c_ref:    (1, Ch, HW)       f32   last cell state   (VMEM-resident across T)
    """
    t = pl.program_id(1)
    HW = H * W
    ph, pw = KH // 2, KW // 2

    # init_hidden(): zero states at the first timestep of each batch element.
    @pl.when(t == 0)
    def _():
        h_ref[...] = jnp.zeros_like(h_ref)
        c_ref[...] = jnp.zeros_like(c_ref)

    x_t = x_ref[0, 0].astype(jnp.float32)            # (Cx, HW)
    src = jnp.concatenate([x_t, h_ref[0]], axis=0)   # (Cc, HW) == cat([x, h], dim=C)
    mask = mask_ref[...]                             # (KH*KW, HW)

    # im2col: for every conv tap, shift the flattened spatial axis on the XLU
    # and zero the wrapped-around / out-of-image positions.
    taps = []
    for dy in range(KH):
        for dx in range(KW):
            shift = (dy - ph) * W + (dx - pw)
            tap = dy * KW + dx
            if shift == 0:
                taps.append(src)                     # centre tap: always valid
            else:
                rolled = pltpu.roll(src, shift=(-shift) % HW, axis=1)
                taps.append(rolled * mask[tap:tap + 1, :])
    im2col = jnp.concatenate(taps, axis=0).astype(jnp.bfloat16)  # (KH*KW*Cc, HW)

    # Single deep-K MXU contraction == Conv2d(cat(x, h)) with "same" padding.
    z = jnp.dot(w_ref[...], im2col,
                preferred_element_type=jnp.float32) + b_ref[...]  # (4Ch, HW) f32

    i_g = jax.nn.sigmoid(z[0 * Ch:1 * Ch])
    f_g = jax.nn.sigmoid(z[1 * Ch:2 * Ch])
    o_g = jax.nn.sigmoid(z[2 * Ch:3 * Ch])
    g_g = jnp.tanh(z[3 * Ch:4 * Ch])

    c_next = f_g * c_ref[0] + i_g * g_g
    h_next = o_g * jnp.tanh(c_next)

    h_ref[0] = h_next
    c_ref[0] = c_next
    y_ref[0, 0] = h_next


# ----------------------------------------------------------------------------
# Per-layer wrapper: weight packing, tap masks, single pallas_call over (B, T).
# ----------------------------------------------------------------------------
def _convlstm_layer(x_bf16, w_oihw, bias, Ch, kernel_size, H, W):
    """x_bf16: (B, T, Cin, H*W) bf16.
    Returns f32 (y, h_last, c_last) of shapes (B,T,Ch,HW), (B,Ch,HW), (B,Ch,HW)."""
    B, T, Cin, HW = x_bf16.shape
    KH, KW = kernel_size
    ph, pw = KH // 2, KW // 2

    # Pad input channels to a multiple of 8 (sublane alignment). The matching
    # weight columns are zero, so the math is unchanged.
    Cin_pad = -(-Cin // 8) * 8
    if Cin_pad != Cin:
        x_bf16 = jnp.pad(x_bf16, ((0, 0), (0, 0), (0, Cin_pad - Cin), (0, 0)))
    Cc = Cin_pad + Ch

    # Pack OIHW weight -> (4Ch, KH*KW*Cc); columns ordered tap-major /
    # channel-minor to match the in-kernel im2col row order.
    w_x = w_oihw[:, :Cin]
    w_h = w_oihw[:, Cin:]
    if Cin_pad != Cin:
        w_x = jnp.pad(w_x, ((0, 0), (0, Cin_pad - Cin), (0, 0), (0, 0)))
    w_cat = jnp.concatenate([w_x, w_h], axis=1)                # (4Ch, Cc, KH, KW)
    w_packed = jnp.transpose(w_cat, (0, 2, 3, 1)).reshape(
        4 * Ch, KH * KW * Cc).astype(jnp.bfloat16)
    b2 = bias.reshape(4 * Ch, 1).astype(jnp.float32)

    # Per-tap validity masks for "same" zero padding on the flat spatial axis.
    pos = jnp.arange(HW, dtype=jnp.int32)
    row, col = pos // W, pos % W
    masks = []
    for dy in range(KH):
        for dx in range(KW):
            oy, ox = dy - ph, dx - pw
            masks.append((row + oy >= 0) & (row + oy < H) &
                         (col + ox >= 0) & (col + ox < W))
    mask = jnp.stack(masks, axis=0).astype(jnp.float32)        # (KH*KW, HW)

    kernel = functools.partial(_convlstm_layer_kernel,
                               Ch=Ch, KH=KH, KW=KW, H=H, W=W)

    y, h_last, c_last = pl.pallas_call(
        kernel,
        out_shape=(jax.ShapeDtypeStruct((B, T, Ch, HW), jnp.float32),
                   jax.ShapeDtypeStruct((B, Ch, HW), jnp.float32),
                   jax.ShapeDtypeStruct((B, Ch, HW), jnp.float32)),
        grid_spec=pltpu.PrefetchScalarGridSpec(
            num_scalar_prefetch=0,
            grid=(B, T),
            in_specs=[
                pl.BlockSpec((1, 1, Cin_pad, HW), lambda b, t: (b, t, 0, 0)),
                pl.BlockSpec((KH * KW, HW), lambda b, t: (0, 0)),
                pl.BlockSpec((4 * Ch, KH * KW * Cc), lambda b, t: (0, 0)),
                pl.BlockSpec((4 * Ch, 1), lambda b, t: (0, 0)),
            ],
            out_specs=[
                pl.BlockSpec((1, 1, Ch, HW), lambda b, t: (b, t, 0, 0)),
                pl.BlockSpec((1, Ch, HW), lambda b, t: (b, 0, 0)),
                pl.BlockSpec((1, Ch, HW), lambda b, t: (b, 0, 0)),
            ],
        ),
        compiler_params=pltpu.CompilerParams(
            dimension_semantics=("parallel", "arbitrary"),
            vmem_limit_bytes=32 * 1024 * 1024),
    )(x_bf16, mask, w_packed, b2)
    return y, h_last, c_last


# ----------------------------------------------------------------------------
# ConvLSTM (stacked layers); time loop fused into the per-layer kernel.
# ----------------------------------------------------------------------------
@functools.partial(jax.jit, static_argnums=(2, 3, 4, 5))
def conv_lstm_forward(x, params, hidden_dims, kernel_sizes,
                      batch_first=True, return_all_layers=False):
    """x: (B, T, C, H, W) if batch_first else (T, B, C, H, W)  (NCHW frames)."""
    if not batch_first:
        x = jnp.transpose(x, (1, 0, 2, 3, 4))
    B, T, Cin0, H, W = x.shape
    # NCHW frames with flattened spatial; cast activations to bf16 for DMA/MXU.
    cur = x.reshape(B, T, Cin0, H * W).astype(jnp.bfloat16)

    layer_output_list = []
    last_state_list = []
    for li, (hd, ks) in enumerate(zip(hidden_dims, kernel_sizes)):
        w, b = params[li]
        y, h_last, c_last = _convlstm_layer(cur, w, b, hd, ks, H, W)
        layer_output_list.append(y.reshape(B, T, hd, H, W))
        last_state_list.append((h_last.reshape(B, hd, H, W),
                                c_last.reshape(B, hd, H, W)))
        cur = y.astype(jnp.bfloat16)                           # next layer input

    if not return_all_layers:
        layer_output_list = layer_output_list[-1:]
        last_state_list = last_state_list[-1:]
    return layer_output_list, last_state_list


def init_conv_lstm_params(key, input_dim, hidden_dims, kernel_sizes):
    """PyTorch Conv2d-style init: uniform(+/- 1/sqrt(fan_in)), OIHW weights."""
    params = []
    for i, (hd, ks) in enumerate(zip(hidden_dims, kernel_sizes)):
        cin = input_dim if i == 0 else hidden_dims[i - 1]
        cc = cin + hd
        kh, kw = ks
        key, k1, k2 = jax.random.split(key, 3)
        bound = (1.0 / (cc * kh * kw)) ** 0.5
        w = jax.random.uniform(k1, (4 * hd, cc, kh, kw), jnp.float32, -bound, bound)
        b = jax.random.uniform(k2, (4 * hd,), jnp.float32, -bound, bound)
        params.append((w, b))
    return params


# ----------------------------------------------------------------------------
# Pure-JAX reference (lax conv, bf16 operands / f32 accumulation like the kernel).
# ----------------------------------------------------------------------------
def _reference_forward(x, params, hidden_dims, kernel_sizes, batch_first=True):
    if not batch_first:
        x = jnp.transpose(x, (1, 0, 2, 3, 4))
    x = jnp.transpose(x, (0, 1, 3, 4, 2))                      # (B,T,H,W,C)
    B, T, H, Wd, _ = x.shape
    cur = x
    last = None
    for li, (hd, ks) in enumerate(zip(hidden_dims, kernel_sizes)):
        w, b = params[li]
        w4 = jnp.transpose(w, (2, 3, 1, 0)).astype(jnp.bfloat16)   # OIHW -> HWIO
        h = jnp.zeros((B, H, Wd, hd), jnp.float32)
        c = jnp.zeros((B, H, Wd, hd), jnp.float32)
        outs = []
        for t in range(T):
            comb = jnp.concatenate([cur[:, t], h], axis=-1).astype(jnp.bfloat16)
            z = jax.lax.conv_general_dilated(
                comb, w4, (1, 1), 'SAME',
                dimension_numbers=('NHWC', 'HWIO', 'NHWC'),
                preferred_element_type=jnp.float32) + b
            cc_i, cc_f, cc_o, cc_g = jnp.split(z, 4, axis=-1)
            i = jax.nn.sigmoid(cc_i)
            f = jax.nn.sigmoid(cc_f)
            o = jax.nn.sigmoid(cc_o)
            g = jnp.tanh(cc_g)
            c = f * c + i * g
            h = o * jnp.tanh(c)
            outs.append(h)
        cur = jnp.stack(outs, axis=1)
        last = (jnp.transpose(h, (0, 3, 1, 2)), jnp.transpose(c, (0, 3, 1, 2)))
    return jnp.transpose(cur, (0, 1, 4, 2, 3)), last


if __name__ == "__main__":
    key = jax.random.PRNGKey(0)
    B, T, Cin, H, W = 2, 8, 4, 16, 16
    hidden_dims = (32, 32)
    kernel_sizes = ((3, 3), (3, 3))

    kx, kp = jax.random.split(key)
    x = jax.random.normal(kx, (B, T, Cin, H, W), jnp.float32)   # (B,T,C,H,W)
    params = init_conv_lstm_params(kp, Cin, hidden_dims, kernel_sizes)

    layer_outs, last_states = conv_lstm_forward(
        x, params, hidden_dims, kernel_sizes, True, False)
    jax.block_until_ready(layer_outs)
    jax.block_until_ready(last_states)

    # correctness check vs pure-JAX reference
    ref_out, (ref_h, ref_c) = _reference_forward(
        x, params, hidden_dims, kernel_sizes, batch_first=True)
    assert jnp.allclose(layer_outs[0], ref_out, atol=2e-3, rtol=2e-3)
    assert jnp.allclose(last_states[0][0], ref_h, atol=2e-3, rtol=2e-3)
    assert jnp.allclose(last_states[0][1], ref_c, atol=2e-3, rtol=2e-3)

    print("KERNEL_OK")
</pallas_src>

<mosaic_0001>
module attributes {stable_mosaic.version = 11 : i64} {
  func.func @_convlstm_layer_kernel(%arg0: i32, %arg1: i32, %arg2: memref<1x1x8x256xbf16, #tpu.memory_space<vmem>>, %arg3: memref<9x256xf32, #tpu.memory_space<vmem>>, %arg4: memref<128x360xbf16, #tpu.memory_space<vmem>>, %arg5: memref<128x1xf32, #tpu.memory_space<vmem>>, %arg6: memref<1x1x32x256xf32, #tpu.memory_space<vmem>>, %arg7: memref<1x32x256xf32, #tpu.memory_space<vmem>>, %arg8: memref<1x32x256xf32, #tpu.memory_space<vmem>>) attributes {dimension_semantics = [#tpu.dimension_semantics<parallel>, #tpu.dimension_semantics<arbitrary>], iteration_bounds = array<i64: 2, 8>, scalar_prefetch = 0 : i64, scratch_operands = 0 : i64, tpu.core_type = #tpu.core_type<tc>, window_params = [{transform_indices = @transform_0, window_bounds = array<i64: 1, 1, 8, 256>}, {pipeline_mode = #tpu.pipeline_mode<synchronous>, transform_indices = @transform_1, window_bounds = array<i64: 9, 256>}, {pipeline_mode = #tpu.pipeline_mode<synchronous>, transform_indices = @transform_2, window_bounds = array<i64: 128, 360>}, {pipeline_mode = #tpu.pipeline_mode<synchronous>, transform_indices = @transform_3, window_bounds = array<i64: 128, 1>}, {transform_indices = @transform_4, window_bounds = array<i64: 1, 1, 32, 256>}, {transform_indices = @transform_5, window_bounds = array<i64: 1, 32, 256>}, {transform_indices = @transform_6, window_bounds = array<i64: 1, 32, 256>}]} {
    %c0_i32 = arith.constant 0 : i32
    %0 = arith.cmpi eq, %arg1, %c0_i32 : i32
    %1 = arith.extui %0 : i1 to i32
    %c0_i32_0 = arith.constant 0 : i32
    %2 = arith.cmpi ne, %1, %c0_i32_0 : i32
    scf.if %2 {
      %cst_29 = arith.constant 0.000000e+00 : f32
      %85 = vector.broadcast %cst_29 : f32 to vector<1x32x256xf32>
      %c0_30 = arith.constant 0 : index
      %c0_31 = arith.constant 0 : index
      %c0_32 = arith.constant 0 : index
      %86 = vector.load %arg7[%c0_30, %c0_31, %c0_32] : memref<1x32x256xf32, #tpu.memory_space<vmem>>, vector<1x32x256xf32>
      tpu.vector_store %arg7[%c0_30, %c0_31, %c0_32], %85 {strides = array<i32>} : memref<1x32x256xf32, #tpu.memory_space<vmem>>, vector<1x32x256xf32>,
      %cst_33 = arith.constant 0.000000e+00 : f32
      %87 = vector.broadcast %cst_33 : f32 to vector<1x32x256xf32>
      %c0_34 = arith.constant 0 : index
      %c0_35 = arith.constant 0 : index
      %c0_36 = arith.constant 0 : index
      %88 = vector.load %arg8[%c0_34, %c0_35, %c0_36] : memref<1x32x256xf32, #tpu.memory_space<vmem>>, vector<1x32x256xf32>
      tpu.vector_store %arg8[%c0_34, %c0_35, %c0_36], %87 {strides = array<i32>} : memref<1x32x256xf32, #tpu.memory_space<vmem>>, vector<1x32x256xf32>,
    } else {
    }
    %c0 = arith.constant 0 : index
    %c0_1 = arith.constant 0 : index
    %c0_2 = arith.constant 0 : index
    %c0_3 = arith.constant 0 : index
    %3 = vector.load %arg2[%c0, %c0_1, %c0_2, %c0_3] : memref<1x1x8x256xbf16, #tpu.memory_space<vmem>>, vector<1x1x8x256xbf16>
    %4 = vector.shape_cast %3 : vector<1x1x8x256xbf16> to vector<8x256xbf16>
    %5 = arith.extf %4 : vector<8x256xbf16> to vector<8x256xf32>
    %c0_4 = arith.constant 0 : index
    %c0_5 = arith.constant 0 : index
    %c0_6 = arith.constant 0 : index
    %6 = vector.load %arg7[%c0_4, %c0_5, %c0_6] : memref<1x32x256xf32, #tpu.memory_space<vmem>>, vector<1x32x256xf32>
    %7 = vector.shape_cast %6 : vector<1x32x256xf32> to vector<32x256xf32>
    %8 = tpu.concatenate %5, %7 in 0 : vector<8x256xf32>, vector<32x256xf32> -> vector<40x256xf32>
    %c0_7 = arith.constant 0 : index
    %c0_8 = arith.constant 0 : index
    %9 = vector.load %arg3[%c0_7, %c0_8] : memref<9x256xf32, #tpu.memory_space<vmem>>, vector<9x256xf32>
    %c17_i32 = arith.constant 17 : i32
    %10 = tpu.dynamic_rotate %8 by %c17_i32 dim 1 : vector<40x256xf32>, i32 -> vector<40x256xf32>
    %11 = vector.extract_strided_slice %9 {offsets = [0, 0], sizes = [1, 256], strides = [1, 1]} : vector<9x256xf32> to vector<1x256xf32>
    %12 = vector.broadcast %11 : vector<1x256xf32> to vector<40x256xf32>
    %13 = arith.mulf %10, %12 : vector<40x256xf32>
    %c16_i32 = arith.constant 16 : i32
    %14 = tpu.dynamic_rotate %8 by %c16_i32 dim 1 : vector<40x256xf32>, i32 -> vector<40x256xf32>
    %15 = vector.extract_strided_slice %9 {offsets = [1, 0], sizes = [1, 256], strides = [1, 1]} : vector<9x256xf32> to vector<1x256xf32>
    %16 = vector.broadcast %15 : vector<1x256xf32> to vector<40x256xf32>
    %17 = arith.mulf %14, %16 : vector<40x256xf32>
    %c15_i32 = arith.constant 15 : i32
    %18 = tpu.dynamic_rotate %8 by %c15_i32 dim 1 : vector<40x256xf32>, i32 -> vector<40x256xf32>
    %19 = vector.extract_strided_slice %9 {offsets = [2, 0], sizes = [1, 256], strides = [1, 1]} : vector<9x256xf32> to vector<1x256xf32>
    %20 = vector.broadcast %19 : vector<1x256xf32> to vector<40x256xf32>
    %21 = arith.mulf %18, %20 : vector<40x256xf32>
    %c1_i32 = arith.constant 1 : i32
    %22 = tpu.dynamic_rotate %8 by %c1_i32 dim 1 : vector<40x256xf32>, i32 -> vector<40x256xf32>
    %23 = vector.extract_strided_slice %9 {offsets = [3, 0], sizes = [1, 256], strides = [1, 1]} : vector<9x256xf32> to vector<1x256xf32>
    %24 = vector.broadcast %23 : vector<1x256xf32> to vector<40x256xf32>
    %25 = arith.mulf %22, %24 : vector<40x256xf32>
    %c255_i32 = arith.constant 255 : i32
    %26 = tpu.dynamic_rotate %8 by %c255_i32 dim 1 : vector<40x256xf32>, i32 -> vector<40x256xf32>
    %27 = vector.extract_strided_slice %9 {offsets = [5, 0], sizes = [1, 256], strides = [1, 1]} : vector<9x256xf32> to vector<1x256xf32>
    %28 = vector.broadcast %27 : vector<1x256xf32> to vector<40x256xf32>
    %29 = arith.mulf %26, %28 : vector<40x256xf32>
    %c241_i32 = arith.constant 241 : i32
    %30 = tpu.dynamic_rotate %8 by %c241_i32 dim 1 : vector<40x256xf32>, i32 -> vector<40x256xf32>
    %31 = vector.extract_strided_slice %9 {offsets = [6, 0], sizes = [1, 256], strides = [1, 1]} : vector<9x256xf32> to vector<1x256xf32>
    %32 = vector.broadcast %31 : vector<1x256xf32> to vector<40x256xf32>
    %33 = arith.mulf %30, %32 : vector<40x256xf32>
    %c240_i32 = arith.constant 240 : i32
    %34 = tpu.dynamic_rotate %8 by %c240_i32 dim 1 : vector<40x256xf32>, i32 -> vector<40x256xf32>
    %35 = vector.extract_strided_slice %9 {offsets = [7, 0], sizes = [1, 256], strides = [1, 1]} : vector<9x256xf32> to vector<1x256xf32>
    %36 = vector.broadcast %35 : vector<1x256xf32> to vector<40x256xf32>
    %37 = arith.mulf %34, %36 : vector<40x256xf32>
    %c239_i32 = arith.constant 239 : i32
    %38 = tpu.dynamic_rotate %8 by %c239_i32 dim 1 : vector<40x256xf32>, i32 -> vector<40x256xf32>
    %39 = vector.extract_strided_slice %9 {offsets = [8, 0], sizes = [1, 256], strides = [1, 1]} : vector<9x256xf32> to vector<1x256xf32>
    %40 = vector.broadcast %39 : vector<1x256xf32> to vector<40x256xf32>
    %41 = arith.mulf %38, %40 : vector<40x256xf32>
    %42 = tpu.concatenate %13, %17, %21, %25, %8, %29, %33, %37, %41 in 0 : vector<40x256xf32>, vector<40x256xf32>, vector<40x256xf32>, vector<40x256xf32>, vector<40x256xf32>, vector<40x256xf32>, vector<40x256xf32>, vector<40x256xf32>, vector<40x256xf32> -> vector<360x256xf32>
    %43 = arith.truncf %42 : vector<360x256xf32> to vector<360x256xbf16>
    %c0_9 = arith.constant 0 : index
    %c0_10 = arith.constant 0 : index
    %44 = vector.load %arg4[%c0_9, %c0_10] : memref<128x360xbf16, #tpu.memory_space<vmem>>, vector<128x360xbf16>
    %cst = arith.constant dense<0.000000e+00> : vector<128x256xf32>
    %45 = tpu.matmul %44, %43, %cst {dimension_numbers = #tpu.dot_dimension_numbers<[1], [0], [0], [1], [0, 0, 1, 1], [], []>} : vector<128x360xbf16>, vector<360x256xbf16>, vector<128x256xf32> -> vector<128x256xf32>
    %c0_11 = arith.constant 0 : index
    %c0_12 = arith.constant 0 : index
    %46 = vector.load %arg5[%c0_11, %c0_12] : memref<128x1xf32, #tpu.memory_space<vmem>>, vector<128x1xf32>
    %47 = vector.broadcast %46 : vector<128x1xf32> to vector<128x256xf32>
    %48 = arith.addf %45, %47 : vector<128x256xf32>
    %49 = vector.extract_strided_slice %48 {offsets = [0, 0], sizes = [32, 256], strides = [1, 1]} : vector<128x256xf32> to vector<32x256xf32>
    %50 = arith.negf %49 : vector<32x256xf32>
    %51 = math.exp %50 : vector<32x256xf32>
    %cst_13 = arith.constant 1.000000e+00 : f32
    %52 = vector.broadcast %cst_13 : f32 to vector<32x256xf32>
    %53 = arith.addf %52, %51 : vector<32x256xf32>
    %54 = arith.divf %52, %53 : vector<32x256xf32>
    %55 = vector.extract_strided_slice %48 {offsets = [32, 0], sizes = [32, 256], strides = [1, 1]} : vector<128x256xf32> to vector<32x256xf32>
    %56 = arith.negf %55 : vector<32x256xf32>
    %57 = math.exp %56 : vector<32x256xf32>
    %cst_14 = arith.constant 1.000000e+00 : f32
    %58 = vector.broadcast %cst_14 : f32 to vector<32x256xf32>
    %59 = arith.addf %58, %57 : vector<32x256xf32>
    %60 = arith.divf %58, %59 : vector<32x256xf32>
    %61 = vector.extract_strided_slice %48 {offsets = [64, 0], sizes = [32, 256], strides = [1, 1]} : vector<128x256xf32> to vector<32x256xf32>
    %62 = arith.negf %61 : vector<32x256xf32>
    %63 = math.exp %62 : vector<32x256xf32>
    %cst_15 = arith.constant 1.000000e+00 : f32
    %64 = vector.broadcast %cst_15 : f32 to vector<32x256xf32>
    %65 = arith.addf %64, %63 : vector<32x256xf32>
    %66 = arith.divf %64, %65 : vector<32x256xf32>
    %67 = vector.extract_strided_slice %48 {offsets = [96, 0], sizes = [32, 256], strides = [1, 1]} : vector<128x256xf32> to vector<32x256xf32>
    %68 = math.tanh %67 : vector<32x256xf32>
    %c0_16 = arith.constant 0 : index
    %c0_17 = arith.constant 0 : index
    %c0_18 = arith.constant 0 : index
    %69 = vector.load %arg8[%c0_16, %c0_17, %c0_18] : memref<1x32x256xf32, #tpu.memory_space<vmem>>, vector<1x32x256xf32>
    %70 = vector.shape_cast %69 : vector<1x32x256xf32> to vector<32x256xf32>
    %71 = arith.mulf %60, %70 : vector<32x256xf32>
    %72 = arith.mulf %54, %68 : vector<32x256xf32>
    %73 = arith.addf %71, %72 : vector<32x256xf32>
    %74 = math.tanh %73 : vector<32x256xf32>
    %75 = arith.mulf %66, %74 : vector<32x256xf32>
    %c0_19 = arith.constant 0 : index
    %c0_20 = arith.constant 0 : index
    %c0_21 = arith.constant 0 : index
    %76 = vector.load %arg7[%c0_19, %c0_20, %c0_21] : memref<1x32x256xf32, #tpu.memory_space<vmem>>, vector<1x32x256xf32>
    %77 = vector.shape_cast %76 : vector<1x32x256xf32> to vector<32x256xf32>
    %78 = vector.shape_cast %75 : vector<32x256xf32> to vector<1x32x256xf32>
    tpu.vector_store %arg7[%c0_19, %c0_20, %c0_21], %78 {strides = array<i32>} : memref<1x32x256xf32, #tpu.memory_space<vmem>>, vector<1x32x256xf32>,
    %c0_22 = arith.constant 0 : index
    %c0_23 = arith.constant 0 : index
    %c0_24 = arith.constant 0 : index
    %79 = vector.load %arg8[%c0_22, %c0_23, %c0_24] : memref<1x32x256xf32, #tpu.memory_space<vmem>>, vector<1x32x256xf32>
    %80 = vector.shape_cast %79 : vector<1x32x256xf32> to vector<32x256xf32>
    %81 = vector.shape_cast %73 : vector<32x256xf32> to vector<1x32x256xf32>
    tpu.vector_store %arg8[%c0_22, %c0_23, %c0_24], %81 {strides = array<i32>} : memref<1x32x256xf32, #tpu.memory_space<vmem>>, vector<1x32x256xf32>,
    %c0_25 = arith.constant 0 : index
    %c0_26 = arith.constant 0 : index
    %c0_27 = arith.constant 0 : index
    %c0_28 = arith.constant 0 : index
    %82 = vector.load %arg6[%c0_25, %c0_26, %c0_27, %c0_28] : memref<1x1x32x256xf32, #tpu.memory_space<vmem>>, vector<1x1x32x256xf32>
    %83 = vector.shape_cast %82 : vector<1x1x32x256xf32> to vector<32x256xf32>
    %84 = vector.shape_cast %75 : vector<32x256xf32> to vector<1x1x32x256xf32>
    tpu.vector_store %arg6[%c0_25, %c0_26, %c0_27, %c0_28], %84 {strides = array<i32>} : memref<1x1x32x256xf32, #tpu.memory_space<vmem>>, vector<1x1x32x256xf32>,
    return
  }
  func.func @transform_0(%arg0: i32, %arg1: i32) -> (i32, i32, i32, i32) {
    %c0_i32 = arith.constant 0 : i32
    %c0_i32_0 = arith.constant 0 : i32
    %c0_i32_1 = arith.constant 0 : i32
    return %arg0, %arg1, %c0_i32, %c0_i32_0 : i32, i32, i32, i32
  }
  func.func @transform_1(%arg0: i32, %arg1: i32) -> (i32, i32) {
    %c0_i32 = arith.constant 0 : i32
    %c0_i32_0 = arith.constant 0 : i32
    %c0_i32_1 = arith.constant 0 : i32
    return %c0_i32, %c0_i32_0 : i32, i32
  }
  func.func @transform_2(%arg0: i32, %arg1: i32) -> (i32, i32) {
    %c0_i32 = arith.constant 0 : i32
    %c0_i32_0 = arith.constant 0 : i32
    %c0_i32_1 = arith.constant 0 : i32
    return %c0_i32, %c0_i32_0 : i32, i32
  }
  func.func @transform_3(%arg0: i32, %arg1: i32) -> (i32, i32) {
    %c0_i32 = arith.constant 0 : i32
    %c0_i32_0 = arith.constant 0 : i32
    %c0_i32_1 = arith.constant 0 : i32
    return %c0_i32, %c0_i32_0 : i32, i32
  }
  func.func @transform_4(%arg0: i32, %arg1: i32) -> (i32, i32, i32, i32) {
    %c0_i32 = arith.constant 0 : i32
    %c0_i32_0 = arith.constant 0 : i32
    %c0_i32_1 = arith.constant 0 : i32
    return %arg0, %arg1, %c0_i32, %c0_i32_0 : i32, i32, i32, i32
  }
  func.func @transform_5(%arg0: i32, %arg1: i32) -> (i32, i32, i32) {
    %c0_i32 = arith.constant 0 : i32
    %c0_i32_0 = arith.constant 0 : i32
    %c0_i32_1 = arith.constant 0 : i32
    return %arg0, %c0_i32, %c0_i32_0 : i32, i32, i32
  }
  func.func @transform_6(%arg0: i32, %arg1: i32) -> (i32, i32, i32) {
    %c0_i32 = arith.constant 0 : i32
    %c0_i32_0 = arith.constant 0 : i32
    %c0_i32_1 = arith.constant 0 : i32
    return %arg0, %c0_i32, %c0_i32_0 : i32, i32, i32
  }
}

module attributes {stable_mosaic.version = 11 : i64} {
  func.func @_convlstm_layer_kernel(%arg0: i32, %arg1: i32, %arg2: memref<1x1x32x256xbf16, #tpu.memory_space<vmem>>, %arg3: memref<9x256xf32, #tpu.memory_space<vmem>>, %arg4: memref<128x576xbf16, #tpu.memory_space<vmem>>, %arg5: memref<128x1xf32, #tpu.memory_space<vmem>>, %arg6: memref<1x1x32x256xf32, #tpu.memory_space<vmem>>, %arg7: memref<1x32x256xf32, #tpu.memory_space<vmem>>, %arg8: memref<1x32x256xf32, #tpu.memory_space<vmem>>) attributes {dimension_semantics = [#tpu.dimension_semantics<parallel>, #tpu.dimension_semantics<arbitrary>], iteration_bounds = array<i64: 2, 8>, scalar_prefetch = 0 : i64, scratch_operands = 0 : i64, tpu.core_type = #tpu.core_type<tc>, window_params = [{transform_indices = @transform_0, window_bounds = array<i64: 1, 1, 32, 256>}, {pipeline_mode = #tpu.pipeline_mode<synchronous>, transform_indices = @transform_1, window_bounds = array<i64: 9, 256>}, {pipeline_mode = #tpu.pipeline_mode<synchronous>, transform_indices = @transform_2, window_bounds = array<i64: 128, 576>}, {pipeline_mode = #tpu.pipeline_mode<synchronous>, transform_indices = @transform_3, window_bounds = array<i64: 128, 1>}, {transform_indices = @transform_4, window_bounds = array<i64: 1, 1, 32, 256>}, {transform_indices = @transform_5, window_bounds = array<i64: 1, 32, 256>}, {transform_indices = @transform_6, window_bounds = array<i64: 1, 32, 256>}]} {
    %c0_i32 = arith.constant 0 : i32
    %0 = arith.cmpi eq, %arg1, %c0_i32 : i32
    %1 = arith.extui %0 : i1 to i32
    %c0_i32_0 = arith.constant 0 : i32
    %2 = arith.cmpi ne, %1, %c0_i32_0 : i32
    scf.if %2 {
      %cst_29 = arith.constant 0.000000e+00 : f32
      %85 = vector.broadcast %cst_29 : f32 to vector<1x32x256xf32>
      %c0_30 = arith.constant 0 : index
      %c0_31 = arith.constant 0 : index
      %c0_32 = arith.constant 0 : index
      %86 = vector.load %arg7[%c0_30, %c0_31, %c0_32] : memref<1x32x256xf32, #tpu.memory_space<vmem>>, vector<1x32x256xf32>
      tpu.vector_store %arg7[%c0_30, %c0_31, %c0_32], %85 {strides = array<i32>} : memref<1x32x256xf32, #tpu.memory_space<vmem>>, vector<1x32x256xf32>,
      %cst_33 = arith.constant 0.000000e+00 : f32
      %87 = vector.broadcast %cst_33 : f32 to vector<1x32x256xf32>
      %c0_34 = arith.constant 0 : index
      %c0_35 = arith.constant 0 : index
      %c0_36 = arith.constant 0 : index
      %88 = vector.load %arg8[%c0_34, %c0_35, %c0_36] : memref<1x32x256xf32, #tpu.memory_space<vmem>>, vector<1x32x256xf32>
      tpu.vector_store %arg8[%c0_34, %c0_35, %c0_36], %87 {strides = array<i32>} : memref<1x32x256xf32, #tpu.memory_space<vmem>>, vector<1x32x256xf32>,
    } else {
    }
    %c0 = arith.constant 0 : index
    %c0_1 = arith.constant 0 : index
    %c0_2 = arith.constant 0 : index
    %c0_3 = arith.constant 0 : index
    %3 = vector.load %arg2[%c0, %c0_1, %c0_2, %c0_3] : memref<1x1x32x256xbf16, #tpu.memory_space<vmem>>, vector<1x1x32x256xbf16>
    %4 = vector.shape_cast %3 : vector<1x1x32x256xbf16> to vector<32x256xbf16>
    %5 = arith.extf %4 : vector<32x256xbf16> to vector<32x256xf32>
    %c0_4 = arith.constant 0 : index
    %c0_5 = arith.constant 0 : index
    %c0_6 = arith.constant 0 : index
    %6 = vector.load %arg7[%c0_4, %c0_5, %c0_6] : memref<1x32x256xf32, #tpu.memory_space<vmem>>, vector<1x32x256xf32>
    %7 = vector.shape_cast %6 : vector<1x32x256xf32> to vector<32x256xf32>
    %8 = tpu.concatenate %5, %7 in 0 : vector<32x256xf32>, vector<32x256xf32> -> vector<64x256xf32>
    %c0_7 = arith.constant 0 : index
    %c0_8 = arith.constant 0 : index
    %9 = vector.load %arg3[%c0_7, %c0_8] : memref<9x256xf32, #tpu.memory_space<vmem>>, vector<9x256xf32>
    %c17_i32 = arith.constant 17 : i32
    %10 = tpu.dynamic_rotate %8 by %c17_i32 dim 1 : vector<64x256xf32>, i32 -> vector<64x256xf32>
    %11 = vector.extract_strided_slice %9 {offsets = [0, 0], sizes = [1, 256], strides = [1, 1]} : vector<9x256xf32> to vector<1x256xf32>
    %12 = vector.broadcast %11 : vector<1x256xf32> to vector<64x256xf32>
    %13 = arith.mulf %10, %12 : vector<64x256xf32>
    %c16_i32 = arith.constant 16 : i32
    %14 = tpu.dynamic_rotate %8 by %c16_i32 dim 1 : vector<64x256xf32>, i32 -> vector<64x256xf32>
    %15 = vector.extract_strided_slice %9 {offsets = [1, 0], sizes = [1, 256], strides = [1, 1]} : vector<9x256xf32> to vector<1x256xf32>
    %16 = vector.broadcast %15 : vector<1x256xf32> to vector<64x256xf32>
    %17 = arith.mulf %14, %16 : vector<64x256xf32>
    %c15_i32 = arith.constant 15 : i32
    %18 = tpu.dynamic_rotate %8 by %c15_i32 dim 1 : vector<64x256xf32>, i32 -> vector<64x256xf32>
    %19 = vector.extract_strided_slice %9 {offsets = [2, 0], sizes = [1, 256], strides = [1, 1]} : vector<9x256xf32> to vector<1x256xf32>
    %20 = vector.broadcast %19 : vector<1x256xf32> to vector<64x256xf32>
    %21 = arith.mulf %18, %20 : vector<64x256xf32>
    %c1_i32 = arith.constant 1 : i32
    %22 = tpu.dynamic_rotate %8 by %c1_i32 dim 1 : vector<64x256xf32>, i32 -> vector<64x256xf32>
    %23 = vector.extract_strided_slice %9 {offsets = [3, 0], sizes = [1, 256], strides = [1, 1]} : vector<9x256xf32> to vector<1x256xf32>
    %24 = vector.broadcast %23 : vector<1x256xf32> to vector<64x256xf32>
    %25 = arith.mulf %22, %24 : vector<64x256xf32>
    %c255_i32 = arith.constant 255 : i32
    %26 = tpu.dynamic_rotate %8 by %c255_i32 dim 1 : vector<64x256xf32>, i32 -> vector<64x256xf32>
    %27 = vector.extract_strided_slice %9 {offsets = [5, 0], sizes = [1, 256], strides = [1, 1]} : vector<9x256xf32> to vector<1x256xf32>
    %28 = vector.broadcast %27 : vector<1x256xf32> to vector<64x256xf32>
    %29 = arith.mulf %26, %28 : vector<64x256xf32>
    %c241_i32 = arith.constant 241 : i32
    %30 = tpu.dynamic_rotate %8 by %c241_i32 dim 1 : vector<64x256xf32>, i32 -> vector<64x256xf32>
    %31 = vector.extract_strided_slice %9 {offsets = [6, 0], sizes = [1, 256], strides = [1, 1]} : vector<9x256xf32> to vector<1x256xf32>
    %32 = vector.broadcast %31 : vector<1x256xf32> to vector<64x256xf32>
    %33 = arith.mulf %30, %32 : vector<64x256xf32>
    %c240_i32 = arith.constant 240 : i32
    %34 = tpu.dynamic_rotate %8 by %c240_i32 dim 1 : vector<64x256xf32>, i32 -> vector<64x256xf32>
    %35 = vector.extract_strided_slice %9 {offsets = [7, 0], sizes = [1, 256], strides = [1, 1]} : vector<9x256xf32> to vector<1x256xf32>
    %36 = vector.broadcast %35 : vector<1x256xf32> to vector<64x256xf32>
    %37 = arith.mulf %34, %36 : vector<64x256xf32>
    %c239_i32 = arith.constant 239 : i32
    %38 = tpu.dynamic_rotate %8 by %c239_i32 dim 1 : vector<64x256xf32>, i32 -> vector<64x256xf32>
    %39 = vector.extract_strided_slice %9 {offsets = [8, 0], sizes = [1, 256], strides = [1, 1]} : vector<9x256xf32> to vector<1x256xf32>
    %40 = vector.broadcast %39 : vector<1x256xf32> to vector<64x256xf32>
    %41 = arith.mulf %38, %40 : vector<64x256xf32>
    %42 = tpu.concatenate %13, %17, %21, %25, %8, %29, %33, %37, %41 in 0 : vector<64x256xf32>, vector<64x256xf32>, vector<64x256xf32>, vector<64x256xf32>, vector<64x256xf32>, vector<64x256xf32>, vector<64x256xf32>, vector<64x256xf32>, vector<64x256xf32> -> vector<576x256xf32>
    %43 = arith.truncf %42 : vector<576x256xf32> to vector<576x256xbf16>
    %c0_9 = arith.constant 0 : index
    %c0_10 = arith.constant 0 : index
    %44 = vector.load %arg4[%c0_9, %c0_10] : memref<128x576xbf16, #tpu.memory_space<vmem>>, vector<128x576xbf16>
    %cst = arith.constant dense<0.000000e+00> : vector<128x256xf32>
    %45 = tpu.matmul %44, %43, %cst {dimension_numbers = #tpu.dot_dimension_numbers<[1], [0], [0], [1], [0, 0, 1, 1], [], []>} : vector<128x576xbf16>, vector<576x256xbf16>, vector<128x256xf32> -> vector<128x256xf32>
    %c0_11 = arith.constant 0 : index
    %c0_12 = arith.constant 0 : index
    %46 = vector.load %arg5[%c0_11, %c0_12] : memref<128x1xf32, #tpu.memory_space<vmem>>, vector<128x1xf32>
    %47 = vector.broadcast %46 : vector<128x1xf32> to vector<128x256xf32>
    %48 = arith.addf %45, %47 : vector<128x256xf32>
    %49 = vector.extract_strided_slice %48 {offsets = [0, 0], sizes = [32, 256], strides = [1, 1]} : vector<128x256xf32> to vector<32x256xf32>
    %50 = arith.negf %49 : vector<32x256xf32>
    %51 = math.exp %50 : vector<32x256xf32>
    %cst_13 = arith.constant 1.000000e+00 : f32
    %52 = vector.broadcast %cst_13 : f32 to vector<32x256xf32>
    %53 = arith.addf %52, %51 : vector<32x256xf32>
    %54 = arith.divf %52, %53 : vector<32x256xf32>
    %55 = vector.extract_strided_slice %48 {offsets = [32, 0], sizes = [32, 256], strides = [1, 1]} : vector<128x256xf32> to vector<32x256xf32>
    %56 = arith.negf %55 : vector<32x256xf32>
    %57 = math.exp %56 : vector<32x256xf32>
    %cst_14 = arith.constant 1.000000e+00 : f32
    %58 = vector.broadcast %cst_14 : f32 to vector<32x256xf32>
    %59 = arith.addf %58, %57 : vector<32x256xf32>
    %60 = arith.divf %58, %59 : vector<32x256xf32>
    %61 = vector.extract_strided_slice %48 {offsets = [64, 0], sizes = [32, 256], strides = [1, 1]} : vector<128x256xf32> to vector<32x256xf32>
    %62 = arith.negf %61 : vector<32x256xf32>
    %63 = math.exp %62 : vector<32x256xf32>
    %cst_15 = arith.constant 1.000000e+00 : f32
    %64 = vector.broadcast %cst_15 : f32 to vector<32x256xf32>
    %65 = arith.addf %64, %63 : vector<32x256xf32>
    %66 = arith.divf %64, %65 : vector<32x256xf32>
    %67 = vector.extract_strided_slice %48 {offsets = [96, 0], sizes = [32, 256], strides = [1, 1]} : vector<128x256xf32> to vector<32x256xf32>
    %68 = math.tanh %67 : vector<32x256xf32>
    %c0_16 = arith.constant 0 : index
    %c0_17 = arith.constant 0 : index
    %c0_18 = arith.constant 0 : index
    %69 = vector.load %arg8[%c0_16, %c0_17, %c0_18] : memref<1x32x256xf32, #tpu.memory_space<vmem>>, vector<1x32x256xf32>
    %70 = vector.shape_cast %69 : vector<1x32x256xf32> to vector<32x256xf32>
    %71 = arith.mulf %60, %70 : vector<32x256xf32>
    %72 = arith.mulf %54, %68 : vector<32x256xf32>
    %73 = arith.addf %71, %72 : vector<32x256xf32>
    %74 = math.tanh %73 : vector<32x256xf32>
    %75 = arith.mulf %66, %74 : vector<32x256xf32>
    %c0_19 = arith.constant 0 : index
    %c0_20 = arith.constant 0 : index
    %c0_21 = arith.constant 0 : index
    %76 = vector.load %arg7[%c0_19, %c0_20, %c0_21] : memref<1x32x256xf32, #tpu.memory_space<vmem>>, vector<1x32x256xf32>
    %77 = vector.shape_cast %76 : vector<1x32x256xf32> to vector<32x256xf32>
    %78 = vector.shape_cast %75 : vector<32x256xf32> to vector<1x32x256xf32>
    tpu.vector_store %arg7[%c0_19, %c0_20, %c0_21], %78 {strides = array<i32>} : memref<1x32x256xf32, #tpu.memory_space<vmem>>, vector<1x32x256xf32>,
    %c0_22 = arith.constant 0 : index
    %c0_23 = arith.constant 0 : index
    %c0_24 = arith.constant 0 : index
    %79 = vector.load %arg8[%c0_22, %c0_23, %c0_24] : memref<1x32x256xf32, #tpu.memory_space<vmem>>, vector<1x32x256xf32>
    %80 = vector.shape_cast %79 : vector<1x32x256xf32> to vector<32x256xf32>
    %81 = vector.shape_cast %73 : vector<32x256xf32> to vector<1x32x256xf32>
    tpu.vector_store %arg8[%c0_22, %c0_23, %c0_24], %81 {strides = array<i32>} : memref<1x32x256xf32, #tpu.memory_space<vmem>>, vector<1x32x256xf32>,
    %c0_25 = arith.constant 0 : index
    %c0_26 = arith.constant 0 : index
    %c0_27 = arith.constant 0 : index
    %c0_28 = arith.constant 0 : index
    %82 = vector.load %arg6[%c0_25, %c0_26, %c0_27, %c0_28] : memref<1x1x32x256xf32, #tpu.memory_space<vmem>>, vector<1x1x32x256xf32>
    %83 = vector.shape_cast %82 : vector<1x1x32x256xf32> to vector<32x256xf32>
    %84 = vector.shape_cast %75 : vector<32x256xf32> to vector<1x1x32x256xf32>
    tpu.vector_store %arg6[%c0_25, %c0_26, %c0_27, %c0_28], %84 {strides = array<i32>} : memref<1x1x32x256xf32, #tpu.memory_space<vmem>>, vector<1x1x32x256xf32>,
    return
  }
  func.func @transform_0(%arg0: i32, %arg1: i32) -> (i32, i32, i32, i32) {
    %c0_i32 = arith.constant 0 : i32
    %c0_i32_0 = arith.constant 0 : i32
    %c0_i32_1 = arith.constant 0 : i32
    return %arg0, %arg1, %c0_i32, %c0_i32_0 : i32, i32, i32, i32
  }
  func.func @transform_1(%arg0: i32, %arg1: i32) -> (i32, i32) {
    %c0_i32 = arith.constant 0 : i32
    %c0_i32_0 = arith.constant 0 : i32
    %c0_i32_1 = arith.constant 0 : i32
    return %c0_i32, %c0_i32_0 : i32, i32
  }
  func.func @transform_2(%arg0: i32, %arg1: i32) -> (i32, i32) {
    %c0_i32 = arith.constant 0 : i32
    %c0_i32_0 = arith.constant 0 : i32
    %c0_i32_1 = arith.constant 0 : i32
    return %c0_i32, %c0_i32_0 : i32, i32
  }
  func.func @transform_3(%arg0: i32, %arg1: i32) -> (i32, i32) {
    %c0_i32 = arith.constant 0 : i32
    %c0_i32_0 = arith.constant 0 : i32
    %c0_i32_1 = arith.constant 0 : i32
    return %c0_i32, %c0_i32_0 : i32, i32
  }
  func.func @transform_4(%arg0: i32, %arg1: i32) -> (i32, i32, i32, i32) {
    %c0_i32 = arith.constant 0 : i32
    %c0_i32_0 = arith.constant 0 : i32
    %c0_i32_1 = arith.constant 0 : i32
    return %arg0, %arg1, %c0_i32, %c0_i32_0 : i32, i32, i32, i32
  }
  func.func @transform_5(%arg0: i32, %arg1: i32) -> (i32, i32, i32) {
    %c0_i32 = arith.constant 0 : i32
    %c0_i32_0 = arith.constant 0 : i32
    %c0_i32_1 = arith.constant 0 : i32
    return %arg0, %c0_i32, %c0_i32_0 : i32, i32, i32
  }
  func.func @transform_6(%arg0: i32, %arg1: i32) -> (i32, i32, i32) {
    %c0_i32 = arith.constant 0 : i32
    %c0_i32_0 = arith.constant 0 : i32
    %c0_i32_1 = arith.constant 0 : i32
    return %arg0, %c0_i32, %c0_i32_0 : i32, i32, i32
  }
}

</mosaic_0001>

<bundles_post_ra>
// kernel: conv_lstm_forward.3
= control target key start
LH: loop header
LB: loop body
LE: loop exit
PB: predicated region body
PF: predicated region fallthrough
CT: control target
= control target key end

     0   :  { %s2820_s21 = smov 0   ;;  %s2822_s22 = smov 0   ;;  %s3947_s0 = inlined_call_operand.vmem [shape: bf16[2,8,32,256], index: 0, kind: input, shape index: {}]   ;;  %s3948_s1 = inlined_call_operand.vmem [shape: f32[9,256], index: 1, kind: input, shape index: {}]   ;;  %s3949_s2 = inlined_call_operand.vmem [shape: bf16[128,576], index: 2, kind: input, shape index: {}]   ;;  %s3950_s3 = inlined_call_operand.vmem [shape: f32[128,1], index: 3, kind: input, shape index: {}]   ;;  %s3951_s4 = inlined_call_operand.vmem [shape: f32[2,8,32,256], index: 4, kind: output, shape index: {0}]   ;;  %s3952_s5 = inlined_call_operand.vmem [shape: f32[2,32,256], index: 5, kind: output, shape index: {1}]   ;;  %s3953_s6 = inlined_call_operand.vmem [shape: f32[2,32,256], index: 6, kind: output, shape index: {2}]  }
   0x1   :  { %s2824_s23 = smov 0   ;;  %s2826_s24 = smov 0  }
   0x2   :  { %s2828_s25 = smov 0  }
   0x3 LB: > { %s26_s26 = sadd.s32 1, %s2765_s23  ;;  %s29_s27 = sadd.s32 1, %s2769_s24  ;;  %s2773_s25 = sphi %s2828_s25, %s17_s25   ;;  %s2769_s24 = sphi %s2826_s24, %s3957_s24   ;;  %s2765_s23 = sphi %s2824_s23, %s3956_s23   ;;  %s2761_s22 = sphi %s2822_s22, %s3955_s22   ;;  %s2757_s21 = sphi %s2820_s21, %s3954_s21  }
   0x4   : > { %p27_p0 = scmp.ge.s32.totalorder %s26_s26, 8  ;;  %p2113_p1 = scmp.ge.s32.totalorder %s2773_s25, 1 }
   0x5   : > { %p237_p2 = scmp.lt.s32.totalorder %s2773_s25, 17 }
   0x6   : > { %s3959_s26 = smov (%p27_p0, %s26_s26), 0  ;;  %s3961_s27 = smov (!%p27_p0, %s29_s27), %s2769_s24 }
   0x7   : > { %p238_p3 = pnand %p2113_p1, %p237_p2  ;;  %p31_p4 = scmp.ge.s32.totalorder %s3961_s27, 2 }
   0x8   : > { %p285_p5 = scmp.lt.s32.totalorder (!%p238_p3), %s2761_s22, 1  ;;  %p287_p6 = scmp.lt.s32.totalorder (!%p238_p3), %s2757_s21, 7 }
   0x9   : > { %s3963_s27 = smov (%p31_p4, %s3961_s27), 0  ;;  %241 = sbr.rel (%p238_p3) target bundleno = 666 (0x29a), region = 36 }
   0xa   : > { %p2124_p7 = scmp.ne.s32.totalorder (!%p238_p3), %s2757_s21, 0 }
  0x10   : > { %s3965_s22 = smov (!%p285_p5, %s2761_s22), 1  ;;  %317 = sbr.rel (%p2124_p7) target bundleno = 28 (0x1c), region = 40 }
  0x11   : > { %s288_s28 = scalar_select %p287_p6, %s2757_s21, 7 }
  0x12   : > { %s2115_s29 = sshll.u32 %s3965_s22, 6  ;;  %v2775_v0 = vmov (!%p2124_p7), 0.0  }
  0x13   : > { %s2114_s30 = sshll.u32 %s288_s28, 3  ;;  %s2857_s9 = scalar_lea.vmem %s3952_s5, %s2115_s29 }
  0x14   : > { %s291_s10 = sadd.s32 %s2115_s29, %s2114_s30  ;;  %s2862_s13 = scalar_lea.vmem %s3953_s6, %s2115_s29  ;;  %318 = vst [vmem:[%s2857_s9] sm:$0xff] (!%p2124_p7), %v2775_v0  ;;  %319 = vst [vmem:[%s2857_s9 + $0x8] sm:$0xff] (!%p2124_p7), %v2775_v0 }
  0x15   : > { %s2116_s14 = sshll.u32 %s291_s10, 2  ;;  %s2119_s15 = sshll.u32 %s291_s10, 3  ;;  %320 = vst [vmem:[%s2857_s9 + $0x10] sm:$0xff] (!%p2124_p7), %v2775_v0  ;;  %321 = vst [vmem:[%s2857_s9 + $0x18] sm:$0xff] (!%p2124_p7), %v2775_v0 }
  0x16   : > { %s293_s18 = scalar_lea.vmem %s3947_s0, %s2116_s14  ;;  %s2870_s22 = scalar_lea.vmem %s3951_s4, %s2119_s15  ;;  %322 = vst [vmem:[%s2857_s9 + $0x20] sm:$0xff] (!%p2124_p7), %v2775_v0  ;;  %323 = vst [vmem:[%s2857_s9 + $0x28] sm:$0xff] (!%p2124_p7), %v2775_v0 }
  0x17   : > { %324 = vst [vmem:[%s2857_s9 + $0x30] sm:$0xff] %v2775_v0  ;;  %325 = vst [vmem:[%s2857_s9 + $0x38] sm:$0xff] %v2775_v0 }
  0x18   : > { %326 = vst [vmem:[%s2862_s13] sm:$0xff] %v2775_v0  ;;  %327 = vst [vmem:[%s2862_s13 + $0x8] sm:$0xff] %v2775_v0 }
  0x19   : > { %328 = vst [vmem:[%s2862_s13 + $0x10] sm:$0xff] %v2775_v0  ;;  %329 = vst [vmem:[%s2862_s13 + $0x18] sm:$0xff] %v2775_v0 }
  0x1a   : > { %330 = vst [vmem:[%s2862_s13 + $0x20] sm:$0xff] %v2775_v0  ;;  %331 = vst [vmem:[%s2862_s13 + $0x28] sm:$0xff] %v2775_v0 }
  0x1b   : > { %332 = vst [vmem:[%s2862_s13 + $0x30] sm:$0xff] %v2775_v0  ;;  %333 = vst [vmem:[%s2862_s13 + $0x38] sm:$0xff] %v2775_v0 }
  0x1c PF: > { %v336_v1 = vld [vmem:[%s293_s18 + $0x10] sm:$0xff]  ;;  %v337_v2 = vld [vmem:[%s293_s18 + $0x18] sm:$0xff]  ;;  %v334_v3 = vld [vmem:[%s293_s18] sm:$0xff]  ;;  %s2776_s21 = smov 17   ;;  %s2777_s28 = smov 16   ;;  %v390_v33 = vlaneseq  ;;  %vm1360_vm8 = vcmask 523264  }
  0x1d   : > { %v342_v4 = vunpack.c.l.bf16 %v336_v1  ;;  %v344_v5 = vunpack.c.l.bf16 %v337_v2  ;;  %v335_v6 = vld [vmem:[%s293_s18 + $0x8] sm:$0xff]  ;;  %v338_v7 = vunpack.c.l.bf16 %v334_v3  ;;  %v343_v8 = vunpack.c.h.bf16 %v336_v1  ;;  %s2778_s29 = smov 127   ;;  %s2779_s30 = smov 15   ;;  %v3031_v39 = vld [vmem:[%s3948_s1] sm:$0xff] }
  0x1e   : > { %v340_v9 = vunpack.c.l.bf16 %v335_v6  ;;  %v345_v10 = vunpack.c.h.bf16 %v337_v2  ;;  %v339_v11 = vunpack.c.h.bf16 %v334_v3  ;;  %v341_v12 = vunpack.c.h.bf16 %v335_v6  ;;  %s2780_s7 = smov 113   ;;  %v3036_v40 = vld [vmem:[%s3948_s1 + $0x8] sm:$0xff]  ;;  %s2781_s14 = smov 1  }
  0x1f   : > { %v2889_v13 = vpack.i.bf16 %v344_v5, %v342_v4  ;;  %v2911_v19 = vcombine.high %v334_v3, %v335_v6  ;;  %v2916_v21 = vcombine.low %v334_v3, %v335_v6  ;;  %v2927_v23 = vcombine.high %v336_v1, %v337_v2  ;;  %s2782_s15 = smov 112   ;;  %s2783_s20 = smov 111  }
  0x20   : > { %v2891_v14 = vpack.i.bf16 %v340_v9, %v338_v7  ;;  %v2895_v15 = vpack.i.bf16 %v345_v10, %v343_v8  ;;  %v2899_v16 = vpack.i.bf16 %v341_v12, %v339_v11  ;;  %v2907_v18 = vld [vmem:[%s2857_s9] sm:$0xff]  ;;  %v2921_v22 = vld [vmem:[%s2857_s9 + $0x8] sm:$0xff]  ;;  %v2933_v25 = vcombine.low %v336_v1, %v337_v2 }
  0x21   : > { %2396 = vrot.lane.b32.xlu1 %v2889_v13, %s2776_s21  ;;  %v2902_v17 = vld [vmem:[%s2857_s9 + $0x10] sm:$0xff]  ;;  %v2914_v20 = vld [vmem:[%s2857_s9 + $0x18] sm:$0xff]  ;;  %1498 = vmatprep.subr.bf16.mxu0 %v2911_v19  ;;  %v3021_v34 = vshrl.u32 %v390_v33, 7  ;;  %v3025_v36 = vand.u32 127, %v390_v33 }
  0x22   : > { %2386 = vrot.lane.b32.xlu0 %v2891_v14, %s2776_s21  ;;  %1499 = vmatpush1.bf16.msra.mxu0 %v2916_v21  ;;  %v2938_v26 = vld [vmem:[%s2857_s9 + $0x20] sm:$0xff]  ;;  %v2945_v27 = vpack.c.bf16 %v2914_v20, %v2921_v22  ;;  %v2949_v28 = vpack.c.bf16 %v2902_v17, %v2907_v18  ;;  %v2960_v30 = vld [vmem:[%s2857_s9 + $0x28] sm:$0xff] }
  0x23   : > { %v2930_v24 = vld [vmem:[%s2857_s9 + $0x30] sm:$0xff]  ;;  %1500 = vmatprep.subr.bf16.mxu0 %v2927_v23  ;;  %v2957_v29 = vld [vmem:[%s2857_s9 + $0x38] sm:$0xff]  ;;  %v411_v37 = vsub.s32 0, %v3021_v34  ;;  %vm392_vm0 = vcmp.lt.s32.totalorder %v3025_v36, 17  ;;  %vm465_vm1 = vcmp.lt.s32.totalorder %v3025_v36, 16  ;;  %vm684_vm2 = vcmp.lt.s32.totalorder %v3025_v36, 127 }
  0x24   : > { %v2965_v31 = vpack.c.bf16 %v2957_v29, %v2960_v30  ;;  %v2972_v32 = vpack.c.bf16 %v2930_v24, %v2938_v26  ;;  %vm538_vm3 = vcmp.lt.s32.totalorder %v3025_v36, 15  ;;  %vm757_vm4 = vcmp.lt.s32.totalorder %v3025_v36, 113 }
  0x25   : > { %2401 = vrot.lane.b32.xlu1 %v2895_v15, %s2776_s21  ;;  %v3042_v42 = vrot.slane %v3031_v39, %v411_v37  ;;  %v3045_v43 = vrot.slane %v3036_v40, %v411_v37  ;;  %vm611_vm5 = vcmp.lt.s32.totalorder %v3025_v36, 1  ;;  %vm830_vm6 = vcmp.lt.s32.totalorder %v3025_v36, 112 }
  0x26   : > { %2391 = vrot.lane.b32.xlu0 %v2899_v16, %s2776_s21  ;;  %1501 = vmatpush1.bf16.msra.mxu0 %v2933_v25  ;;  %vm903_vm7 = vcmp.lt.s32.totalorder %v3025_v36, 111  ;;  %v2576_v36 = vld [vmem:[%s3949_s2 + $0xa0] ss:$20 sps:$4 sm:$0xff]  }
  0x27   : > { %1502 = vmatprep.subr.bf16.mxu0 %v2945_v27 }
  0x29   : > { %368 = vrot.lane.b32.xlu1 %v2902_v17, %s2776_s21 }
  0x2a   : > { %366 = vrot.lane.b32.xlu0 %v2907_v18, %s2776_s21  ;;  %1503 = vmatpush1.bf16.msra.mxu0 %v2949_v28 }
  0x2b   : > { %1504 = vmatprep.subr.bf16.mxu0 %v2965_v31 }
  0x2d   : > { %384 = vrot.lane.b32.xlu1 %v2914_v20, %s2776_s21 }
  0x2e   : > { %382 = vrot.lane.b32.xlu0 %v2921_v22, %s2776_s21  ;;  %1505 = vmatpush1.bf16.msra.mxu0 %v2972_v32 }
  0x31   : > { %372 = vrot.lane.b32.xlu1 %v2930_v24, %s2776_s21 }
  0x32   : > { %370 = vrot.lane.b32.xlu0 %v2938_v26, %s2776_s21 }
  0x35   : > { %388 = vrot.lane.b32.xlu1 %v2957_v29, %s2776_s21 }
  0x36   : > { %386 = vrot.lane.b32.xlu0 %v2960_v30, %s2776_s21 }
  0x39   : > { %2411 = vrot.lane.b32.xlu1 %v2899_v16, %s2777_s28 }
  0x3a   : > { %2406 = vrot.lane.b32.xlu0 %v2891_v14, %s2777_s28 }
  0x3d   : > { %2421 = vrot.lane.b32.xlu1 %v2899_v16, %s2778_s29 }
  0x3e   : > { %2416 = vrot.lane.b32.xlu0 %v2891_v14, %s2778_s29 }
  0x41   : > { %2431 = vrot.lane.b32.xlu1 %v2895_v15, %s2777_s28 }
  0x42   : > { %2426 = vrot.lane.b32.xlu0 %v2889_v13, %s2777_s28 }
  0x45   : > { %2441 = vrot.lane.b32.xlu1 %v2895_v15, %s2778_s29 }
  0x46   : > { %2436 = vrot.lane.b32.xlu0 %v2889_v13, %s2778_s29 }
  0x49   : > { %443 = vrot.lane.b32.xlu1 %v2902_v17, %s2777_s28 }
  0x4a   : > { %441 = vrot.lane.b32.xlu0 %v2907_v18, %s2777_s28 }
  0x4d   : > { %459 = vrot.lane.b32.xlu1 %v2914_v20, %s2777_s28 }
  0x4e   : > { %457 = vrot.lane.b32.xlu0 %v2921_v22, %s2777_s28 }
  0x51   : > { %662 = vrot.lane.b32.xlu1 %v2902_v17, %s2778_s29 }
  0x52   : > { %660 = vrot.lane.b32.xlu0 %v2907_v18, %s2778_s29 }
  0x55   : > { %678 = vrot.lane.b32.xlu1 %v2914_v20, %s2778_s29 }
  0x56   : > { %676 = vrot.lane.b32.xlu0 %v2921_v22, %s2778_s29 }
  0x59   : > { %447 = vrot.lane.b32.xlu1 %v2930_v24, %s2777_s28 }
  0x5a   : > { %445 = vrot.lane.b32.xlu0 %v2938_v26, %s2777_s28 }
  0x5d   : > { %463 = vrot.lane.b32.xlu1 %v2957_v29, %s2777_s28 }
  0x5e   : > { %461 = vrot.lane.b32.xlu0 %v2960_v30, %s2777_s28 }
  0x61   : > { %666 = vrot.lane.b32.xlu1 %v2930_v24, %s2778_s29 }
  0x62   : > { %664 = vrot.lane.b32.xlu0 %v2938_v26, %s2778_s29 }
  0x65   : > { %682 = vrot.lane.b32.xlu1 %v2957_v29, %s2778_s29 }
  0x66   : > { %680 = vrot.lane.b32.xlu0 %v2960_v30, %s2778_s29 }
  0x69   : > { %2451 = vrot.lane.b32.xlu1 %v2899_v16, %s2779_s30 }
  0x6a   : > { %2446 = vrot.lane.b32.xlu0 %v2891_v14, %s2779_s30 }
  0x6d   : > { %2461 = vrot.lane.b32.xlu1 %v2899_v16, %s2780_s7 }
  0x6e   : > { %2456 = vrot.lane.b32.xlu0 %v2891_v14, %s2780_s7 }
  0x71   : > { %2471 = vrot.lane.b32.xlu1 %v2895_v15, %s2779_s30 }
  0x72   : > { %2466 = vrot.lane.b32.xlu0 %v2889_v13, %s2779_s30 }
  0x75   : > { %2481 = vrot.lane.b32.xlu1 %v2895_v15, %s2780_s7 }
  0x76   : > { %2476 = vrot.lane.b32.xlu0 %v2889_v13, %s2780_s7 }
  0x79   : > { %516 = vrot.lane.b32.xlu1 %v2902_v17, %s2779_s30 }
  0x7a   : > { %514 = vrot.lane.b32.xlu0 %v2907_v18, %s2779_s30 }
  0x7d   : > { %532 = vrot.lane.b32.xlu1 %v2914_v20, %s2779_s30 }
  0x7e   : > { %530 = vrot.lane.b32.xlu0 %v2921_v22, %s2779_s30 }
  0x81   : > { %735 = vrot.lane.b32.xlu1 %v2902_v17, %s2780_s7 }
  0x82   : > { %733 = vrot.lane.b32.xlu0 %v2907_v18, %s2780_s7 }
  0x85   : > { %751 = vrot.lane.b32.xlu1 %v2914_v20, %s2780_s7 }
  0x86   : > { %749 = vrot.lane.b32.xlu0 %v2921_v22, %s2780_s7 }
  0x89   : > { %520 = vrot.lane.b32.xlu1 %v2930_v24, %s2779_s30 }
  0x8a   : > { %518 = vrot.lane.b32.xlu0 %v2938_v26, %s2779_s30 }
  0x8d   : > { %536 = vrot.lane.b32.xlu1 %v2957_v29, %s2779_s30 }
  0x8e   : > { %534 = vrot.lane.b32.xlu0 %v2960_v30, %s2779_s30 }
  0x91   : > { %739 = vrot.lane.b32.xlu1 %v2930_v24, %s2780_s7 }
  0x92   : > { %737 = vrot.lane.b32.xlu0 %v2938_v26, %s2780_s7 }
  0x93   : > { %v2397_v35 = vpop.permute.xlu1 %2396 }
  0x94   : > { %v2387_v38 = vpop.permute.xlu0 %2386  ;;  %v2399_v44 = vunpack.i.h.bf16 %v2397_v35  ;;  %v2398_v45 = vunpack.i.l.bf16 %v2397_v35 }
  0x95   : > { %755 = vrot.lane.b32.xlu1 %v2957_v29, %s2780_s7  ;;  %v2389_v49 = vunpack.i.h.bf16 %v2387_v38  ;;  %v2388_v50 = vunpack.i.l.bf16 %v2387_v38 }
  0x96   : > { %753 = vrot.lane.b32.xlu0 %v2960_v30, %s2780_s7 }
  0x97   : > { %v2402_v41 = vpop.permute.xlu1 %2401 }
  0x98   : > { %v2404_v46 = vunpack.i.h.bf16 %v2402_v41  ;;  %v2403_v47 = vunpack.i.l.bf16 %v2402_v41  ;;  %v2392_v48 = vpop.permute.xlu0 %2391 }
  0x99   : > { %v2394_v51 = vunpack.i.h.bf16 %v2392_v48  ;;  %v2393_v52 = vunpack.i.l.bf16 %v2392_v48  ;;  %2491 = vrot.lane.b32.xlu1 %v2899_v16, %s2781_s14 }
  0x9a   : > { %2486 = vrot.lane.b32.xlu0 %v2891_v14, %s2781_s14  ;;  %v395_v53 = vsel %vm392_vm0, %v2398_v45, %v2403_v47  ;;  %v396_v54 = vsel %vm392_vm0, %v2399_v44, %v2404_v46  ;;  %v403_v55 = vsel %vm392_vm0, %v2403_v47, %v2398_v45  ;;  %v404_v56 = vsel %vm392_vm0, %v2404_v46, %v2399_v44 }
  0x9b   : > { %v369_v57 = vpop.permute.xlu1 %368  ;;  %v393_v58 = vsel %vm392_vm0, %v2388_v50, %v2393_v52  ;;  %v394_v59 = vsel %vm392_vm0, %v2389_v49, %v2394_v51  ;;  %v401_v60 = vsel %vm392_vm0, %v2393_v52, %v2388_v50  ;;  %v402_v61 = vsel %vm392_vm0, %v2394_v51, %v2389_v49 }
  0x9c   : > { %v367_v62 = vpop.permute.xlu0 %366  ;;  %v418_v63 = vmul.f32 %v3045_v43, %v393_v58  ;;  %v420_v0 = vmul.f32 %v3045_v43, %v394_v59  ;;  %v417_v1 = vmul.f32 %v3042_v42, %v401_v60  ;;  %v419_v2 = vmul.f32 %v3042_v42, %v402_v61 }
  0x9d   : > { %2501 = vrot.lane.b32.xlu1 %v2899_v16, %s2782_s15  ;;  %v422_v3 = vmul.f32 %v3045_v43, %v395_v53  ;;  %v424_v4 = vmul.f32 %v3045_v43, %v396_v54  ;;  %v421_v8 = vmul.f32 %v3042_v42, %v403_v55  ;;  %v423_v9 = vmul.f32 %v3042_v42, %v404_v56 }
  0x9e   : > { %2496 = vrot.lane.b32.xlu0 %v2891_v14, %s2782_s15  ;;  %v945_v5 = vpack.c.bf16 %v420_v0, %v418_v63  ;;  %v944_v6 = vpack.c.bf16 %v419_v2, %v417_v1  ;;  %v484_v52 = vsub.s32 1, %v3021_v34 }
  0x9f   : > { %v385_v7 = vpop.permute.xlu1 %384  ;;  %v947_v38 = vpack.c.bf16 %v424_v4, %v422_v3  ;;  %v946_v47 = vpack.c.bf16 %v423_v9, %v421_v8 }
  0xa0   : > { %v398_v10 = vsel %vm392_vm0, %v369_v57, %v385_v7  ;;  %v406_v11 = vsel %vm392_vm0, %v385_v7, %v369_v57  ;;  %v383_v12 = vpop.permute.xlu0 %382  ;;  %1385 = vmatprep.subr.bf16.mxu1 %v945_v5  ;;  %v3119_v0 = vrot.slane %v3036_v40, %v484_v52 }
  0xa1   : > { %v428_v33 = vmul.f32 %v3045_v43, %v398_v10  ;;  %v397_v35 = vsel %vm392_vm0, %v367_v62, %v383_v12  ;;  %v405_v37 = vsel %vm392_vm0, %v383_v12, %v367_v62  ;;  %1386 = vmatpush1.bf16.msra.mxu1 %v944_v6  ;;  %2511 = vrot.lane.b32.xlu1 %v2895_v15, %s2781_s14  ;;  %v703_v62 = vsub.s32 5, %v3021_v34 }
  0xa2   : > { %v426_v41 = vmul.f32 %v3045_v43, %v397_v35  ;;  %2506 = vrot.lane.b32.xlu0 %v2889_v13, %s2781_s14  ;;  %v427_v44 = vmul.f32 %v3042_v42, %v406_v11  ;;  %v425_v45 = vmul.f32 %v3042_v42, %v405_v37  ;;  %1387 = vmatprep.subr.bf16.mxu1 %v947_v38 }
  0xa3   : > { %v373_v46 = vpop.permute.xlu1 %372  ;;  %v3122_v6 = vrot.slane %v3031_v39, %v484_v52  ;;  %v3130_v7 = vrot.slane %v3036_v40, %v703_v62  ;;  %v3133_v8 = vrot.slane %v3031_v39, %v703_v62 }
  0xa4   : > { %v371_v48 = vpop.permute.xlu0 %370  ;;  %v949_v49 = vpack.c.bf16 %v428_v33, %v426_v41  ;;  %v948_v51 = vpack.c.bf16 %v427_v44, %v425_v45 }
  0xa5   : > { %1388 = vmatpush1.bf16.msra.mxu1 %v946_v47  ;;  %2521 = vrot.lane.b32.xlu1 %v2895_v15, %s2782_s15 }
  0xa6   : > { %2516 = vrot.lane.b32.xlu0 %v2889_v13, %s2782_s15  ;;  %1389 = vmatprep.subr.bf16.mxu1 %v949_v49 }
  0xa7   : > { %v389_v50 = vpop.permute.xlu1 %388 }
  0xa8   : > { %v400_v53 = vsel %vm392_vm0, %v373_v46, %v389_v50  ;;  %v408_v54 = vsel %vm392_vm0, %v389_v50, %v373_v46  ;;  %v387_v55 = vpop.permute.xlu0 %386 }
  0xa9   : > { %v431_v56 = vmul.f32 %v3042_v42, %v408_v54  ;;  %v432_v57 = vmul.f32 %v3045_v43, %v400_v53  ;;  %v399_v58 = vsel %vm392_vm0, %v371_v48, %v387_v55  ;;  %v407_v59 = vsel %vm392_vm0, %v387_v55, %v371_v48  ;;  %1390 = vmatpush1.bf16.msra.mxu1 %v948_v51 }
  0xaa   : > { %v429_v60 = vmul.f32 %v3042_v42, %v407_v59  ;;  %v430_v61 = vmul.f32 %v3045_v43, %v399_v58  ;;  %589 = vrot.lane.b32.xlu1 %v2902_v17, %s2781_s14  ;;  %587 = vrot.lane.b32.xlu0 %v2907_v18, %s2781_s14 }
  0xab   : > { %v2412_v63 = vpop.permute.xlu1 %2411 }
  0xac   : > { %v2414_v1 = vunpack.i.h.bf16 %v2412_v63  ;;  %v2413_v2 = vunpack.i.l.bf16 %v2412_v63  ;;  %v2407_v3 = vpop.permute.xlu0 %2406  ;;  %v951_v42 = vpack.c.bf16 %v432_v57, %v430_v61  ;;  %v950_v4 = vpack.c.bf16 %v431_v56, %v429_v60 }
  0xad   : > { %v2409_v43 = vunpack.i.h.bf16 %v2407_v3  ;;  %v2408_v5 = vunpack.i.l.bf16 %v2407_v3 }
  0xae   : > { %605 = vrot.lane.b32.xlu1 %v2914_v20, %s2781_s14  ;;  %603 = vrot.lane.b32.xlu0 %v2921_v22, %s2781_s14 }
  0xaf   : > { %1391 = vmatprep.subr.bf16.mxu1 %v951_v42  ;;  %v2422_v9 = vpop.permute.xlu1 %2421  ;;  %v466_v10 = vsel %vm465_vm1, %v2408_v5, %v2413_v2  ;;  %v467_v11 = vsel %vm465_vm1, %v2409_v43, %v2414_v1  ;;  %v474_v12 = vsel %vm465_vm1, %v2413_v2, %v2408_v5  ;;  %v475_v33 = vsel %vm465_vm1, %v2414_v1, %v2409_v43 }
  0xb0   : > { %1392 = vmatpush1.bf16.msra.mxu1 %v950_v4  ;;  %v2424_v35 = vunpack.i.h.bf16 %v2422_v9  ;;  %v2423_v37 = vunpack.i.l.bf16 %v2422_v9  ;;  %v2417_v38 = vpop.permute.xlu0 %2416  ;;  %v491_v41 = vmul.f32 %v3119_v0, %v466_v10  ;;  %v493_v44 = vmul.f32 %v3119_v0, %v467_v11 }
  0xb1   : > { %v2419_v45 = vunpack.i.h.bf16 %v2417_v38  ;;  %v2418_v46 = vunpack.i.l.bf16 %v2417_v38  ;;  %v490_v47 = vmul.f32 %v3122_v6, %v474_v12  ;;  %v492_v48 = vmul.f32 %v3122_v6, %v475_v33 }
  0xb2   : > { %808 = vrot.lane.b32.xlu1 %v2902_v17, %s2782_s15  ;;  %806 = vrot.lane.b32.xlu0 %v2907_v18, %s2782_s15  ;;  %v953_v49 = vpack.c.bf16 %v493_v44, %v491_v41  ;;  %v2553_v41 = vld [vmem:[%s3949_s2 + $0x4] ss:$20 sps:$4 sm:$0xff]  }
  0xb3   : > { %v686_v50 = vsel %vm684_vm2, %v2419_v45, %v2424_v35  ;;  %v694_v51 = vsel %vm684_vm2, %v2424_v35, %v2419_v45  ;;  %v685_v52 = vsel %vm684_vm2, %v2418_v46, %v2423_v37  ;;  %v693_v53 = vsel %vm684_vm2, %v2423_v37, %v2418_v46  ;;  %v2432_v54 = vpop.permute.xlu1 %2431  ;;  %1417 = vmatprep.mubr.bf16.mxu1 %v2553_v41 }
  0xb4   : > { %v2434_v55 = vunpack.i.h.bf16 %v2432_v54  ;;  %v2433_v56 = vunpack.i.l.bf16 %v2432_v54  ;;  %v2427_v57 = vpop.permute.xlu0 %2426  ;;  %1393 = vmatprep.subr.bf16.mxu1 %v953_v49  ;;  %v952_v58 = vpack.c.bf16 %v492_v48, %v490_v47  ;;  %v710_v59 = vmul.f32 %v3130_v7, %v693_v53 }
  0xb5   : > { %v2429_v60 = vunpack.i.h.bf16 %v2427_v57  ;;  %v2428_v61 = vunpack.i.l.bf16 %v2427_v57  ;;  %v712_v62 = vmul.f32 %v3130_v7, %v694_v51  ;;  %v709_v63 = vmul.f32 %v3133_v8, %v685_v52 }
  0xb6   : > { %1394 = vmatpush1.bf16.msra.mxu1 %v952_v58  ;;  %824 = vrot.lane.b32.xlu1 %v2914_v20, %s2782_s15  ;;  %v711_v1 = vmul.f32 %v3133_v8, %v686_v50 }
  0xb7   : > { %v469_v2 = vsel %vm465_vm1, %v2429_v60, %v2434_v55  ;;  %v477_v3 = vsel %vm465_vm1, %v2434_v55, %v2429_v60  ;;  %v468_v42 = vsel %vm465_vm1, %v2428_v61, %v2433_v56  ;;  %v476_v4 = vsel %vm465_vm1, %v2433_v56, %v2428_v61  ;;  %822 = vrot.lane.b32.xlu0 %v2921_v22, %s2782_s15  ;;  %v2442_v43 = vpop.permute.xlu1 %2441 }
  0xb8   : > { %v2444_v5 = vunpack.i.h.bf16 %v2442_v43  ;;  %v2443_v9 = vunpack.i.l.bf16 %v2442_v43  ;;  %v2437_v10 = vpop.permute.xlu0 %2436  ;;  %v3175_v11 = vpack.c.bf16 %v712_v62, %v710_v59  ;;  %v3177_v12 = vpack.c.bf16 %v711_v1, %v709_v63 }
  0xb9   : > { %v2439_v33 = vunpack.i.h.bf16 %v2437_v10  ;;  %v2438_v35 = vunpack.i.l.bf16 %v2437_v10  ;;  %v495_v37 = vmul.f32 %v3119_v0, %v468_v42  ;;  %v497_v38 = vmul.f32 %v3119_v0, %v469_v2 }
  0xba   : > { %1506 = vmatprep.subr.bf16.mxu0 %v3175_v11  ;;  %593 = vrot.lane.b32.xlu1 %v2930_v24, %s2781_s14  ;;  %v494_v44 = vmul.f32 %v3122_v6, %v476_v4  ;;  %v496_v45 = vmul.f32 %v3122_v6, %v477_v3 }
  0xbb   : > { %v688_v46 = vsel %vm684_vm2, %v2439_v33, %v2444_v5  ;;  %v696_v47 = vsel %vm684_vm2, %v2444_v5, %v2439_v33  ;;  %v687_v48 = vsel %vm684_vm2, %v2438_v35, %v2443_v9  ;;  %v695_v49 = vsel %vm684_vm2, %v2443_v9, %v2438_v35  ;;  %1507 = vmatpush1.bf16.msra.mxu0 %v3177_v12  ;;  %v444_v50 = vpop.permute.xlu1 %443  ;;  %v2556_v5 = vld [vmem:[%s3949_s2 + $0xc] ss:$20 sps:$4 sm:$0xff]  }
  0xbc   : > { %591 = vrot.lane.b32.xlu0 %v2938_v26, %s2781_s14  ;;  %v442_v51 = vpop.permute.xlu0 %441  ;;  %v955_v52 = vpack.c.bf16 %v497_v38, %v495_v37  ;;  %v954_v53 = vpack.c.bf16 %v496_v45, %v494_v44  ;;  %v714_v54 = vmul.f32 %v3130_v7, %v695_v49  ;;  %v716_v55 = vmul.f32 %v3130_v7, %v696_v47 }
  0xbd   : > { %v713_v56 = vmul.f32 %v3133_v8, %v687_v48  ;;  %v715_v57 = vmul.f32 %v3133_v8, %v688_v46  ;;  %1530 = vmatprep.mubr.bf16.mxu0 %v2556_v5 }
  0xbe   : > { %1395 = vmatprep.subr.bf16.mxu1 %v955_v52  ;;  %609 = vrot.lane.b32.xlu1 %v2957_v29, %s2781_s14  ;;  %v3206_v58 = vpack.c.bf16 %v716_v55, %v714_v54 }
  0xbf   : > { %1396 = vmatpush1.bf16.msra.mxu1 %v954_v53  ;;  %v460_v59 = vpop.permute.xlu1 %459  ;;  %v3208_v60 = vpack.c.bf16 %v715_v57, %v713_v56 }
  0xc0   : > { %607 = vrot.lane.b32.xlu0 %v2960_v30, %s2781_s14  ;;  %v471_v61 = vsel %vm465_vm1, %v444_v50, %v460_v59  ;;  %v479_v62 = vsel %vm465_vm1, %v460_v59, %v444_v50  ;;  %v458_v63 = vpop.permute.xlu0 %457  ;;  %1508 = vmatprep.subr.bf16.mxu0 %v3206_v58 }
  0xc1   : > { %v500_v1 = vmul.f32 %v3122_v6, %v479_v62  ;;  %v501_v2 = vmul.f32 %v3119_v0, %v471_v61  ;;  %v470_v3 = vsel %vm465_vm1, %v442_v51, %v458_v63  ;;  %v478_v42 = vsel %vm465_vm1, %v458_v63, %v442_v51  ;;  %1509 = vmatpush1.bf16.msra.mxu0 %v3208_v60 }
  0xc2   : > { %v498_v4 = vmul.f32 %v3122_v6, %v478_v42  ;;  %v499_v43 = vmul.f32 %v3119_v0, %v470_v3  ;;  %812 = vrot.lane.b32.xlu1 %v2930_v24, %s2782_s15 }
  0xc3   : > { %v663_v9 = vpop.permute.xlu1 %662 }
  0xc4   : > { %810 = vrot.lane.b32.xlu0 %v2938_v26, %s2782_s15  ;;  %v661_v10 = vpop.permute.xlu0 %660  ;;  %v957_v33 = vpack.c.bf16 %v501_v2, %v499_v43  ;;  %v956_v35 = vpack.c.bf16 %v500_v1, %v498_v4 }
  0xc6   : > { %828 = vrot.lane.b32.xlu1 %v2957_v29, %s2782_s15  ;;  %1397 = vmatprep.subr.bf16.mxu1 %v957_v33 }
  0xc7   : > { %1398 = vmatpush1.bf16.msra.mxu1 %v956_v35  ;;  %v679_v37 = vpop.permute.xlu1 %678 }
  0xc8   : > { %826 = vrot.lane.b32.xlu0 %v2960_v30, %s2782_s15  ;;  %v690_v38 = vsel %vm684_vm2, %v663_v9, %v679_v37  ;;  %v698_v41 = vsel %vm684_vm2, %v679_v37, %v663_v9  ;;  %v677_v44 = vpop.permute.xlu0 %676 }
  0xc9   : > { %v719_v45 = vmul.f32 %v3133_v8, %v690_v38  ;;  %v720_v46 = vmul.f32 %v3130_v7, %v698_v41  ;;  %v689_v47 = vsel %vm684_vm2, %v661_v10, %v677_v44  ;;  %v697_v48 = vsel %vm684_vm2, %v677_v44, %v661_v10 }
  0xca   : > { %v717_v49 = vmul.f32 %v3133_v8, %v689_v47  ;;  %v718_v50 = vmul.f32 %v3130_v7, %v697_v48  ;;  %2531 = vrot.lane.b32.xlu1 %v2899_v16, %s2783_s20  ;;  %v776_v10 = vsub.s32 6, %v3021_v34 }
  0xcb   : > { %v448_v51 = vpop.permute.xlu1 %447 }
  0xcc   : > { %2526 = vrot.lane.b32.xlu0 %v2891_v14, %s2783_s20  ;;  %v446_v52 = vpop.permute.xlu0 %445  ;;  %v3253_v53 = vpack.c.bf16 %v720_v46, %v718_v50  ;;  %v3255_v54 = vpack.c.bf16 %v719_v45, %v717_v49  ;;  %v3320_v46 = vrot.slane %v3031_v39, %v776_v10 }
  0xce   : > { %1510 = vmatprep.subr.bf16.mxu0 %v3253_v53  ;;  %2541 = vrot.lane.b32.xlu1 %v2895_v15, %s2783_s20 }
  0xcf   : > { %1511 = vmatpush1.bf16.msra.mxu0 %v3255_v54  ;;  %v464_v55 = vpop.permute.xlu1 %463 }
  0xd0   : > { %2536 = vrot.lane.b32.xlu0 %v2889_v13, %s2783_s20  ;;  %v473_v16 = vsel %vm465_vm1, %v448_v51, %v464_v55  ;;  %v481_v14 = vsel %vm465_vm1, %v464_v55, %v448_v51  ;;  %v462_v56 = vpop.permute.xlu0 %461 }
  0xd1   : > { %v504_v57 = vmul.f32 %v3122_v6, %v481_v14  ;;  %v505_v59 = vmul.f32 %v3119_v0, %v473_v16  ;;  %v472_v15 = vsel %vm465_vm1, %v446_v52, %v462_v56  ;;  %v480_v61 = vsel %vm465_vm1, %v462_v56, %v446_v52 }
  0xd2   : > { %v502_v62 = vmul.f32 %v3122_v6, %v480_v61  ;;  %v503_v13 = vmul.f32 %v3119_v0, %v472_v15  ;;  %881 = vrot.lane.b32.xlu1 %v2902_v17, %s2783_s20  ;;  %v557_v6 = vsub.s32 2, %v3021_v34 }
  0xd3   : > { %v667_v63 = vpop.permute.xlu1 %666 }
  0xd4   : > { %879 = vrot.lane.b32.xlu0 %v2907_v18, %s2783_s20  ;;  %v665_v1 = vpop.permute.xlu0 %664  ;;  %v959_v2 = vpack.c.bf16 %v505_v59, %v503_v13  ;;  %v958_v3 = vpack.c.bf16 %v504_v57, %v502_v62  ;;  %v3301_v35 = vrot.slane %v3036_v40, %v557_v6  ;;  %v3310_v45 = vrot.slane %v3031_v39, %v557_v6 }
  0xd6   : > { %1399 = vmatprep.subr.bf16.mxu1 %v959_v2  ;;  %897 = vrot.lane.b32.xlu1 %v2914_v20, %s2783_s20 }
  0xd7   : > { %1400 = vmatpush1.bf16.msra.mxu1 %v958_v3  ;;  %v683_v42 = vpop.permute.xlu1 %682 }
  0xd8   : > { %895 = vrot.lane.b32.xlu0 %v2921_v22, %s2783_s20  ;;  %v692_v17 = vsel %vm684_vm2, %v667_v63, %v683_v42  ;;  %v700_v18 = vsel %vm684_vm2, %v683_v42, %v667_v63  ;;  %v681_v0 = vpop.permute.xlu0 %680 }
  0xd9   : > { %v723_v4 = vmul.f32 %v3133_v8, %v692_v17  ;;  %v724_v43 = vmul.f32 %v3130_v7, %v700_v18  ;;  %v691_v20 = vsel %vm684_vm2, %v665_v1, %v681_v0  ;;  %v699_v5 = vsel %vm684_vm2, %v681_v0, %v665_v1 }
  0xda   : > { %v721_v9 = vmul.f32 %v3133_v8, %v691_v20  ;;  %v722_v22 = vmul.f32 %v3130_v7, %v699_v5  ;;  %885 = vrot.lane.b32.xlu1 %v2930_v24, %s2783_s20 }
  0xdb   : > { %v2452_v33 = vpop.permute.xlu1 %2451 }
  0xdc   : > { %883 = vrot.lane.b32.xlu0 %v2938_v26, %s2783_s20  ;;  %v2454_v37 = vunpack.i.h.bf16 %v2452_v33  ;;  %v2453_v38 = vunpack.i.l.bf16 %v2452_v33  ;;  %v2447_v41 = vpop.permute.xlu0 %2446  ;;  %v3305_v8 = vpack.c.bf16 %v724_v43, %v722_v22  ;;  %v3307_v7 = vpack.c.bf16 %v723_v4, %v721_v9 }
  0xdd   : > { %v2449_v44 = vunpack.i.h.bf16 %v2447_v41  ;;  %v2448_v24 = vunpack.i.l.bf16 %v2447_v41  ;;  %v3317_v26 = vrot.slane %v3036_v40, %v776_v10 }
  0xde   : > { %1512 = vmatprep.subr.bf16.mxu0 %v3305_v8  ;;  %901 = vrot.lane.b32.xlu1 %v2957_v29, %s2783_s20 }
  0xdf   : > { %v540_v47 = vsel %vm538_vm3, %v2449_v44, %v2454_v37  ;;  %v548_v48 = vsel %vm538_vm3, %v2454_v37, %v2449_v44  ;;  %v539_v49 = vsel %vm538_vm3, %v2448_v24, %v2453_v38  ;;  %v547_v29 = vsel %vm538_vm3, %v2453_v38, %v2448_v24  ;;  %1513 = vmatpush1.bf16.msra.mxu0 %v3307_v7  ;;  %v2462_v50 = vpop.permute.xlu1 %2461 }
  0xe0   : > { %899 = vrot.lane.b32.xlu0 %v2960_v30, %s2783_s20  ;;  %v2464_v51 = vunpack.i.h.bf16 %v2462_v50  ;;  %v2463_v52 = vunpack.i.l.bf16 %v2462_v50  ;;  %v2457_v55 = vpop.permute.xlu0 %2456  ;;  %v564_v16 = vmul.f32 %v3301_v35, %v539_v49  ;;  %v566_v14 = vmul.f32 %v3301_v35, %v540_v47 }
  0xe1   : > { %v2459_v56 = vunpack.i.h.bf16 %v2457_v55  ;;  %v2458_v57 = vunpack.i.l.bf16 %v2457_v55  ;;  %v563_v59 = vmul.f32 %v3310_v45, %v547_v29  ;;  %v565_v15 = vmul.f32 %v3310_v45, %v548_v48 }
  0xe2   : > { %v961_v61 = vpack.c.bf16 %v566_v14, %v564_v16  ;;  %v2784_v37 = vmov 0  }
  0xe3   : > { %v759_v62 = vsel %vm757_vm4, %v2459_v56, %v2464_v51  ;;  %v767_v30 = vsel %vm757_vm4, %v2464_v51, %v2459_v56  ;;  %v758_v13 = vsel %vm757_vm4, %v2458_v57, %v2463_v52  ;;  %v766_v63 = vsel %vm757_vm4, %v2463_v52, %v2458_v57  ;;  %v2472_v1 = vpop.permute.xlu1 %2471  ;;  %2546 = vset.pattern.permute.xlu1 %v2784_v37 }
  0xe4   : > { %v2474_v2 = vunpack.i.h.bf16 %v2472_v1  ;;  %v2473_v3 = vunpack.i.l.bf16 %v2472_v1  ;;  %v2467_v42 = vpop.permute.xlu0 %2466  ;;  %1401 = vmatprep.subr.bf16.mxu1 %v961_v61  ;;  %v960_v6 = vpack.c.bf16 %v565_v15, %v563_v59  ;;  %v783_v17 = vmul.f32 %v3317_v26, %v766_v63  ;;  %2545 = vset.pattern.permute.xlu0 %v2784_v37 }
  0xe5   : > { %v2469_v18 = vunpack.i.h.bf16 %v2467_v42  ;;  %v2468_v0 = vunpack.i.l.bf16 %v2467_v42  ;;  %v785_v4 = vmul.f32 %v3317_v26, %v767_v30  ;;  %v782_v43 = vmul.f32 %v3320_v46, %v758_v13 }
  0xe6   : > { %1402 = vmatpush1.bf16.msra.mxu1 %v960_v6  ;;  %v784_v20 = vmul.f32 %v3320_v46, %v759_v62 }
  0xe7   : > { %v542_v5 = vsel %vm538_vm3, %v2469_v18, %v2474_v2  ;;  %v550_v9 = vsel %vm538_vm3, %v2474_v2, %v2469_v18  ;;  %v541_v22 = vsel %vm538_vm3, %v2468_v0, %v2473_v3  ;;  %v549_v10 = vsel %vm538_vm3, %v2473_v3, %v2468_v0  ;;  %v2482_v33 = vpop.permute.xlu1 %2481 }
  0xe8   : > { %v2484_v38 = vunpack.i.h.bf16 %v2482_v33  ;;  %v2483_v41 = vunpack.i.l.bf16 %v2482_v33  ;;  %v2477_v44 = vpop.permute.xlu0 %2476  ;;  %v3358_v24 = vpack.c.bf16 %v785_v4, %v783_v17  ;;  %v3360_v47 = vpack.c.bf16 %v784_v20, %v782_v43 }
  0xe9   : > { %v2479_v48 = vunpack.i.h.bf16 %v2477_v44  ;;  %v2478_v49 = vunpack.i.l.bf16 %v2477_v44  ;;  %v568_v29 = vmul.f32 %v3301_v35, %v541_v22  ;;  %v570_v50 = vmul.f32 %v3301_v35, %v542_v5 }
  0xea   : > { %1514 = vmatprep.subr.bf16.mxu0 %v3358_v24  ;;  %v567_v51 = vmul.f32 %v3310_v45, %v549_v10  ;;  %v569_v52 = vmul.f32 %v3310_v45, %v550_v9 }
  0xeb   : > { %v761_v55 = vsel %vm757_vm4, %v2479_v48, %v2484_v38  ;;  %v769_v16 = vsel %vm757_vm4, %v2484_v38, %v2479_v48  ;;  %v760_v14 = vsel %vm757_vm4, %v2478_v49, %v2483_v41  ;;  %v768_v56 = vsel %vm757_vm4, %v2483_v41, %v2478_v49  ;;  %1515 = vmatpush1.bf16.msra.mxu0 %v3360_v47  ;;  %v517_v57 = vpop.permute.xlu1 %516 }
  0xec   : > { %v515_v59 = vpop.permute.xlu0 %514  ;;  %v963_v15 = vpack.c.bf16 %v570_v50, %v568_v29  ;;  %v962_v61 = vpack.c.bf16 %v569_v52, %v567_v51  ;;  %v787_v62 = vmul.f32 %v3317_v26, %v768_v56  ;;  %v789_v30 = vmul.f32 %v3317_v26, %v769_v16 }
  0xed   : > { %v786_v13 = vmul.f32 %v3320_v46, %v760_v14  ;;  %v788_v63 = vmul.f32 %v3320_v46, %v761_v55 }
  0xee   : > { %1403 = vmatprep.subr.bf16.mxu1 %v963_v15  ;;  %v3381_v1 = vpack.c.bf16 %v789_v30, %v787_v62 }
  0xef   : > { %1404 = vmatpush1.bf16.msra.mxu1 %v962_v61  ;;  %v533_v2 = vpop.permute.xlu1 %532  ;;  %v3383_v3 = vpack.c.bf16 %v788_v63, %v786_v13 }
  0xf0   : > { %v544_v42 = vsel %vm538_vm3, %v517_v57, %v533_v2  ;;  %v552_v6 = vsel %vm538_vm3, %v533_v2, %v517_v57  ;;  %v531_v17 = vpop.permute.xlu0 %530  ;;  %1516 = vmatprep.subr.bf16.mxu0 %v3381_v1 }
  0xf1   : > { %v573_v18 = vmul.f32 %v3310_v45, %v552_v6  ;;  %v574_v0 = vmul.f32 %v3301_v35, %v544_v42  ;;  %v543_v4 = vsel %vm538_vm3, %v515_v59, %v531_v17  ;;  %v551_v43 = vsel %vm538_vm3, %v531_v17, %v515_v59  ;;  %1517 = vmatpush1.bf16.msra.mxu0 %v3383_v3 }
  0xf2   : > { %v571_v20 = vmul.f32 %v3310_v45, %v551_v43  ;;  %v572_v5 = vmul.f32 %v3301_v35, %v543_v4 }
  0xf3   : > { %v736_v9 = vpop.permute.xlu1 %735 }
  0xf4   : > { %v734_v22 = vpop.permute.xlu0 %733  ;;  %v965_v10 = vpack.c.bf16 %v574_v0, %v572_v5  ;;  %v964_v33 = vpack.c.bf16 %v573_v18, %v571_v20  ;;  %v630_v20 = vsub.s32 3, %v3021_v34 }
  0xf6   : > { %1405 = vmatprep.subr.bf16.mxu1 %v965_v10 }
  0xf7   : > { %1406 = vmatpush1.bf16.msra.mxu1 %v964_v33  ;;  %v752_v38 = vpop.permute.xlu1 %751 }
  0xf8   : > { %v763_v41 = vsel %vm757_vm4, %v736_v9, %v752_v38  ;;  %v771_v44 = vsel %vm757_vm4, %v752_v38, %v736_v9  ;;  %v750_v48 = vpop.permute.xlu0 %749 }
  0xf9   : > { %v792_v49 = vmul.f32 %v3320_v46, %v763_v41  ;;  %v793_v29 = vmul.f32 %v3317_v26, %v771_v44  ;;  %v762_v50 = vsel %vm757_vm4, %v734_v22, %v750_v48  ;;  %v770_v51 = vsel %vm757_vm4, %v750_v48, %v734_v22 }
  0xfa   : > { %v790_v52 = vmul.f32 %v3320_v46, %v762_v50  ;;  %v791_v55 = vmul.f32 %v3317_v26, %v770_v51  ;;  %v849_v44 = vsub.s32 7, %v3021_v34 }
  0xfb   : > { %v521_v16 = vpop.permute.xlu1 %520 }
  0xfc   : > { %v519_v14 = vpop.permute.xlu0 %518  ;;  %v3411_v56 = vpack.c.bf16 %v793_v29, %v791_v55  ;;  %v3413_v57 = vpack.c.bf16 %v792_v49, %v790_v52  ;;  %v3445_v49 = vrot.slane %v3036_v40, %v630_v20  ;;  %v3457_v34 = vrot.slane %v3036_v40, %v849_v44 }
  0xfe   : > { %1518 = vmatprep.subr.bf16.mxu0 %v3411_v56 }
  0xff   : > { %1519 = vmatpush1.bf16.msra.mxu0 %v3413_v57  ;;  %v537_v59 = vpop.permute.xlu1 %536 }
 0x100   : > { %v546_v15 = vsel %vm538_vm3, %v521_v16, %v537_v59  ;;  %v554_v61 = vsel %vm538_vm3, %v537_v59, %v521_v16  ;;  %v535_v62 = vpop.permute.xlu0 %534 }
 0x101   : > { %v577_v30 = vmul.f32 %v3310_v45, %v554_v61  ;;  %v578_v13 = vmul.f32 %v3301_v35, %v546_v15  ;;  %v545_v63 = vsel %vm538_vm3, %v519_v14, %v535_v62  ;;  %v553_v2 = vsel %vm538_vm3, %v535_v62, %v519_v14 }
 0x102   : > { %v575_v42 = vmul.f32 %v3310_v45, %v553_v2  ;;  %v576_v6 = vmul.f32 %v3301_v35, %v545_v63 }
 0x103   : > { %v740_v17 = vpop.permute.xlu1 %739 }
 0x104   : > { %v738_v18 = vpop.permute.xlu0 %737  ;;  %v967_v0 = vpack.c.bf16 %v578_v13, %v576_v6  ;;  %v966_v4 = vpack.c.bf16 %v577_v30, %v575_v42 }
 0x106   : > { %1407 = vmatprep.subr.bf16.mxu1 %v967_v0 }
 0x107   : > { %1408 = vmatpush1.bf16.msra.mxu1 %v966_v4  ;;  %v756_v43 = vpop.permute.xlu1 %755 }
 0x108   : > { %v765_v5 = vsel %vm757_vm4, %v740_v17, %v756_v43  ;;  %v773_v9 = vsel %vm757_vm4, %v756_v43, %v740_v17  ;;  %v754_v22 = vpop.permute.xlu0 %753 }
 0x109   : > { %v796_v45 = vmul.f32 %v3320_v46, %v765_v5  ;;  %v797_v35 = vmul.f32 %v3317_v26, %v773_v9  ;;  %v764_v10 = vsel %vm757_vm4, %v738_v18, %v754_v22  ;;  %v772_v33 = vsel %vm757_vm4, %v754_v22, %v738_v18 }
 0x10a   : > { %v794_v38 = vmul.f32 %v3320_v46, %v764_v10  ;;  %v795_v41 = vmul.f32 %v3317_v26, %v772_v33  ;;  %v3452_v46 = vrot.slane %v3031_v39, %v630_v20  ;;  %v3460_v26 = vrot.slane %v3031_v39, %v849_v44 }
 0x10b   : > { %v2492_v48 = vpop.permute.xlu1 %2491 }
 0x10c   : > { %v2494_v29 = vunpack.i.h.bf16 %v2492_v48  ;;  %v2493_v50 = vunpack.i.l.bf16 %v2492_v48  ;;  %v2487_v51 = vpop.permute.xlu0 %2486  ;;  %v3447_v52 = vpack.c.bf16 %v797_v35, %v795_v41  ;;  %v3449_v55 = vpack.c.bf16 %v796_v45, %v794_v38 }
 0x10d   : > { %v2489_v16 = vunpack.i.h.bf16 %v2487_v51  ;;  %v2488_v14 = vunpack.i.l.bf16 %v2487_v51 }
 0x10e   : > { %1520 = vmatprep.subr.bf16.mxu0 %v3447_v52 }
 0x10f   : > { %v613_v59 = vsel %vm611_vm5, %v2489_v16, %v2494_v29  ;;  %v621_v15 = vsel %vm611_vm5, %v2494_v29, %v2489_v16  ;;  %v612_v61 = vsel %vm611_vm5, %v2488_v14, %v2493_v50  ;;  %v620_v62 = vsel %vm611_vm5, %v2493_v50, %v2488_v14  ;;  %1521 = vmatpush1.bf16.msra.mxu0 %v3449_v55  ;;  %v2502_v30 = vpop.permute.xlu1 %2501  ;;  %v1065_v29 = vld [vmem:[%s3950_s3 + $0x8] sm:$0xff]  ;;  %v1064_v50 = vld [vmem:[%s3950_s3] sm:$0xff] }
 0x110   : > { %v2504_v40 = vunpack.i.h.bf16 %v2502_v30  ;;  %v2503_v13 = vunpack.i.l.bf16 %v2502_v30  ;;  %v2497_v63 = vpop.permute.xlu0 %2496  ;;  %v637_v39 = vmul.f32 %v3445_v49, %v612_v61  ;;  %v639_v2 = vmul.f32 %v3445_v49, %v613_v59  ;;  %1087 = vperm.xlu1 %2546, %v1065_v29   ;;  %1082 = vperm.xlu0 %2545, %v1064_v50   ;;  %v1068_v50 = vld [vmem:[%s3950_s3 + $0x20] sm:$0xff] }
 0x111   : > { %v2499_v42 = vunpack.i.h.bf16 %v2497_v63  ;;  %v2498_v6 = vunpack.i.l.bf16 %v2497_v63  ;;  %v636_v17 = vmul.f32 %v3452_v46, %v620_v62  ;;  %v638_v18 = vmul.f32 %v3452_v46, %v621_v15 }
 0x112   : > { %v969_v0 = vpack.c.bf16 %v639_v2, %v637_v39 }
 0x113   : > { %v832_v4 = vsel %vm830_vm6, %v2499_v42, %v2504_v40  ;;  %v840_v43 = vsel %vm830_vm6, %v2504_v40, %v2499_v42  ;;  %v831_v20 = vsel %vm830_vm6, %v2498_v6, %v2503_v13  ;;  %v839_v5 = vsel %vm830_vm6, %v2503_v13, %v2498_v6  ;;  %v2512_v9 = vpop.permute.xlu1 %2511 }
 0x114   : > { %v2507_v22 = vpop.permute.xlu0 %2506  ;;  %1409 = vmatprep.subr.bf16.mxu1 %v969_v0  ;;  %v968_v45 = vpack.c.bf16 %v638_v18, %v636_v17  ;;  %v856_v35 = vmul.f32 %v3457_v34, %v839_v5  ;;  %v858_v10 = vmul.f32 %v3457_v34, %v840_v43  ;;  %v855_v33 = vmul.f32 %v3460_v26, %v831_v20 }
 0x115   : > { %v2514_v38 = vunpack.i.h.bf16 %v2512_v9  ;;  %v2513_v41 = vunpack.i.l.bf16 %v2512_v9  ;;  %v2509_v44 = vunpack.i.h.bf16 %v2507_v22  ;;  %v2508_v48 = vunpack.i.l.bf16 %v2507_v22 }
 0x116   : > { %1410 = vmatpush1.bf16.msra.mxu1 %v968_v45  ;;  %v3492_v51 = vpack.c.bf16 %v858_v10, %v856_v35  ;;  %v857_v16 = vmul.f32 %v3460_v26, %v832_v4 }
 0x117   : > { %v615_v14 = vsel %vm611_vm5, %v2509_v44, %v2514_v38  ;;  %v623_v59 = vsel %vm611_vm5, %v2514_v38, %v2509_v44  ;;  %v614_v15 = vsel %vm611_vm5, %v2508_v48, %v2513_v41  ;;  %v622_v61 = vsel %vm611_vm5, %v2513_v41, %v2508_v48  ;;  %v2522_v62 = vpop.permute.xlu1 %2521  ;;  %v1066_v41 = vld [vmem:[%s3950_s3 + $0x10] sm:$0xff]  ;;  %v1067_v44 = vld [vmem:[%s3950_s3 + $0x18] sm:$0xff] }
 0x118   : > { %v2517_v30 = vpop.permute.xlu0 %2516  ;;  %1522 = vmatprep.subr.bf16.mxu0 %v3492_v51  ;;  %v3504_v40 = vpack.c.bf16 %v857_v16, %v855_v33  ;;  %v641_v13 = vmul.f32 %v3445_v49, %v614_v15  ;;  %v643_v63 = vmul.f32 %v3445_v49, %v615_v14  ;;  %v640_v39 = vmul.f32 %v3452_v46, %v622_v61 }
 0x119   : > { %v2524_v2 = vunpack.i.h.bf16 %v2522_v62  ;;  %v2523_v42 = vunpack.i.l.bf16 %v2522_v62  ;;  %v2519_v6 = vunpack.i.h.bf16 %v2517_v30  ;;  %v2518_v17 = vunpack.i.l.bf16 %v2517_v30  ;;  %1092 = vperm.xlu1 %2546, %v1066_v41   ;;  %1097 = vperm.xlu0 %2545, %v1067_v44  }
 0x11a   : > { %1523 = vmatpush1.bf16.msra.mxu0 %v3504_v40  ;;  %v971_v18 = vpack.c.bf16 %v643_v63, %v641_v13  ;;  %v642_v0 = vmul.f32 %v3452_v46, %v623_v59  ;;  %v1069_v59 = vld [vmem:[%s3950_s3 + $0x28] sm:$0xff] }
 0x11b   : > { %v834_v4 = vsel %vm830_vm6, %v2519_v6, %v2524_v2  ;;  %v842_v43 = vsel %vm830_vm6, %v2524_v2, %v2519_v6  ;;  %v833_v20 = vsel %vm830_vm6, %v2518_v17, %v2523_v42  ;;  %v841_v5 = vsel %vm830_vm6, %v2523_v42, %v2518_v17  ;;  %v1070_v42 = vld [vmem:[%s3950_s3 + $0x30] sm:$0xff] }
 0x11c   : > { %v590_v9 = vpop.permute.xlu1 %589  ;;  %v588_v22 = vpop.permute.xlu0 %587  ;;  %1411 = vmatprep.subr.bf16.mxu1 %v971_v18  ;;  %v970_v45 = vpack.c.bf16 %v642_v0, %v640_v39  ;;  %v860_v35 = vmul.f32 %v3457_v34, %v841_v5  ;;  %v862_v10 = vmul.f32 %v3457_v34, %v842_v43  ;;  %v859_v33 = vmul.f32 %v3460_v26, %v833_v20  ;;  %v1072_v43 = vld [vmem:[%s3950_s3 + $0x40] sm:$0xff]  ;;  %v1073_v5 = vld [vmem:[%s3950_s3 + $0x48] sm:$0xff] }
 0x11d   : > { %v861_v38 = vmul.f32 %v3460_v26, %v834_v4  ;;  %1102 = vperm.xlu1 %2546, %v1068_v50   ;;  %1107 = vperm.xlu0 %2545, %v1069_v59   ;;  %v1071_v4 = vld [vmem:[%s3950_s3 + $0x38] sm:$0xff]  ;;  %v1074_v50 = vld [vmem:[%s3950_s3 + $0x50] sm:$0xff] }
 0x11e   : > { %1412 = vmatpush1.bf16.msra.mxu1 %v970_v45  ;;  %v3529_v48 = vpack.c.bf16 %v862_v10, %v860_v35 }
 0x11f   : > { %v3531_v29 = vpack.c.bf16 %v861_v38, %v859_v33 }
 0x120   : > { %v606_v16 = vpop.permute.xlu1 %605  ;;  %v604_v14 = vpop.permute.xlu0 %603  ;;  %1524 = vmatprep.subr.bf16.mxu0 %v3529_v48 }
 0x121   : > { %v617_v15 = vsel %vm611_vm5, %v590_v9, %v606_v16  ;;  %v625_v61 = vsel %vm611_vm5, %v606_v16, %v590_v9  ;;  %v616_v62 = vsel %vm611_vm5, %v588_v22, %v604_v14  ;;  %v624_v30 = vsel %vm611_vm5, %v604_v14, %v588_v22  ;;  %1525 = vmatpush1.bf16.msra.mxu0 %v3531_v29  ;;  %v1075_v14 = vld [vmem:[%s3950_s3 + $0x58] sm:$0xff] }
 0x122   : > { %v646_v13 = vmul.f32 %v3452_v46, %v625_v61  ;;  %v647_v63 = vmul.f32 %v3445_v49, %v617_v15  ;;  %v644_v39 = vmul.f32 %v3452_v46, %v624_v30  ;;  %v645_v2 = vmul.f32 %v3445_v49, %v616_v62  ;;  %1112 = vperm.xlu1 %2546, %v1070_v42   ;;  %v1076_v62 = vld [vmem:[%s3950_s3 + $0x60] sm:$0xff] }
 0x123   : > { %1117 = vperm.xlu0 %2545, %v1071_v4  }
 0x124   : > { %v809_v6 = vpop.permute.xlu1 %808  ;;  %v807_v17 = vpop.permute.xlu0 %806  ;;  %v973_v18 = vpack.c.bf16 %v647_v63, %v645_v2  ;;  %v972_v0 = vpack.c.bf16 %v646_v13, %v644_v39  ;;  %v1077_v13 = vld [vmem:[%s3950_s3 + $0x68] sm:$0xff] }
 0x126   : > { %1413 = vmatprep.subr.bf16.mxu1 %v973_v18  ;;  %1122 = vperm.xlu1 %2546, %v1072_v43  }
 0x127   : > { %1414 = vmatpush1.bf16.msra.mxu1 %v972_v0  ;;  %1127 = vperm.xlu0 %2545, %v1073_v5   ;;  %v1078_v0 = vld [vmem:[%s3950_s3 + $0x70] sm:$0xff]  ;;  %v1079_v5 = vld [vmem:[%s3950_s3 + $0x78] sm:$0xff] }
 0x128   : > { %v825_v20 = vpop.permute.xlu1 %824 }
 0x129   : > { %v836_v9 = vsel %vm830_vm6, %v809_v6, %v825_v20  ;;  %v844_v22 = vsel %vm830_vm6, %v825_v20, %v809_v6  ;;  %v823_v45 = vpop.permute.xlu0 %822 }
 0x12a   : > { %v865_v35 = vmul.f32 %v3460_v26, %v836_v9  ;;  %v866_v10 = vmul.f32 %v3457_v34, %v844_v22  ;;  %v835_v33 = vsel %vm830_vm6, %v807_v17, %v823_v45  ;;  %v843_v38 = vsel %vm830_vm6, %v823_v45, %v807_v17  ;;  %1132 = vperm.xlu1 %2546, %v1074_v50  }
 0x12b   : > { %v863_v41 = vmul.f32 %v3460_v26, %v835_v33  ;;  %v864_v44 = vmul.f32 %v3457_v34, %v843_v38  ;;  %1137 = vperm.xlu0 %2545, %v1075_v14   ;;  %v2557_v33 = vld [vmem:[%s3949_s2 + $0x2c] ss:$20 sps:$4 sm:$0xff]  }
 0x12c   : > { %v594_v16 = vpop.permute.xlu1 %593 }
 0x12d   : > { %v3583_v59 = vpack.c.bf16 %v866_v10, %v864_v44  ;;  %v3585_v15 = vpack.c.bf16 %v865_v35, %v863_v41  ;;  %v2551_v10 = vld [vmem:[%s3949_s2] ss:$20 sps:$4 sm:$0xff]  }
 0x12e   : > { %v592_v61 = vpop.permute.xlu0 %591  ;;  %1142 = vperm.xlu1 %2546, %v1076_v62  }
 0x12f   : > { %1526 = vmatprep.subr.bf16.mxu0 %v3583_v59  ;;  %1147 = vperm.xlu0 %2545, %v1077_v13  }
 0x130   : > { %1527 = vmatpush1.bf16.msra.mxu0 %v3585_v15  ;;  %v610_v30 = vpop.permute.xlu1 %609 }
 0x131   : > { %v619_v63 = vsel %vm611_vm5, %v594_v16, %v610_v30  ;;  %v627_v39 = vsel %vm611_vm5, %v610_v30, %v594_v16 }
 0x132   : > { %v650_v2 = vmul.f32 %v3452_v46, %v627_v39  ;;  %v651_v42 = vmul.f32 %v3445_v49, %v619_v63  ;;  %v608_v6 = vpop.permute.xlu0 %607  ;;  %1152 = vperm.xlu1 %2546, %v1078_v0  }
 0x133   : > { %v618_v17 = vsel %vm611_vm5, %v592_v61, %v608_v6  ;;  %v626_v18 = vsel %vm611_vm5, %v608_v6, %v592_v61  ;;  %1157 = vperm.xlu0 %2545, %v1079_v5  }
 0x134   : > { %v648_v4 = vmul.f32 %v3452_v46, %v626_v18  ;;  %v649_v43 = vmul.f32 %v3445_v49, %v618_v17  ;;  %v813_v20 = vpop.permute.xlu1 %812 }
 0x136   : > { %v811_v9 = vpop.permute.xlu0 %810  ;;  %v975_v22 = vpack.c.bf16 %v651_v42, %v649_v43  ;;  %v974_v45 = vpack.c.bf16 %v650_v2, %v648_v4  ;;  %v2559_v42 = vld [vmem:[%s3949_s2 + $0x28] ss:$20 sps:$4 sm:$0xff]  }
 0x137   : > { %v2554_v4 = vld [vmem:[%s3949_s2 + $0x8] ss:$20 sps:$4 sm:$0xff]  }
 0x138   : > { %1415 = vmatprep.subr.bf16.mxu1 %v975_v22  ;;  %v829_v35 = vpop.permute.xlu1 %828 }
 0x139   : > { %1416 = vmatpush1.bf16.msra.mxu1 %v974_v45  ;;  %v838_v49 = vsel %vm830_vm6, %v813_v20, %v829_v35  ;;  %v846_v46 = vsel %vm830_vm6, %v829_v35, %v813_v20  ;;  %v2560_v45 = vld [vmem:[%s3949_s2 + $0x54] ss:$20 sps:$4 sm:$0xff]  }
 0x13a   : > { %v869_v38 = vmul.f32 %v3460_v26, %v838_v49  ;;  %v870_v41 = vmul.f32 %v3457_v34, %v846_v46  ;;  %v827_v44 = vpop.permute.xlu0 %826  ;;  %2207 = vmatprep.subr.bf16.mxu1 %v2911_v19  ;;  %v2562_v46 = vld [vmem:[%s3949_s2 + $0x34] ss:$20 sps:$4 sm:$0xff]  }
 0x13b   : > { %v837_v50 = vsel %vm830_vm6, %v811_v9, %v827_v44  ;;  %v845_v16 = vsel %vm830_vm6, %v827_v44, %v811_v9 }
 0x13c   : > { %v867_v14 = vmul.f32 %v3460_v26, %v837_v50  ;;  %v868_v61 = vmul.f32 %v3457_v34, %v845_v16  ;;  %1418 = vmatmul.mubr.bf16.vlgmr.msra.gmra.mrb[0].mxu1 %v2551_v10  ;;  %v2532_v62 = vpop.permute.xlu1 %2531  ;;  %v3642_v34 = vld [vmem:[%s3948_s1 + $0x10] ss:$0 sm:$0xff] }
 0x13d   : > { %2223 = vmatpush1.bf16.msra.mxu1 %v2916_v21  ;;  %v2534_v30 = vunpack.i.h.bf16 %v2532_v62  ;;  %v2533_v13 = vunpack.i.l.bf16 %v2532_v62  ;;  %1427 = vmatprep.mubr.bf16.mxu1 %v2557_v33 }
 0x13e   : > { %v2527_v19 = vpop.permute.xlu0 %2526  ;;  %2208 = vmatprep.subr.bf16.mxu1 %v2927_v23  ;;  %v3635_v63 = vpack.c.bf16 %v870_v41, %v868_v61  ;;  %v3637_v39 = vpack.c.bf16 %v869_v38, %v867_v14  ;;  %v3651_v23 = vld [vmem:[%s3948_s1 + $0x18] ss:$0 sm:$0xff] }
 0x13f   : > { %v2529_v26 = vunpack.i.h.bf16 %v2527_v19  ;;  %v2528_v2 = vunpack.i.l.bf16 %v2527_v19 }
 0x140   : > { %1528 = vmatprep.subr.bf16.mxu0 %v3635_v63  ;;  %v2542_v21 = vpop.permute.xlu1 %2541 }
 0x141   : > { %v905_v6 = vsel %vm903_vm7, %v2529_v26, %v2534_v30  ;;  %v913_v17 = vsel %vm903_vm7, %v2534_v30, %v2529_v26  ;;  %v904_v18 = vsel %vm903_vm7, %v2528_v2, %v2533_v13  ;;  %v912_v0 = vsel %vm903_vm7, %v2533_v13, %v2528_v2  ;;  %2224 = vmatpush1.bf16.msra.mxu1 %v2933_v25  ;;  %v2564_v26 = vld [vmem:[%s3949_s2 + $0x50] ss:$20 sps:$4 sm:$0xff]  }
 0x142   : > { %v930_v43 = vmul.f32 %v3642_v34, %v905_v6  ;;  %v928_v20 = vmul.f32 %v3642_v34, %v904_v18  ;;  %1529 = vmatpush1.bf16.msra.mxu0 %v3637_v39  ;;  %v2544_v5 = vunpack.i.h.bf16 %v2542_v21  ;;  %v2543_v9 = vunpack.i.l.bf16 %v2542_v21  ;;  %v2537_v22 = vpop.permute.xlu0 %2536  ;;  %2209 = vmatprep.subr.bf16.mxu1 %v2945_v27 }
 0x143   : > { %v2539_v25 = vunpack.i.h.bf16 %v2537_v22  ;;  %v2538_v35 = vunpack.i.l.bf16 %v2537_v22  ;;  %v929_v10 = vmul.f32 %v3651_v23, %v912_v0  ;;  %v931_v49 = vmul.f32 %v3651_v23, %v913_v17 }
 0x144   : > { %1428 = vmatmul.mubr.bf16.gmra.mrb[4].mxu1 %v2559_v42  ;;  %v882_v33 = vpop.permute.xlu1 %881  ;;  %v1008_v38 = vpack.c.bf16 %v930_v43, %v928_v20  ;;  %v2566_v42 = vld [vmem:[%s3949_s2 + $0x7c] ss:$20 sps:$4 sm:$0xff]  }
 0x145   : > { %v907_v27 = vsel %vm903_vm7, %v2539_v25, %v2544_v5  ;;  %v915_v41 = vsel %vm903_vm7, %v2544_v5, %v2539_v25  ;;  %v906_v44 = vsel %vm903_vm7, %v2538_v35, %v2543_v9  ;;  %v914_v50 = vsel %vm903_vm7, %v2543_v9, %v2538_v35  ;;  %1531 = vmatmul.mubr.bf16.vlgmr.msra.gmra.mrb[0].mxu0 %v2554_v4  ;;  %v2568_v20 = vld [vmem:[%s3949_s2 + $0x5c] ss:$20 sps:$4 sm:$0xff]   ;;  %v2570_v35 = vld [vmem:[%s3949_s2 + $0x78] ss:$20 sps:$4 sm:$0xff]  }
 0x146   : > { %v934_v16 = vmul.f32 %v3642_v34, %v907_v27  ;;  %v932_v14 = vmul.f32 %v3642_v34, %v906_v44  ;;  %2225 = vmatpush1.bf16.msra.mxu1 %v2949_v28  ;;  %v1009_v61 = vpack.c.bf16 %v931_v49, %v929_v10  ;;  %v880_v62 = vpop.permute.xlu0 %879  ;;  %1437 = vmatprep.mubr.bf16.mxu1 %v2560_v45  ;;  %v2574_v27 = vld [vmem:[%s3949_s2 + $0x84] ss:$20 sps:$4 sm:$0xff]  }
 0x147   : > { %2210 = vmatprep.subr.bf16.mxu1 %v2965_v31  ;;  %1540 = vmatprep.mubr.bf16.mxu0 %v2562_v46  ;;  %v933_v30 = vmul.f32 %v3651_v23, %v914_v50  ;;  %v935_v13 = vmul.f32 %v3651_v23, %v915_v41  ;;  %v2565_v31 = vld [vmem:[%s3949_s2 + $0x30] ss:$20 sps:$4 sm:$0xff]  }
 0x148   : > { %1611 = vmatprep.subr.bf16.mxu0 %v1009_v61  ;;  %v898_v19 = vpop.permute.xlu1 %897  ;;  %v1010_v0 = vpack.c.bf16 %v934_v16, %v932_v14  ;;  %v2606_v61 = vld [vmem:[%s3949_s2 + $0x128] ss:$20 sps:$4 sm:$0xff]  }
 0x149   : > { %1612 = vmatpush1.bf16.msra.mxu0 %v1008_v38  ;;  %v909_v28 = vsel %vm903_vm7, %v882_v33, %v898_v19  ;;  %v917_v2 = vsel %vm903_vm7, %v898_v19, %v882_v33  ;;  %v1011_v21 = vpack.c.bf16 %v935_v13, %v933_v30 }
 0x14a   : > { %2226 = vmatpush1.bf16.msra.mxu1 %v2972_v32  ;;  %v938_v6 = vmul.f32 %v3642_v34, %v909_v28  ;;  %v939_v17 = vmul.f32 %v3651_v23, %v917_v2  ;;  %v896_v18 = vpop.permute.xlu0 %895 }
 0x14b   : > { %2211 = vmatprep.subr.bf16.mxu1 %v3175_v11  ;;  %v908_v4 = vsel %vm903_vm7, %v880_v62, %v896_v18  ;;  %v916_v43 = vsel %vm903_vm7, %v896_v18, %v880_v62  ;;  %1613 = vmatprep.subr.bf16.mxu0 %v1011_v21 }
 0x14c   : > { %v936_v32 = vmul.f32 %v3642_v34, %v908_v4  ;;  %v937_v5 = vmul.f32 %v3651_v23, %v916_v43  ;;  %1438 = vmatmul.mubr.bf16.gmra.mrb[8].mxu1 %v2564_v26  ;;  %v886_v9 = vpop.permute.xlu1 %885 }
 0x14d   : > { %1541 = vmatmul.mubr.bf16.gmra.mrb[4].mxu0 %v2565_v31  ;;  %1447 = vmatprep.mubr.bf16.mxu1 %v2566_v42 }
 0x14e   : > { %v1012_v11 = vpack.c.bf16 %v938_v6, %v936_v32  ;;  %2227 = vmatpush1.bf16.msra.mxu1 %v3177_v12  ;;  %1614 = vmatpush1.bf16.msra.mxu0 %v1010_v0  ;;  %v884_v22 = vpop.permute.xlu0 %883  ;;  %v1013_v45 = vpack.c.bf16 %v939_v17, %v937_v5  ;;  %v2571_v12 = vld [vmem:[%s3949_s2 + $0x58] ss:$20 sps:$4 sm:$0xff]  }
 0x14f   : > { %2212 = vmatprep.subr.bf16.mxu1 %v3206_v58  ;;  %1550 = vmatprep.mubr.bf16.mxu0 %v2568_v20  ;;  %v2572_v58 = vld [vmem:[%s3949_s2 + $0xa4] ss:$20 sps:$4 sm:$0xff]  }
 0x150   : > { %1615 = vmatprep.subr.bf16.mxu0 %v1013_v45  ;;  %v902_v25 = vpop.permute.xlu1 %901 }
 0x151   : > { %v911_v10 = vsel %vm903_vm7, %v886_v9, %v902_v25  ;;  %v919_v49 = vsel %vm903_vm7, %v902_v25, %v886_v9 }
 0x152   : > { %2228 = vmatpush1.bf16.msra.mxu1 %v3208_v60  ;;  %1616 = vmatpush1.bf16.msra.mxu0 %v1012_v11  ;;  %v942_v46 = vmul.f32 %v3642_v34, %v911_v10  ;;  %v943_v33 = vmul.f32 %v3651_v23, %v919_v49  ;;  %v900_v38 = vpop.permute.xlu0 %899 }
 0x153   : > { %2213 = vmatprep.subr.bf16.mxu1 %v3253_v53  ;;  %v910_v41 = vsel %vm903_vm7, %v884_v22, %v900_v38  ;;  %v918_v44 = vsel %vm903_vm7, %v900_v38, %v884_v22  ;;  %v2577_v53 = vld [vmem:[%s3949_s2 + $0x80] ss:$20 sps:$4 sm:$0xff]  }
 0x154   : > { %v940_v60 = vmul.f32 %v3642_v34, %v910_v41  ;;  %v941_v50 = vmul.f32 %v3651_v23, %v918_v44  ;;  %1448 = vmatmul.mubr.bf16.gmra.mrb[12].mxu1 %v2570_v35  ;;  %v2578_v34 = vld [vmem:[%s3949_s2 + $0xcc] ss:$20 sps:$4 sm:$0xff]  }
 0x155   : > { %1551 = vmatmul.mubr.bf16.gmra.mrb[8].mxu0 %v2571_v12  ;;  %1457 = vmatprep.mubr.bf16.mxu1 %v2572_v58  ;;  %v2605_v23 = vld [vmem:[%s3949_s2 + $0x100] ss:$20 sps:$4 sm:$0xff]  }
 0x156   : > { %v1014_v16 = vpack.c.bf16 %v942_v46, %v940_v60  ;;  %2229 = vmatpush1.bf16.msra.mxu1 %v3255_v54  ;;  %v1015_v14 = vpack.c.bf16 %v943_v33, %v941_v50  ;;  %1560 = vmatprep.mubr.bf16.mxu0 %v2574_v27  ;;  %v2580_v54 = vld [vmem:[%s3949_s2 + $0xc8] ss:$20 sps:$4 sm:$0xff]  }
 0x157   : > { %2214 = vmatprep.subr.bf16.mxu1 %v3305_v8  ;;  %v2581_v8 = vld [vmem:[%s3949_s2 + $0x10] ss:$20 sps:$4 sm:$0xff]  }
 0x158   : > { %1617 = vmatprep.subr.bf16.mxu0 %v1015_v14 }
 0x159   : > { %1618 = vmatpush1.bf16.msra.mxu0 %v1014_v16 }
 0x15a   : > { %2230 = vmatpush1.bf16.msra.mxu1 %v3307_v7  ;;  %v2582_v7 = vld [vmem:[%s3949_s2 + $0xf4] ss:$20 sps:$4 sm:$0xff]  }
 0x15b   : > { %2215 = vmatprep.subr.bf16.mxu1 %v3358_v24  ;;  %v2584_v24 = vld [vmem:[%s3949_s2 + $0xf0] ss:$20 sps:$4 sm:$0xff]  }
 0x15c   : > { %1458 = vmatmul.mubr.bf16.gmra.mrb[16].mxu1 %v2576_v36 }
 0x15d   : > { %1561 = vmatmul.mubr.bf16.gmra.mrb[12].mxu0 %v2577_v53  ;;  %1467 = vmatprep.mubr.bf16.mxu1 %v2578_v34 }
 0x15e   : > { %2231 = vmatpush1.bf16.msra.mxu1 %v3360_v47  ;;  %1643 = vmatprep.mubr.bf16.mxu0 %v2784_v37  ;;  %v2585_v47 = vld [vmem:[%s3949_s2 + $0x38] ss:$20 sps:$4 sm:$0xff]  }
 0x15f   : > { %2216 = vmatprep.subr.bf16.mxu1 %v3381_v1  ;;  %v2586_v1 = vld [vmem:[%s3949_s2 + $0x11c] ss:$20 sps:$4 sm:$0xff]  }
 0x162   : > { %2232 = vmatpush1.bf16.msra.mxu1 %v3383_v3  ;;  %v2588_v3 = vld [vmem:[%s3949_s2 + $0x118] ss:$20 sps:$4 sm:$0xff]  }
 0x163   : > { %2217 = vmatprep.subr.bf16.mxu1 %v3411_v56  ;;  %v2589_v56 = vld [vmem:[%s3949_s2 + $0x60] ss:$20 sps:$4 sm:$0xff]  }
 0x164   : > { %1468 = vmatmul.mubr.bf16.gmra.mrb[20].mxu1 %v2580_v54 }
 0x165   : > { %2171 = vmatmul.mubr.msk.bf16.vlgmr.msra.gmra.mrb[0].mxu0 %vm1360_vm8, %v2581_v8  ;;  %1477 = vmatprep.mubr.bf16.mxu1 %v2582_v7 }
 0x166   : > { %2233 = vmatpush1.bf16.msra.mxu1 %v3413_v57  ;;  %1653 = vmatprep.mubr.bf16.mxu0 %v2784_v37  ;;  %v2592_v57 = vld [vmem:[%s3949_s2 + $0xac] ss:$20 sps:$4 sm:$0xff]  }
 0x167   : > { %2218 = vmatprep.subr.bf16.mxu1 %v3447_v52  ;;  %v2590_v52 = vld [vmem:[%s3949_s2 + $0xa8] ss:$20 sps:$4 sm:$0xff]  }
 0x16a   : > { %2234 = vmatpush1.bf16.msra.mxu1 %v3449_v55  ;;  %v2593_v55 = vld [vmem:[%s3949_s2 + $0x88] ss:$20 sps:$4 sm:$0xff]  }
 0x16b   : > { %2219 = vmatprep.subr.bf16.mxu1 %v3492_v51  ;;  %v2594_v51 = vld [vmem:[%s3949_s2 + $0xd4] ss:$20 sps:$4 sm:$0xff]  }
 0x16c   : > { %1478 = vmatmul.mubr.bf16.gmra.mrb[24].mxu1 %v2584_v24 }
 0x16d   : > { %2172 = vmatmul.mubr.msk.bf16.gmra.mrb[4].mxu0 %vm1360_vm8, %v2585_v47  ;;  %1487 = vmatprep.mubr.bf16.mxu1 %v2586_v1 }
 0x16e   : > { %2235 = vmatpush1.bf16.msra.mxu1 %v3504_v40  ;;  %1663 = vmatprep.mubr.bf16.mxu0 %v2784_v37  ;;  %v2596_v40 = vld [vmem:[%s3949_s2 + $0xd0] ss:$20 sps:$4 sm:$0xff]  }
 0x16f   : > { %2220 = vmatprep.subr.bf16.mxu1 %v3529_v48  ;;  %v2597_v48 = vld [vmem:[%s3949_s2 + $0xb0] ss:$20 sps:$4 sm:$0xff]  }
 0x172   : > { %2236 = vmatpush1.bf16.msra.mxu1 %v3531_v29  ;;  %v2598_v29 = vld [vmem:[%s3949_s2 + $0xfc] ss:$20 sps:$4 sm:$0xff]  }
 0x173   : > { %2221 = vmatprep.subr.bf16.mxu1 %v3583_v59  ;;  %v2600_v59 = vld [vmem:[%s3949_s2 + $0xf8] ss:$20 sps:$4 sm:$0xff]  }
 0x174   : > { %1488 = vmatmul.mubr.bf16.gmra.mrb[28].mxu1 %v2588_v3 }
 0x175   : > { %2173 = vmatmul.mubr.msk.bf16.gmra.mrb[8].mxu0 %vm1360_vm8, %v2589_v56  ;;  %1570 = vmatprep.mubr.bf16.mxu1 %v2592_v57 }
 0x176   : > { %2237 = vmatpush1.bf16.msra.mxu1 %v3585_v15  ;;  %1673 = vmatprep.mubr.bf16.mxu0 %v2784_v37  ;;  %v2601_v15 = vld [vmem:[%s3949_s2 + $0xd8] ss:$20 sps:$4 sm:$0xff]  }
 0x177   : > { %2222 = vmatprep.subr.bf16.mxu1 %v3635_v63  ;;  %v2602_v63 = vld [vmem:[%s3949_s2 + $0x124] ss:$20 sps:$4 sm:$0xff]  }
 0x17a   : > { %2238 = vmatpush1.bf16.msra.mxu1 %v3637_v39  ;;  %v2604_v39 = vld [vmem:[%s3949_s2 + $0x120] ss:$20 sps:$4 sm:$0xff]  }
 0x17d   : > { %1571 = vmatmul.mubr.bf16.vlgmr.msra.gmra.mrb[16].mxu1 %v2590_v52  ;;  %2174 = vmatmul.mubr.msk.bf16.gmra.mrb[12].mxu0 %vm1360_vm8, %v2593_v55 }
 0x17e   : > { %1580 = vmatprep.mubr.bf16.mxu1 %v2594_v51  ;;  %1683 = vmatprep.mubr.bf16.mxu0 %v2784_v37 }
 0x185   : > { %1581 = vmatmul.mubr.bf16.gmra.mrb[20].mxu1 %v2596_v40  ;;  %2175 = vmatmul.mubr.msk.bf16.gmra.mrb[16].mxu0 %vm1360_vm8, %v2597_v48 }
 0x186   : > { %1590 = vmatprep.mubr.bf16.mxu1 %v2598_v29  ;;  %1693 = vmatprep.mubr.bf16.mxu0 %v2784_v37 }
 0x18d   : > { %1591 = vmatmul.mubr.bf16.gmra.mrb[24].mxu1 %v2600_v59  ;;  %2176 = vmatmul.mubr.msk.bf16.gmra.mrb[20].mxu0 %vm1360_vm8, %v2601_v15 }
 0x18e   : > { %1600 = vmatprep.mubr.bf16.mxu1 %v2602_v63  ;;  %1703 = vmatprep.mubr.bf16.mxu0 %v2784_v37 }
 0x18f   : > { %v1083_v43 = vpop.permute.xlu0 %1082  ;;  %v1088_v20 = vpop.permute.xlu1 %1087 }
 0x195   : > { %1601 = vmatmul.mubr.bf16.gmra.mrb[28].mxu1 %v2604_v39  ;;  %2177 = vmatmul.mubr.msk.bf16.gmra.mrb[24].mxu0 %vm1360_vm8, %v2605_v23 }
 0x196   : > { %1713 = vmatprep.mubr.bf16.mxu0 %v2784_v37 }
 0x198   : > { %v1093_v58 = vpop.permute.xlu1 %1092  ;;  %v1098_v33 = vpop.permute.xlu0 %1097 }
 0x19c   : > { %v1103_v24 = vpop.permute.xlu1 %1102  ;;  %v1108_v3 = vpop.permute.xlu0 %1107 }
 0x19d   : > { %2178 = vmatmul.mubr.msk.bf16.gmra.mrb[28].mxu0 %vm1360_vm8, %v2606_v61 }
 0x20f   : > { %v1419_v62 = vpop.f32.mrb[0].mxu1 }
 0x210   : > { %v1421_v30 = vpop.f32.mrb[1].mxu1  ;;  %v1420_v32 = vadd.f32 %v1419_v62, %v1083_v43 }
 0x211   : > { %v1423_v13 = vpop.f32.mrb[2].mxu1  ;;  %v1422_v5 = vadd.f32 %v1421_v30, %v1083_v43  ;;  %v1113_v30 = vpop.permute.xlu1 %1112 }
 0x212   : > { %v1425_v19 = vpop.f32.mrb[3].mxu1  ;;  %v1424_v11 = vadd.f32 %v1423_v13, %v1088_v20 }
 0x213   : > { %v1426_v25 = vadd.f32 %v1425_v19, %v1088_v20 }
 0x217   : > { %v1429_v26 = vpop.f32.mrb[4].mxu1 }
 0x218   : > { %v1431_v28 = vpop.f32.mrb[5].mxu1  ;;  %v1430_v38 = vadd.f32 %v1429_v26, %v1093_v58 }
 0x219   : > { %v1433_v2 = vpop.f32.mrb[6].mxu1  ;;  %v1432_v27 = vadd.f32 %v1431_v28, %v1093_v58 }
 0x21a   : > { %v1435_v31 = vpop.f32.mrb[7].mxu1  ;;  %v1434_v60 = vadd.f32 %v1433_v2, %v1098_v33 }
 0x21b   : > { %v1436_v36 = vadd.f32 %v1435_v31, %v1098_v33 }
 0x21f   : > { %v1439_v21 = vpop.f32.mrb[8].mxu1 }
 0x220   : > { %v1441_v42 = vpop.f32.mrb[9].mxu1  ;;  %v1440_v56 = vadd.f32 %v1439_v21, %v1103_v24 }
 0x221   : > { %v1443_v6 = vpop.f32.mrb[10].mxu1  ;;  %v1442_v52 = vadd.f32 %v1441_v42, %v1103_v24  ;;  %v1118_v42 = vpop.permute.xlu0 %1117 }
 0x222   : > { %v1445_v17 = vpop.f32.mrb[11].mxu1  ;;  %v1444_v51 = vadd.f32 %v1443_v6, %v1108_v3 }
 0x223   : > { %v1446_v59 = vadd.f32 %v1445_v17, %v1108_v3 }
 0x227   : > { %v3852_v18 = vpop.f32.mrb[12].mxu1 }
 0x228   : > { %v3854_v37 = vpop.f32.mrb[13].mxu1  ;;  %v1450_v21 = vadd.f32 %v3852_v18, %v1113_v30 }
 0x229   : > { %v3856_v0 = vpop.f32.mrb[14].mxu1  ;;  %v1452_v43 = vadd.f32 %v3854_v37, %v1113_v30 }
 0x22a   : > { %v3858_v4 = vpop.f32.mrb[15].mxu1 }
 0x238   : > { %v1645_v9 = vpop.f32.mrb[0].mxu0 }
 0x239   : > { %v2240_v22 = vadd.f32 %v1645_v9, %v1420_v32  ;;  %v1647_v45 = vpop.f32.mrb[1].mxu0 }
 0x23a   : > { %v2242_v35 = vadd.f32 %v1647_v45, %v1422_v5  ;;  %v1649_v10 = vpop.f32.mrb[2].mxu0  ;;  %v1454_v45 = vadd.f32 %v3856_v0, %v1118_v42 }
 0x23b   : > { %v2244_v49 = vadd.f32 %v1649_v10, %v1424_v11  ;;  %v1651_v12 = vpop.f32.mrb[3].mxu0  ;;  %v2179_v41 = vmul.f32 -1.442695, %v2240_v22 }
 0x23c   : > { %v2246_v46 = vadd.f32 %v1651_v12, %v1426_v25  ;;  %v2180_v50 = vmul.f32 -1.442695, %v2242_v35  ;;  %v1456_v12 = vadd.f32 %v3858_v4, %v1118_v42 }
 0x23d   : > { %v2181_v53 = vmul.f32 -1.442695, %v2244_v49  ;;  %2607 = vpow2.f32 %v2179_v41 }
 0x23e   : > { %2609 = vpow2.f32 %v2180_v50  ;;  %v2182_v1 = vmul.f32 -1.442695, %v2246_v46 }
 0x23f   : > { %2611 = vpow2.f32 %v2181_v53 }
 0x240   : > { %v1655_v44 = vpop.f32.mrb[4].mxu0  ;;  %2613 = vpow2.f32 %v2182_v1 }
 0x241   : > { %v2248_v16 = vadd.f32 %v1655_v44, %v1430_v38  ;;  %v1657_v14 = vpop.f32.mrb[5].mxu0 }
 0x242   : > { %v2250_v34 = vadd.f32 %v1657_v14, %v1432_v27  ;;  %v1659_v54 = vpop.f32.mrb[6].mxu0 }
 0x243   : > { %v2252_v8 = vadd.f32 %v1659_v54, %v1434_v60  ;;  %v1661_v7 = vpop.f32.mrb[7].mxu0  ;;  %v2183_v57 = vmul.f32 -1.442695, %v2248_v16  ;;  %v1123_v60 = vpop.permute.xlu1 %1122 }
 0x244   : > { %v2254_v47 = vadd.f32 %v1661_v7, %v1436_v36  ;;  %v2184_v40 = vmul.f32 -1.442695, %v2250_v34  ;;  %v1128_v16 = vpop.permute.xlu0 %1127 }
 0x245   : > { %v2185_v15 = vmul.f32 -1.442695, %v2252_v8  ;;  %2615 = vpow2.f32 %v2183_v57 }
 0x246   : > { %v2186_v23 = vmul.f32 -1.442695, %v2254_v47  ;;  %2617 = vpow2.f32 %v2184_v40 }
 0x247   : > { %v2608_v28 = vpop.eup %2607  ;;  %2619 = vpow2.f32 %v2185_v15 }
 0x248   : > { %v1665_v55 = vpop.f32.mrb[8].mxu0  ;;  %v2610_v31 = vpop.eup %2609  ;;  %2621 = vpow2.f32 %v2186_v23  ;;  %v1748_v5 = vadd.f32 1.0, %v2608_v28 }
 0x249   : > { %v2256_v48 = vadd.f32 %v1665_v55, %v1440_v56  ;;  %v1667_v29 = vpop.f32.mrb[9].mxu0  ;;  %v2612_v17 = vpop.eup %2611  ;;  %v1749_v25 = vadd.f32 1.0, %v2610_v31 }
 0x24a   : > { %v2258_v63 = vadd.f32 %v1667_v29, %v1442_v52  ;;  %v1669_v39 = vpop.f32.mrb[10].mxu0  ;;  %v2614_v49 = vpop.eup %2613  ;;  %v1750_v58 = vadd.f32 1.0, %v2612_v17 }
 0x24b   : > { %v2260_v61 = vadd.f32 %v1669_v39, %v1444_v51  ;;  %v1671_v62 = vpop.f32.mrb[11].mxu0  ;;  %v2187_v13 = vmul.f32 -1.442695, %v2256_v48  ;;  %v1751_v0 = vadd.f32 1.0, %v2614_v49  ;;  %v1138_v31 = vpop.permute.xlu0 %1137 }
 0x24c   : > { %v2262_v19 = vadd.f32 %v1671_v62, %v1446_v59  ;;  %v2188_v26 = vmul.f32 -1.442695, %v2258_v63 }
 0x24d   : > { %v2189_v2 = vmul.f32 -1.442695, %v2260_v61  ;;  %2623 = vpow2.f32 %v2187_v13 }
 0x24e   : > { %v2190_v6 = vmul.f32 -1.442695, %v2262_v19  ;;  %2625 = vpow2.f32 %v2188_v26  ;;  %v1133_v26 = vpop.permute.xlu1 %1132 }
 0x24f   : > { %2627 = vpow2.f32 %v2189_v2  ;;  %v2616_v27 = vpop.eup %2615 }
 0x250   : > { %v1572_v20 = vpop.f32.mrb[16].mxu1  ;;  %v1675_v32 = vpop.f32.mrb[12].mxu0  ;;  %2629 = vpow2.f32 %v2190_v6  ;;  %v1752_v4 = vadd.f32 1.0, %v2616_v27 }
 0x251   : > { %v2264_v9 = vadd.f32 %v1675_v32, %v1450_v21  ;;  %v1574_v11 = vpop.f32.mrb[17].mxu1  ;;  %v1677_v22 = vpop.f32.mrb[13].mxu0  ;;  %2631 = vrcp.f32 %v1748_v5  ;;  %v2271_v14 = vadd.f32 %v1572_v20, %v1123_v60 }
 0x252   : > { %v2266_v35 = vadd.f32 %v1677_v22, %v1452_v43  ;;  %v1576_v18 = vpop.f32.mrb[18].mxu1  ;;  %v1679_v10 = vpop.f32.mrb[14].mxu0  ;;  %2633 = vrcp.f32 %v1749_v25  ;;  %v2273_v34 = vadd.f32 %v1574_v11, %v1123_v60 }
 0x253   : > { %v1578_v37 = vpop.f32.mrb[19].mxu1  ;;  %v1681_v46 = vpop.f32.mrb[15].mxu0  ;;  %v2191_v33 = vmul.f32 -1.442695, %v2264_v9  ;;  %v2268_v38 = vadd.f32 %v1679_v10, %v1454_v45  ;;  %2635 = vrcp.f32 %v1750_v58  ;;  %v2275_v52 = vadd.f32 %v1576_v18, %v1128_v16 }
 0x254   : > { %v2192_v41 = vmul.f32 -1.442695, %v2266_v35  ;;  %v2270_v44 = vadd.f32 %v1681_v46, %v1456_v12  ;;  %v2618_v50 = vpop.eup %2617  ;;  %v2277_v59 = vadd.f32 %v1578_v37, %v1128_v16 }
 0x255   : > { %v2193_v36 = vmul.f32 -1.442695, %v2268_v38  ;;  %v2620_v53 = vpop.eup %2619  ;;  %2637 = vpow2.f32 %v2191_v33  ;;  %v1753_v57 = vadd.f32 1.0, %v2618_v50 }
 0x256   : > { %v2622_v7 = vpop.eup %2621  ;;  %2639 = vpow2.f32 %v2192_v41  ;;  %v2194_v24 = vmul.f32 -1.442695, %v2270_v44  ;;  %v1754_v29 = vadd.f32 1.0, %v2620_v53  ;;  %v1148_v53 = vpop.permute.xlu0 %1147 }
 0x257   : > { %v2624_v56 = vpop.eup %2623  ;;  %2641 = vrcp.f32 %v1751_v0  ;;  %v1755_v23 = vadd.f32 1.0, %v2622_v7 }
 0x258   : > { %v1582_v54 = vpop.f32.mrb[20].mxu1  ;;  %v1685_v8 = vpop.f32.mrb[16].mxu0  ;;  %2643 = vpow2.f32 %v2193_v36  ;;  %v1796_v30 = vadd.f32 1.0, %v2624_v56 }
 0x259   : > { %v2272_v47 = vadd.f32 %v2271_v14, %v1685_v8  ;;  %v1584_v1 = vpop.f32.mrb[21].mxu1  ;;  %v1687_v3 = vpop.f32.mrb[17].mxu0  ;;  %2645 = vrcp.f32 %v1752_v4  ;;  %v2279_v21 = vadd.f32 %v1582_v54, %v1133_v26 }
 0x25a   : > { %v2274_v55 = vadd.f32 %v2273_v34, %v1687_v3  ;;  %v1586_v51 = vpop.f32.mrb[22].mxu1  ;;  %v1689_v40 = vpop.f32.mrb[18].mxu0  ;;  %2647 = vpow2.f32 %v2194_v24  ;;  %v2281_v17 = vadd.f32 %v1584_v1, %v1133_v26 }
 0x25b   : > { %v2626_v48 = vpop.eup %2625  ;;  %v1588_v15 = vpop.f32.mrb[23].mxu1  ;;  %v2276_v61 = vadd.f32 %v2275_v52, %v1689_v40  ;;  %2649 = vrcp.f32 %v1753_v57  ;;  %v2195_v5 = vmul.f32 -1.442695, %v2272_v47  ;;  %v2283_v35 = vadd.f32 %v1586_v51, %v1138_v31 }
 0x25c   : > { %v1691_v63 = vpop.f32.mrb[19].mxu0  ;;  %v2628_v39 = vpop.eup %2627  ;;  %v1797_v19 = vadd.f32 1.0, %v2626_v48  ;;  %2651 = vrcp.f32 %v1754_v29  ;;  %v2196_v25 = vmul.f32 -1.442695, %v2274_v55  ;;  %v2285_v37 = vadd.f32 %v1588_v15, %v1138_v31 }
 0x25d   : > { %v2630_v62 = vpop.eup %2629  ;;  %v2278_v13 = vadd.f32 %v2277_v59, %v1691_v63  ;;  %v1798_v2 = vadd.f32 1.0, %v2628_v39  ;;  %2653 = vrcp.f32 %v1755_v23  ;;  %v2197_v58 = vmul.f32 -1.442695, %v2276_v61  ;;  %v1143_v14 = vpop.permute.xlu1 %1142 }
 0x25e   : > { %v3864_v28 = vpop.eup %2631  ;;  %v1799_v6 = vadd.f32 1.0, %v2630_v62  ;;  %2655 = vrcp.f32 %v1796_v30 }
 0x25f   : > { %v3866_v42 = vpop.eup %2633  ;;  %2657 = vrcp.f32 %v1797_v19  ;;  %v2198_v27 = vmul.f32 -1.442695, %v2278_v13 }
 0x260   : > { %v1592_v43 = vpop.f32.mrb[24].mxu1  ;;  %v1695_v20 = vpop.f32.mrb[20].mxu0  ;;  %2659 = vrcp.f32 %v1798_v2 }
 0x261   : > { %v3868_v32 = vpop.eup %2635  ;;  %v2280_v9 = vadd.f32 %v2279_v21, %v1695_v20  ;;  %v1594_v11 = vpop.f32.mrb[25].mxu1  ;;  %2661 = vrcp.f32 %v1799_v6  ;;  %v2287_v4 = vadd.f32 %v1592_v43, %v1143_v14 }
 0x262   : > { %v1697_v22 = vpop.f32.mrb[21].mxu0  ;;  %v2638_v45 = vpop.eup %2637  ;;  %2663 = vpow2.f32 %v2195_v5  ;;  %v2289_v8 = vadd.f32 %v1594_v11, %v1143_v14 }
 0x263   : > { %v2282_v18 = vadd.f32 %v2281_v17, %v1697_v22  ;;  %v1596_v10 = vpop.f32.mrb[26].mxu1  ;;  %v1699_v49 = vpop.f32.mrb[22].mxu0  ;;  %v1800_v0 = vadd.f32 1.0, %v2638_v45  ;;  %2665 = vpow2.f32 %v2196_v25  ;;  %v2199_v1 = vmul.f32 -1.442695, %v2280_v9 }
 0x264   : > { %v2640_v12 = vpop.eup %2639  ;;  %v1598_v46 = vpop.f32.mrb[27].mxu1  ;;  %v2284_v41 = vadd.f32 %v2283_v35, %v1699_v49  ;;  %2667 = vpow2.f32 %v2197_v58  ;;  %v2291_v3 = vadd.f32 %v1596_v10, %v1148_v53  ;;  %v1876_v58 = vld [vmem:[%s2862_s13] sm:$0xff] }
 0x265   : > { %v1701_v33 = vpop.f32.mrb[23].mxu0  ;;  %v3870_v38 = vpop.eup %2641  ;;  %v1801_v16 = vadd.f32 1.0, %v2640_v12  ;;  %2669 = vpow2.f32 %v2198_v27  ;;  %v2293_v40 = vadd.f32 %v1598_v46, %v1148_v53  ;;  %v2200_v63 = vmul.f32 -1.442695, %v2282_v18  ;;  %v1877_v53 = vld [vmem:[%s2862_s13 + $0x8] sm:$0xff] }
 0x266   : > { %v2644_v44 = vpop.eup %2643  ;;  %v2286_v60 = vadd.f32 %v2285_v37, %v1701_v33  ;;  %2671 = vrcp.f32 %v1800_v0  ;;  %v1153_v26 = vpop.permute.xlu1 %1152  ;;  %v2201_v17 = vmul.f32 -1.442695, %v2284_v41 }
 0x267   : > { %v3872_v50 = vpop.eup %2645  ;;  %v1802_v54 = vadd.f32 1.0, %v2644_v44  ;;  %2673 = vrcp.f32 %v1801_v16  ;;  %v1158_v6 = vpop.permute.xlu0 %1157 }
 0x268   : > { %v2648_v36 = vpop.eup %2647  ;;  %v1602_v7 = vpop.f32.mrb[28].mxu1  ;;  %v2202_v9 = vmul.f32 -1.442695, %v2286_v60 }
 0x269   : > { %v3874_v34 = vpop.eup %2649  ;;  %v1705_v24 = vpop.f32.mrb[24].mxu0  ;;  %v1803_v51 = vadd.f32 1.0, %v2648_v36  ;;  %v2295_v31 = vadd.f32 %v1602_v7, %v1153_v26  ;;  %v1878_v7 = vld [vmem:[%s2862_s13 + $0x10] sm:$0xff] }
 0x26a   : > { %v3876_v47 = vpop.eup %2651  ;;  %v2288_v56 = vadd.f32 %v2287_v4, %v1705_v24  ;;  %v1604_v57 = vpop.f32.mrb[29].mxu1 }
 0x26b   : > { %v1707_v52 = vpop.f32.mrb[25].mxu0  ;;  %v3878_v55 = vpop.eup %2653  ;;  %v2297_v43 = vadd.f32 %v1604_v57, %v1153_v26 }
 0x26c   : > { %v2290_v48 = vadd.f32 %v2289_v8, %v1707_v52  ;;  %v1606_v29 = vpop.f32.mrb[30].mxu1  ;;  %v1709_v59 = vpop.f32.mrb[26].mxu0  ;;  %2675 = vtanh.f32 %v2288_v56  ;;  %v1880_v52 = vld [vmem:[%s2862_s13 + $0x20] sm:$0xff] }
 0x26d   : > { %v2656_v15 = vpop.eup %2655  ;;  %v2292_v39 = vadd.f32 %v2291_v3, %v1709_v59  ;;  %v1608_v23 = vpop.f32.mrb[31].mxu1  ;;  %2677 = vrcp.f32 %v1802_v54  ;;  %v2299_v11 = vadd.f32 %v1606_v29, %v1158_v6  ;;  %v1879_v3 = vld [vmem:[%s2862_s13 + $0x18] sm:$0xff] }
 0x26e   : > { %v1711_v61 = vpop.f32.mrb[27].mxu0  ;;  %v2658_v62 = vpop.eup %2657  ;;  %2679 = vpow2.f32 %v2199_v1  ;;  %v2301_v18 = vadd.f32 %v1608_v23, %v1158_v6  ;;  %v1884_v60 = vmul.f32 %v2656_v15, %v1876_v58 }
 0x26f   : > { %v2294_v30 = vadd.f32 %v2293_v40, %v1711_v61  ;;  %v3880_v13 = vpop.eup %2659  ;;  %2681 = vrcp.f32 %v1803_v51  ;;  %v1885_v57 = vmul.f32 %v2658_v62, %v1877_v53 }
 0x270   : > { %v3882_v19 = vpop.eup %2661  ;;  %2683 = vpow2.f32 %v2200_v63  ;;  %v1715_v20 = vpop.f32.mrb[28].mxu0 }
 0x271   : > { %v2664_v2 = vpop.eup %2663  ;;  %2685 = vtanh.f32 %v2290_v48  ;;  %v2296_v22 = vadd.f32 %v2295_v31, %v1715_v20  ;;  %v1717_v45 = vpop.f32.mrb[29].mxu0  ;;  %v1886_v48 = vmul.f32 %v3880_v13, %v1878_v7  ;;  %v1887_v15 = vmul.f32 %v3882_v19, %v1879_v3  ;;  %v1881_v19 = vld [vmem:[%s2862_s13 + $0x28] sm:$0xff] }
 0x272   : > { %v2666_v21 = vpop.eup %2665  ;;  %2687 = vtanh.f32 %v2292_v39  ;;  %v1844_v35 = vadd.f32 1.0, %v2664_v2  ;;  %v2298_v10 = vadd.f32 %v2297_v43, %v1717_v45  ;;  %v1719_v49 = vpop.f32.mrb[30].mxu0  ;;  %v1882_v2 = vld [vmem:[%s2862_s13 + $0x30] sm:$0xff]  ;;  %v1883_v43 = vld [vmem:[%s2862_s13 + $0x38] sm:$0xff] }
 0x273   : > { %v2668_v5 = vpop.eup %2667  ;;  %2689 = vtanh.f32 %v2294_v30  ;;  %v1845_v37 = vadd.f32 1.0, %v2666_v21  ;;  %v2300_v46 = vadd.f32 %v2299_v11, %v1719_v49  ;;  %v1721_v33 = vpop.f32.mrb[31].mxu0 }
 0x274   : > { %v2670_v25 = vpop.eup %2669  ;;  %2691 = vtanh.f32 %v2296_v22  ;;  %v2302_v41 = vadd.f32 %v2301_v18, %v1721_v33  ;;  %v1846_v4 = vadd.f32 1.0, %v2668_v5 }
 0x275   : > { %v2672_v12 = vpop.eup %2671  ;;  %2693 = vpow2.f32 %v2201_v17  ;;  %v1847_v24 = vadd.f32 1.0, %v2670_v25 }
 0x276   : > { %v3885_v27 = vpop.eup %2673  ;;  %2695 = vpow2.f32 %v2202_v9 }
 0x277   : > { %v2676_v44 = vpop.eup %2675  ;;  %2697 = vrcp.f32 %v1844_v35  ;;  %v1889_v17 = vmul.f32 %v3885_v27, %v1881_v19 }
 0x278   : > { %v2678_v0 = vpop.eup %2677  ;;  %v1892_v16 = vmul.f32 %v2676_v44, %v3864_v28  ;;  %2699 = vrcp.f32 %v1845_v37 }
 0x279   : > { %v2680_v14 = vpop.eup %2679  ;;  %2701 = vtanh.f32 %v2298_v10  ;;  %v1890_v9 = vmul.f32 %v2678_v0, %v1882_v2 }
 0x27a   : > { %v3888_v36 = vpop.eup %2681  ;;  %v1900_v54 = vadd.f32 %v1892_v16, %v1884_v60  ;;  %2703 = vtanh.f32 %v2300_v46  ;;  %v1848_v56 = vadd.f32 1.0, %v2680_v14 }
 0x27b   : > { %v2684_v8 = vpop.eup %2683  ;;  %v1891_v10 = vmul.f32 %v3888_v36, %v1883_v43 }
 0x27c   : > { %v2686_v1 = vpop.eup %2685  ;;  %2705 = vtanh.f32 %v1900_v54  ;;  %1932 = vst [vmem:[%s2862_s13] sm:$0xff] %v1900_v54  ;;  %v1849_v31 = vadd.f32 1.0, %v2684_v8 }
 0x27d   : > { %v2688_v28 = vpop.eup %2687  ;;  %v1893_v51 = vmul.f32 %v2686_v1, %v3866_v42  ;;  %2707 = vtanh.f32 %v2302_v41  ;;  %v1888_v42 = vmul.f32 %v2672_v12, %v1880_v52 }
 0x27e   : > { %v2690_v40 = vpop.eup %2689  ;;  %2709 = vrcp.f32 %v1846_v4  ;;  %v1894_v29 = vmul.f32 %v2688_v28, %v3868_v32 }
 0x27f   : > { %v2692_v59 = vpop.eup %2691  ;;  %2711 = vrcp.f32 %v1847_v24  ;;  %v1901_v63 = vadd.f32 %v1893_v51, %v1885_v57  ;;  %v1895_v39 = vmul.f32 %v2690_v40, %v3870_v38 }
 0x280   : > { %v2694_v23 = vpop.eup %2693  ;;  %2713 = vrcp.f32 %v1848_v56  ;;  %v1902_v61 = vadd.f32 %v1894_v29, %v1886_v48  ;;  %v1896_v62 = vmul.f32 %v2692_v59, %v3872_v50 }
 0x281   : > { %v2696_v30 = vpop.eup %2695  ;;  %2715 = vtanh.f32 %v1901_v63  ;;  %1933 = vst [vmem:[%s2862_s13 + $0x8] sm:$0xff] %v1901_v63  ;;  %v1903_v32 = vadd.f32 %v1895_v39, %v1887_v15  ;;  %v1850_v6 = vadd.f32 1.0, %v2694_v23 }
 0x282   : > { %v2698_v13 = vpop.eup %2697  ;;  %2717 = vtanh.f32 %v1902_v61  ;;  %1934 = vst [vmem:[%s2862_s13 + $0x10] sm:$0xff] %v1902_v61  ;;  %v1904_v26 = vadd.f32 %v1896_v62, %v1888_v42  ;;  %v1851_v45 = vadd.f32 1.0, %v2696_v30 }
 0x283   : > { %v2700_v38 = vpop.eup %2699  ;;  %2719 = vtanh.f32 %v1903_v32  ;;  %1935 = vst [vmem:[%s2862_s13 + $0x18] sm:$0xff] %v1903_v32 }
 0x284   : > { %v2702_v21 = vpop.eup %2701  ;;  %2721 = vtanh.f32 %v1904_v26  ;;  %1936 = vst [vmem:[%s2862_s13 + $0x20] sm:$0xff] %v1904_v26 }
 0x285   : > { %v2704_v50 = vpop.eup %2703  ;;  %v1897_v20 = vmul.f32 %v2702_v21, %v3874_v34  ;;  %2723 = vrcp.f32 %v1849_v31 }
 0x286   : > { %v2706_v5 = vpop.eup %2705  ;;  %v1898_v11 = vmul.f32 %v2704_v50, %v3876_v47  ;;  %2725 = vrcp.f32 %v1850_v6 }
 0x287   : > { %v2708_v22 = vpop.eup %2707  ;;  %v1916_v25 = vmul.f32 %v2706_v5, %v2698_v13  ;;  %v1905_v35 = vadd.f32 %v1897_v20, %v1889_v17 }
 0x288   : > { %v2710_v18 = vpop.eup %2709  ;;  %v1906_v49 = vadd.f32 %v1898_v11, %v1890_v9  ;;  %v1899_v34 = vmul.f32 %v2708_v22, %v3878_v55 }
 0x289   : > { %v2712_v12 = vpop.eup %2711  ;;  %1924 = vst [vmem:[%s2857_s9] sm:$0xff] %v1916_v25  ;;  %1940 = vst [vmem:[%s2870_s22] sm:$0xff] %v1916_v25  ;;  %2727 = vtanh.f32 %v1905_v35 }
 0x28a   : > { %1937 = vst [vmem:[%s2862_s13 + $0x28] sm:$0xff] %v1905_v35  ;;  %v2714_v47 = vpop.eup %2713  ;;  %2729 = vtanh.f32 %v1906_v49  ;;  %1938 = vst [vmem:[%s2862_s13 + $0x30] sm:$0xff] %v1906_v49  ;;  %v1907_v58 = vadd.f32 %v1899_v34, %v1891_v10 }
 0x28b   : > { %v2716_v37 = vpop.eup %2715  ;;  %2731 = vrcp.f32 %v1851_v45 }
 0x28c   : > { %v2718_v46 = vpop.eup %2717  ;;  %v1917_v55 = vmul.f32 %v2716_v37, %v2700_v38  ;;  %2733 = vtanh.f32 %v1907_v58  ;;  %1939 = vst [vmem:[%s2862_s13 + $0x38] sm:$0xff] %v1907_v58 }
 0x28d   : > { %v2720_v33 = vpop.eup %2719  ;;  %v1918_v27 = vmul.f32 %v2718_v46, %v2710_v18 }
 0x28e   : > { %v2722_v41 = vpop.eup %2721  ;;  %1925 = vst [vmem:[%s2857_s9 + $0x8] sm:$0xff] %v1917_v55  ;;  %1941 = vst [vmem:[%s2870_s22 + $0x8] sm:$0xff] %v1917_v55  ;;  %v1919_v44 = vmul.f32 %v2720_v33, %v2712_v12 }
 0x28f   : > { %1926 = vst [vmem:[%s2857_s9 + $0x10] sm:$0xff] %v1918_v27  ;;  %1942 = vst [vmem:[%s2870_s22 + $0x10] sm:$0xff] %v1918_v27  ;;  %v1920_v0 = vmul.f32 %v2722_v41, %v2714_v47  ;;  %v2724_v60 = vpop.eup %2723 }
 0x290   : > { %1927 = vst [vmem:[%s2857_s9 + $0x18] sm:$0xff] %v1919_v44  ;;  %1943 = vst [vmem:[%s2870_s22 + $0x18] sm:$0xff] %v1919_v44  ;;  %v2726_v16 = vpop.eup %2725 }
 0x291   : > { %1928 = vst [vmem:[%s2857_s9 + $0x20] sm:$0xff] %v1920_v0  ;;  %1944 = vst [vmem:[%s2870_s22 + $0x20] sm:$0xff] %v1920_v0 }
 0x293   : > { %v2728_v14 = vpop.eup %2727 }
 0x294   : > { %v2730_v36 = vpop.eup %2729  ;;  %v1921_v53 = vmul.f32 %v2728_v14, %v2724_v60 }
 0x295   : > { %v2732_v4 = vpop.eup %2731  ;;  %v1922_v54 = vmul.f32 %v2730_v36, %v2726_v16 }
 0x296   : > { %v2734_v8 = vpop.eup %2733  ;;  %1929 = vst [vmem:[%s2857_s9 + $0x28] sm:$0xff] %v1921_v53  ;;  %1945 = vst [vmem:[%s2870_s22 + $0x28] sm:$0xff] %v1921_v53 }
 0x297   : > { %1930 = vst [vmem:[%s2857_s9 + $0x30] sm:$0xff] %v1922_v54  ;;  %1946 = vst [vmem:[%s2870_s22 + $0x30] sm:$0xff] %v1922_v54  ;;  %v1923_v7 = vmul.f32 %v2734_v8, %v2732_v4 }
 0x299   : > { %1931 = vst [vmem:[%s2857_s9 + $0x38] sm:$0xff] %v1923_v7  ;;  %1947 = vst [vmem:[%s2870_s22 + $0x38] sm:$0xff] %v1923_v7 }
 0x29a PF: > { %s17_s25 = sadd.s32 1, %s2773_s25   ;;  %s3954_s21 = smov %s2765_s23 }
 0x29b   : > { %p14_p8 = scmp.ge.s32.totalorder %s17_s25, 18   ;;  %s3955_s22 = smov %s2769_s24 }
 0x29c   : > { %s3956_s23 = smov %s3959_s26  ;;  %s3957_s24 = smov %s3963_s27 }
 0x29d   :  { %16 = sbr.rel (!%p14_p8) target bundleno = 3 (0x3), region = 94 }

// kernel: conv_lstm_forward.2
= control target key start
LH: loop header
LB: loop body
LE: loop exit
PB: predicated region body
PF: predicated region fallthrough
CT: control target
= control target key end

     0   :  { %12 = vsyncpa [#allocation3], 0  ;;  %s3180_s0 = inlined_call_operand.vmem [shape: bf16[2,8,8,256], index: 0, kind: input, shape index: {}]   ;;  %s3181_s1 = inlined_call_operand.vmem [shape: f32[9,256], index: 1, kind: input, shape index: {}]   ;;  %s3182_s2 = inlined_call_operand.vmem [shape: bf16[128,360], index: 2, kind: input, shape index: {}]   ;;  %s3183_s3 = inlined_call_operand.vmem [shape: f32[128,1], index: 3, kind: input, shape index: {}]   ;;  %s3184_s4 = inlined_call_operand.vmem [shape: f32[2,8,32,256], index: 4, kind: output, shape index: {0}]   ;;  %s3185_s5 = inlined_call_operand.hbm [shape: f32[2,32,256], index: 5, kind: output, shape index: {1}]   ;;  %s3186_s6 = inlined_call_operand.hbm [shape: f32[2,32,256], index: 6, kind: output, shape index: {2}]  }
   0x1   :  { %14 = vsyncpa [#allocation3 + $0x1], 0 }
   0x2   :  { %15 = vsyncpa [#allocation5], 0 }
   0x3   :  { %17 = vsyncpa [#allocation5 + $0x1], 0  ;;  %s2329_s21 = smov 0   ;;  %s2331_s22 = smov 0  }
   0x4   :  { %s2333_s23 = smov 0   ;;  %s2335_s24 = smov 0  }
   0x5   :  { %s2337_s25 = smov 0   ;;  %s2339_s26 = smov 0  }
   0x6   :  { %s2341_s27 = smov 0   ;;  %s2343_s28 = smov 0  }
   0x7 LB: > { %3194 = sst [smem:[#allocation8_spill]] %s2251_s21  ;;  %s1717_s29 = sadd.s32 4294967295, %s2279_s28   ;;  %s2279_s28 = sphi %s2343_s28, %s23_s28   ;;  %s2275_s27 = sphi %s2341_s27, %s3213_s27   ;;  %s2271_s26 = sphi %s2339_s26, %s3212_s26   ;;  %s2267_s25 = sphi %s2337_s25, %s3211_s25   ;;  %s2263_s24 = sphi %s2335_s24, %s3210_s24   ;;  %s2259_s23 = sphi %s2333_s23, %s3209_s23   ;;  %s2255_s22 = sphi %s2331_s22, %s3208_s22   ;;  %s2251_s21 = sphi %s2329_s21, %s3207_s21  }
   0x8   : > { %3195 = sst [smem:[#allocation9_spill]] %s2255_s22  ;;  %s1718_s30 = sadd.s32 4294967294, %s2279_s28  }
   0x9   : > { %3196 = sst [smem:[#allocation10_spill]] %s2259_s23  ;;  %s32_s7 = sadd.s32 1, %s2271_s26 }
   0xa   : > { %3197 = sst [smem:[#allocation11_spill]] %s2271_s26  ;;  %p33_p0 = scmp.ge.s32.totalorder %s32_s7, 8 }
   0xb   : > { %3198 = sst [smem:[#allocation12_spill]] %s2275_s27  ;;  %s35_s8 = sadd.s32 1, %s2275_s27 }
   0xc   : > { %p171_p1 = scmp.ne.s32.totalorder %s2259_s23, %s2255_s22  ;;  %p172_p2 = scmp.eq.s32.totalorder %s1717_s29, 15 }
   0xd   : > { %s3215_s7 = smov (%p33_p0, %s32_s7), 0  ;;  %s3217_s8 = smov (!%p33_p0, %s35_s8), %s2275_s27 }
   0xe   : > { %3199 = sst [smem:[#allocation13_spill]] %s3215_s7  ;;  %p2378_p3 = por %p172_p2, %p171_p1 }
   0xf   : > { %p177_p4 = scmp.ne.s32.totalorder %s2255_s22, %s2251_s21  ;;  %p37_p5 = scmp.ge.s32.totalorder %s3217_s8, 2 }
  0x10   : > { %p178_p6 = scmp.eq.s32.totalorder %s1718_s30, 15  ;;  %p1721_p7 = scmp.ge.s32.totalorder %s2279_s28, 1 }
  0x11   : > { %p243_p8 = scmp.lt.s32.totalorder %s2279_s28, 17  ;;  %s3219_s8 = smov (%p37_p5, %s3217_s8), 0 }
  0x12   : > { %3201 = sst [smem:[#allocation14_spill]] %s3219_s8  ;;  %p2388_p9 = por %p178_p6, %p177_p4 }
  0x13   : > { %p244_p10 = pnand %p1721_p7, %p243_p8  ;;  %s158_s11 = ssub.s32 %s2275_s27, %s3219_s8 }
  0x14   : > { %s3202_s10 = scalar_select %p2388_p9, 1, 0 }
  0x15   : > { %s161_s12 = sadd.s32 1, %s2259_s23  ;;  %p159_p11 = scmp.eq.s32.totalorder %s158_s11, 0 }
  0x16   : > { %3203 = sst [smem:[#allocation15_spill]] %s3202_s10  ;;  %247 = sbr.rel (%p244_p10) target bundleno = 644 (0x284), region = 36 }
  0x17   : > { %s2396_s13 = scalar_select %p159_p11, %s2259_s23, %s161_s12  }
  0x18   : > { %s2399_s14 = sand.u32 (!%p244_p10), 1, %s2255_s22   ;;  %p291_p12 = scmp.lt.s32.totalorder (!%p244_p10), %s2267_s25, 1 }
  0x19   : > { %3204 = sst [smem:[#allocation16_spill]] %s2396_s13  ;;  %s1722_s15 = sshll.u32 (!%p244_p10), %s2399_s14, 6 }
  0x1a   : > { %p293_p13 = scmp.lt.s32.totalorder (!%p244_p10), %s2263_s24, 7  ;;  %s2414_s10 = scalar_lea.vmem (!%p244_p10), [#allocation2], %s1722_s15 }
  0x1b   : > { %s2416_s21 = scalar_lea.vmem (!%p244_p10), [#allocation4], %s1722_s15  ;;  %p1730_p0 = scmp.ne.s32.totalorder (!%p244_p10), %s2263_s24, 0 }
  0x1d   : > { %s292_s16 = scalar_select %p291_p12, %s2267_s25, 1 }
  0x1e   : > { %s294_s17 = scalar_select %p293_p13, %s2263_s24, 7 }
  0x1f   : > { %s1725_s18 = sshll.u32 %s292_s16, 4  ;;  %s1728_s19 = sshll.u32 %s292_s16, 6  ;;  %v2281_v0 = vmov (!%p1730_p0), 0.0  }
  0x20   : > { %s1724_s20 = sshll.u32 %s294_s17, 1  ;;  %s1727_s29 = sshll.u32 %s294_s17, 3  ;;  %314 = vst [vmem:[%s2414_s10] sm:$0xff] (!%p1730_p0), %v2281_v0  ;;  %315 = vst [vmem:[%s2414_s10 + $0x8] sm:$0xff] (!%p1730_p0), %v2281_v0 }
  0x21   : > { %s297_s30 = sadd.s32 %s1725_s18, %s1724_s20  ;;  %s306_s11 = sadd.s32 %s1728_s19, %s1727_s29  ;;  %316 = vst [vmem:[%s2414_s10 + $0x10] sm:$0xff] (!%p1730_p0), %v2281_v0  ;;  %317 = vst [vmem:[%s2414_s10 + $0x18] sm:$0xff] (!%p1730_p0), %v2281_v0 }
  0x22   : > { %s1726_s12 = sshll.u32 %s297_s30, 2  ;;  %s1729_s8 = sshll.u32 %s306_s11, 3  ;;  %318 = vst [vmem:[%s2414_s10 + $0x20] sm:$0xff] (!%p1730_p0), %v2281_v0  ;;  %319 = vst [vmem:[%s2414_s10 + $0x28] sm:$0xff] (!%p1730_p0), %v2281_v0 }
  0x23   : > { %s299_s26 = scalar_lea.vmem %s3180_s0, %s1726_s12  ;;  %s2412_s22 = scalar_lea.vmem %s3184_s4, %s1729_s8  ;;  %320 = vst [vmem:[%s2414_s10 + $0x30] sm:$0xff] (!%p1730_p0), %v2281_v0  ;;  %321 = vst [vmem:[%s2414_s10 + $0x38] sm:$0xff] (!%p1730_p0), %v2281_v0 }
  0x24   : > { %313 = sbr.rel (%p1730_p0) target bundleno = 43 (0x2b), region = 40  ;;  %322 = vst [vmem:[%s2416_s21] sm:$0xff] (!%p1730_p0), %v2281_v0  ;;  %323 = vst [vmem:[%s2416_s21 + $0x8] sm:$0xff] (!%p1730_p0), %v2281_v0 }
  0x25   : > { %324 = vst [vmem:[%s2416_s21 + $0x10] sm:$0xff] (!%p1730_p0), %v2281_v0  ;;  %325 = vst [vmem:[%s2416_s21 + $0x18] sm:$0xff] (!%p1730_p0), %v2281_v0 }
  0x26   : > { %326 = vst [vmem:[%s2416_s21 + $0x20] sm:$0xff] (!%p1730_p0), %v2281_v0  ;;  %327 = vst [vmem:[%s2416_s21 + $0x28] sm:$0xff] (!%p1730_p0), %v2281_v0 }
  0x27   : > { %328 = vst [vmem:[%s2416_s21 + $0x30] sm:$0xff] (!%p1730_p0), %v2281_v0  ;;  %329 = vst [vmem:[%s2416_s21 + $0x38] sm:$0xff] (!%p1730_p0), %v2281_v0 }
  0x2b PF: > { %v2436_v1 = vld [vmem:[%s2414_s10 + $0x8] sm:$0xff]  ;;  %v2438_v2 = vld [vmem:[%s299_s26] sm:$0xff]  ;;  %s2282_s23 = smov 17   ;;  %v2444_v5 = vld [vmem:[%s2414_s10 + $0x10] sm:$0xff]  ;;  %s2283_s24 = smov 16   ;;  %v365_v13 = vlaneseq  ;;  %vm1058_vm8 = vcmask 1043456  }
  0x2c   : > { %357 = vrot.lane.b32.xlu1 %v2436_v1, %s2282_s23  ;;  %v331_v3 = vunpack.c.l.bf16 %v2438_v2  ;;  %v332_v4 = vunpack.c.h.bf16 %v2438_v2  ;;  %v2453_v7 = vld [vmem:[%s2414_s10 + $0x18] sm:$0xff]  ;;  %v2456_v8 = vld [vmem:[%s2414_s10] sm:$0xff]  ;;  %v2461_v9 = vld [vmem:[%s2414_s10 + $0x30] sm:$0xff]  ;;  %s2284_s26 = smov 15   ;;  %s2285_s27 = smov 1   ;;  %vm1033_vm9 = vcmask 850944  }
  0x2d   : > { %v2464_v10 = vld [vmem:[%s2414_s10 + $0x20] sm:$0xff]  ;;  %v2469_v11 = vld [vmem:[%s2414_s10 + $0x28] sm:$0xff]  ;;  %v2477_v12 = vld [vmem:[%s2414_s10 + $0x38] sm:$0xff]  ;;  %s2286_s7 = smov 113   ;;  %s2287_s8 = smov 112   ;;  %v2547_v14 = vshrl.u32 %v365_v13, 7 }
  0x2e   : > { %v2450_v6 = vpack.i.bf16 %v332_v4, %v331_v3  ;;  %s2288_s13 = smov 127   ;;  %s2289_s15 = smov 111   ;;  %v2549_v16 = vand.u32 127, %v365_v13  ;;  %v2559_v18 = vld [vmem:[%s3181_s1] sm:$0xff]  ;;  %v2564_v21 = vld [vmem:[%s3181_s1 + $0x8] sm:$0xff] }
  0x2f   : > { %v380_v17 = vsub.s32 0, %v2547_v14  ;;  %v429_v39 = vsub.s32 1, %v2547_v14  ;;  %v1995_v63 = vld [vmem:[%s3182_s2 + $0x4] ss:$12 sps:$4 sm:$0xff]   ;;  %s1798_s12 = sshll.u32 %s2267_s25, 10 }
  0x30   : > { %349 = vrot.lane.b32.xlu1 %v2444_v5, %s2282_s23  ;;  %1952 = vrot.lane.b32.xlu0 %v2450_v6, %s2282_s23  ;;  %vm367_vm0 = vcmp.lt.s32.totalorder %v2549_v16, 17  ;;  %vm416_vm1 = vcmp.lt.s32.totalorder %v2549_v16, 16  ;;  %vm465_vm2 = vcmp.lt.s32.totalorder %v2549_v16, 15  ;;  %vm514_vm3 = vcmp.lt.s32.totalorder %v2549_v16, 1 }
  0x31   : > { %v381_v24 = vrot.slane %v2559_v18, %v380_v17  ;;  %v385_v25 = vrot.slane %v2564_v21, %v380_v17  ;;  %v2596_v46 = vrot.slane %v2559_v18, %v429_v39  ;;  %v2599_v47 = vrot.slane %v2564_v21, %v429_v39  ;;  %1097 = vmatprep.mubr.bf16.mxu1 %v1995_v63 }
  0x32   : > { %vm612_vm4 = vcmp.lt.s32.totalorder %v2549_v16, 113  ;;  %vm661_vm5 = vcmp.lt.s32.totalorder %v2549_v16, 112  ;;  %vm563_vm6 = vcmp.lt.s32.totalorder %v2549_v16, 127  ;;  %vm710_vm7 = vcmp.lt.s32.totalorder %v2549_v16, 111 }
  0x34   : > { %359 = vrot.lane.b32.xlu1 %v2453_v7, %s2282_s23  ;;  %347 = vrot.lane.b32.xlu0 %v2456_v8, %s2282_s23 }
  0x38   : > { %353 = vrot.lane.b32.xlu1 %v2461_v9, %s2282_s23  ;;  %351 = vrot.lane.b32.xlu0 %v2464_v10, %s2282_s23 }
  0x3c   : > { %1957 = vrot.lane.b32.xlu1 %v2450_v6, %s2283_s24  ;;  %361 = vrot.lane.b32.xlu0 %v2469_v11, %s2282_s23 }
  0x40   : > { %400 = vrot.lane.b32.xlu1 %v2444_v5, %s2283_s24  ;;  %363 = vrot.lane.b32.xlu0 %v2477_v12, %s2282_s23  ;;  %s1562_s23 = sshll.u32 %s2416_s21, 4  ;;  %s3071_s23 = int_to_ptr.vmem [resolvable:$true] %s1562_s23 }
  0x44   : > { %410 = vrot.lane.b32.xlu1 %v2453_v7, %s2283_s24  ;;  %398 = vrot.lane.b32.xlu0 %v2456_v8, %s2283_s24 }
  0x48   : > { %404 = vrot.lane.b32.xlu1 %v2461_v9, %s2283_s24  ;;  %408 = vrot.lane.b32.xlu0 %v2436_v1, %s2283_s24 }
  0x4c   : > { %414 = vrot.lane.b32.xlu1 %v2477_v12, %s2283_s24  ;;  %402 = vrot.lane.b32.xlu0 %v2464_v10, %s2283_s24 }
  0x50   : > { %447 = vrot.lane.b32.xlu1 %v2456_v8, %s2284_s26  ;;  %412 = vrot.lane.b32.xlu0 %v2469_v11, %s2283_s24 }
  0x54   : > { %449 = vrot.lane.b32.xlu1 %v2444_v5, %s2284_s26  ;;  %1962 = vrot.lane.b32.xlu0 %v2450_v6, %s2284_s26 }
  0x58   : > { %459 = vrot.lane.b32.xlu1 %v2453_v7, %s2284_s26  ;;  %457 = vrot.lane.b32.xlu0 %v2436_v1, %s2284_s26 }
  0x5c   : > { %453 = vrot.lane.b32.xlu1 %v2461_v9, %s2284_s26  ;;  %451 = vrot.lane.b32.xlu0 %v2464_v10, %s2284_s26 }
  0x60   : > { %1967 = vrot.lane.b32.xlu1 %v2450_v6, %s2285_s27  ;;  %461 = vrot.lane.b32.xlu0 %v2469_v11, %s2284_s26 }
  0x64   : > { %498 = vrot.lane.b32.xlu1 %v2444_v5, %s2285_s27  ;;  %463 = vrot.lane.b32.xlu0 %v2477_v12, %s2284_s26 }
  0x68   : > { %508 = vrot.lane.b32.xlu1 %v2453_v7, %s2285_s27  ;;  %496 = vrot.lane.b32.xlu0 %v2456_v8, %s2285_s27 }
  0x6c   : > { %502 = vrot.lane.b32.xlu1 %v2461_v9, %s2285_s27  ;;  %506 = vrot.lane.b32.xlu0 %v2436_v1, %s2285_s27 }
  0x70   : > { %512 = vrot.lane.b32.xlu1 %v2477_v12, %s2285_s27  ;;  %500 = vrot.lane.b32.xlu0 %v2464_v10, %s2285_s27 }
  0x74   : > { %598 = vrot.lane.b32.xlu1 %v2464_v10, %s2286_s7  ;;  %510 = vrot.lane.b32.xlu0 %v2469_v11, %s2285_s27 }
  0x78   : > { %608 = vrot.lane.b32.xlu1 %v2469_v11, %s2286_s7  ;;  %596 = vrot.lane.b32.xlu0 %v2444_v5, %s2286_s7 }
  0x7c   : > { %610 = vrot.lane.b32.xlu1 %v2477_v12, %s2286_s7  ;;  %606 = vrot.lane.b32.xlu0 %v2453_v7, %s2286_s7 }
  0x80   : > { %643 = vrot.lane.b32.xlu1 %v2456_v8, %s2287_s8  ;;  %600 = vrot.lane.b32.xlu0 %v2461_v9, %s2286_s7 }
  0x84   : > { %653 = vrot.lane.b32.xlu1 %v2436_v1, %s2287_s8  ;;  %1972 = vrot.lane.b32.xlu0 %v2450_v6, %s2287_s8 }
  0x88   : > { %1977 = vrot.lane.b32.xlu1 %v2450_v6, %s2288_s13  ;;  %645 = vrot.lane.b32.xlu0 %v2444_v5, %s2287_s8 }
  0x8c   : > { %649 = vrot.lane.b32.xlu1 %v2461_v9, %s2287_s8  ;;  %655 = vrot.lane.b32.xlu0 %v2453_v7, %s2287_s8 }
  0x90   : > { %659 = vrot.lane.b32.xlu1 %v2477_v12, %s2287_s8  ;;  %647 = vrot.lane.b32.xlu0 %v2464_v10, %s2287_s8 }
  0x94   : > { %547 = vrot.lane.b32.xlu1 %v2444_v5, %s2288_s13  ;;  %657 = vrot.lane.b32.xlu0 %v2469_v11, %s2287_s8  ;;  %s1530_s8 = scalar_lea.sflag [#allocation5], %s2399_s14 }
  0x98   : > { %557 = vrot.lane.b32.xlu1 %v2453_v7, %s2288_s13  ;;  %545 = vrot.lane.b32.xlu0 %v2456_v8, %s2288_s13 }
  0x9c   : > { %692 = vrot.lane.b32.xlu1 %v2456_v8, %s2289_s15  ;;  %555 = vrot.lane.b32.xlu0 %v2436_v1, %s2288_s13 }
  0x9e   : > { %v358_v15 = vpop.permute.xlu1 %357 }
  0xa0   : > { %549 = vrot.lane.b32.xlu1 %v2464_v10, %s2288_s13  ;;  %1982 = vrot.lane.b32.xlu0 %v2450_v6, %s2289_s15 }
  0xa2   : > { %v350_v19 = vpop.permute.xlu1 %349  ;;  %v1953_v20 = vpop.permute.xlu0 %1952 }
  0xa3   : > { %v1955_v22 = vunpack.i.h.bf16 %v1953_v20  ;;  %v1954_v23 = vunpack.i.l.bf16 %v1953_v20 }
  0xa4   : > { %559 = vrot.lane.b32.xlu1 %v2469_v11, %s2288_s13  ;;  %702 = vrot.lane.b32.xlu0 %v2436_v1, %s2289_s15 }
  0xa5   : > { %v373_v26 = vsel %vm367_vm0, %v1955_v22, %v1954_v23  ;;  %v368_v29 = vsel %vm367_vm0, %v1954_v23, %v1955_v22  ;;  %v2290_v23 = vmov 0  }
  0xa6   : > { %v360_v27 = vpop.permute.xlu1 %359  ;;  %v348_v28 = vpop.permute.xlu0 %347  ;;  %v386_v33 = vmul.f32 %v381_v24, %v373_v26  ;;  %v387_v34 = vmul.f32 %v385_v25, %v368_v29  ;;  %1210 = vmatprep.mubr.bf16.mxu0 %v2290_v23  ;;  %1992 = vset.pattern.permute.xlu1 %v2290_v23 }
  0xa7   : > { %v369_v30 = vsel %vm367_vm0, %v348_v28, %v358_v15  ;;  %v374_v31 = vsel %vm367_vm0, %v358_v15, %v348_v28  ;;  %v375_v40 = vsel %vm367_vm0, %v360_v27, %v350_v19  ;;  %v370_v42 = vsel %vm367_vm0, %v350_v19, %v360_v27  ;;  %1991 = vset.pattern.permute.xlu0 %v2290_v23 }
  0xa8   : > { %v388_v32 = vmul.f32 %v381_v24, %v374_v31  ;;  %694 = vrot.lane.b32.xlu1 %v2444_v5, %s2289_s15  ;;  %551 = vrot.lane.b32.xlu0 %v2461_v9, %s2288_s13  ;;  %v389_v35 = vmul.f32 %v385_v25, %v369_v30  ;;  %v390_v43 = vmul.f32 %v381_v24, %v375_v40 }
  0xa9   : > { %v391_v52 = vmul.f32 %v385_v25, %v370_v42 }
  0xaa   : > { %v354_v36 = vpop.permute.xlu1 %353  ;;  %v352_v37 = vpop.permute.xlu0 %351  ;;  %v739_v38 = vpack.c.bf16 %v388_v32, %v386_v33  ;;  %v740_v41 = vpack.c.bf16 %v389_v35, %v387_v34 }
  0xac   : > { %704 = vrot.lane.b32.xlu1 %v2453_v7, %s2289_s15  ;;  %561 = vrot.lane.b32.xlu0 %v2477_v12, %s2288_s13  ;;  %s2153_s13 = scalar_lea.vmem %s3071_s23, 1024 }
  0xad   : > { %1065 = vmatprep.subr.bf16.mxu1 %v740_v41  ;;  %p2154_p1 = scmp.ne.s32.totalorder %s3071_s23, %s2153_s13 }
  0xae   : > { %1066 = vmatpush1.bf16.msra.mxu1 %v739_v38  ;;  %v1958_v44 = vpop.permute.xlu1 %1957  ;;  %v362_v45 = vpop.permute.xlu0 %361 }
  0xaf   : > { %v1960_v48 = vunpack.i.h.bf16 %v1958_v44  ;;  %v1959_v49 = vunpack.i.l.bf16 %v1958_v44  ;;  %v371_v50 = vsel %vm367_vm0, %v352_v37, %v362_v45  ;;  %v376_v51 = vsel %vm367_vm0, %v362_v45, %v352_v37  ;;  %p2155_p2 = pnand %p2154_p1, %p2378_p3 }
  0xb0   : > { %v392_v53 = vmul.f32 %v381_v24, %v376_v51  ;;  %v393_v54 = vmul.f32 %v385_v25, %v371_v50  ;;  %696 = vrot.lane.b32.xlu0 %v2464_v10, %s2289_s15  ;;  %1987 = vrot.lane.b32.xlu1 %v2450_v6, %s2286_s7  ;;  %v478_v44 = vsub.s32 2, %v2547_v14 }
  0xb1   : > { %v417_v55 = vsel %vm416_vm1, %v1959_v49, %v1960_v48  ;;  %v422_v56 = vsel %vm416_vm1, %v1960_v48, %v1959_v49  ;;  %p2156_p4 = pneg %p2155_p2 }
  0xb2   : > { %v401_v57 = vpop.permute.xlu1 %400  ;;  %v364_v58 = vpop.permute.xlu0 %363  ;;  %v742_v59 = vpack.c.bf16 %v393_v54, %v391_v52  ;;  %v741_v60 = vpack.c.bf16 %v392_v53, %v390_v43  ;;  %v436_v61 = vmul.f32 %v2599_v47, %v417_v55  ;;  %v435_v62 = vmul.f32 %v2596_v46, %v422_v56 }
  0xb3   : > { %v372_v0 = vsel %vm367_vm0, %v354_v36, %v364_v58  ;;  %v377_v6 = vsel %vm367_vm0, %v364_v58, %v354_v36  ;;  %v483_v58 = vrot.slane %v2564_v21, %v478_v44 }
  0xb4   : > { %v394_v13 = vmul.f32 %v381_v24, %v377_v6  ;;  %v395_v15 = vmul.f32 %v385_v25, %v372_v0  ;;  %706 = vrot.lane.b32.xlu0 %v2469_v11, %s2289_s15  ;;  %1067 = vmatprep.subr.bf16.mxu1 %v742_v59 }
  0xb5   : > { %1068 = vmatpush1.bf16.msra.mxu1 %v741_v60  ;;  %604 = vrot.lane.b32.xlu1 %v2436_v1, %s2286_s7 }
  0xb6   : > { %v411_v17 = vpop.permute.xlu1 %410  ;;  %v399_v19 = vpop.permute.xlu0 %398  ;;  %v744_v20 = vpack.c.bf16 %v436_v61, %v395_v15  ;;  %v743_v22 = vpack.c.bf16 %v435_v62, %v394_v13 }
  0xb7   : > { %v419_v24 = vsel %vm416_vm1, %v401_v57, %v411_v17  ;;  %v424_v25 = vsel %vm416_vm1, %v411_v17, %v401_v57  ;;  %v479_v57 = vrot.slane %v2559_v18, %v478_v44 }
  0xb8   : > { %594 = vrot.lane.b32.xlu0 %v2456_v8, %s2286_s7  ;;  %1069 = vmatprep.subr.bf16.mxu1 %v744_v20  ;;  %v439_v30 = vmul.f32 %v2596_v46, %v424_v25  ;;  %v440_v31 = vmul.f32 %v2599_v47, %v419_v24  ;;  %s3069_s7 = scalar_lea.hbm %s3186_s6, %s1798_s12 }
  0xb9   : > { %1070 = vmatpush1.bf16.msra.mxu1 %v743_v22  ;;  %708 = vrot.lane.b32.xlu1 %v2477_v12, %s2289_s15  ;;  %v527_v22 = vsub.s32 3, %v2547_v14 }
  0xba   : > { %v405_v26 = vpop.permute.xlu1 %404  ;;  %v409_v27 = vpop.permute.xlu0 %408 }
  0xbb   : > { %v418_v28 = vsel %vm416_vm1, %v399_v19, %v409_v27  ;;  %v423_v29 = vsel %vm416_vm1, %v409_v27, %v399_v19 }
  0xbc   : > { %v437_v32 = vmul.f32 %v2596_v46, %v423_v29  ;;  %v438_v33 = vmul.f32 %v2599_v47, %v418_v28  ;;  %698 = vrot.lane.b32.xlu0 %v2461_v9, %s2289_s15  ;;  %v528_v28 = vrot.slane %v2559_v18, %v527_v22  ;;  %v532_v29 = vrot.slane %v2564_v21, %v527_v22  ;;  %s2291_s15 = smov [#allocation4]  }
  0xbd   : > { %s2157_s16 = sshll.u32 %s2291_s15, 4  ;;  %s2158_s16 = int_to_ptr.vmem [resolvable:$false] %s2157_s16 }
  0xbe   : > { %v415_v34 = vpop.permute.xlu1 %414  ;;  %v403_v35 = vpop.permute.xlu0 %402  ;;  %v746_v36 = vpack.c.bf16 %v440_v31, %v438_v33  ;;  %v745_v37 = vpack.c.bf16 %v439_v30, %v437_v32  ;;  %s2159_s17 = scalar_lea.vmem %s2158_s16, 2048  ;;  %p2160_p5 = scmp.lt.s32.totalorder %s3071_s23, %s2158_s16 }
  0xbf   : > { %v421_v38 = vsel %vm416_vm1, %v405_v26, %v415_v34  ;;  %v426_v39 = vsel %vm416_vm1, %v415_v34, %v405_v26  ;;  %p2161_p6 = scmp.lt.s32.totalorder %s2159_s17, %s2153_s13 }
  0xc0   : > { %1071 = vmatprep.subr.bf16.mxu1 %v746_v36  ;;  %v443_v45 = vmul.f32 %v2596_v46, %v426_v39  ;;  %v444_v48 = vmul.f32 %v2599_v47, %v421_v38 }
  0xc1   : > { %1072 = vmatpush1.bf16.msra.mxu1 %v745_v37  ;;  %p2162_p7 = por %p2161_p6, %p2160_p5 }
  0xc2   : > { %v448_v40 = vpop.permute.xlu1 %447  ;;  %v413_v41 = vpop.permute.xlu0 %412 }
  0xc3   : > { %v420_v42 = vsel %vm416_vm1, %v403_v35, %v413_v41  ;;  %v425_v43 = vsel %vm416_vm1, %v413_v41, %v403_v35  ;;  %p2163_p8 = pnand %p2162_p7, %p2156_p4 }
  0xc4   : > { %v441_v49 = vmul.f32 %v2596_v46, %v425_v43  ;;  %v442_v50 = vmul.f32 %v2599_v47, %v420_v42 }
  0xc6   : > { %v450_v51 = vpop.permute.xlu1 %449  ;;  %v1963_v52 = vpop.permute.xlu0 %1962  ;;  %v748_v53 = vpack.c.bf16 %v444_v48, %v442_v50  ;;  %v747_v54 = vpack.c.bf16 %v443_v45, %v441_v49 }
  0xc7   : > { %v1965_v55 = vunpack.i.h.bf16 %v1963_v52  ;;  %v1964_v56 = vunpack.i.l.bf16 %v1963_v52 }
  0xc8   : > { %1073 = vmatprep.subr.bf16.mxu1 %v748_v53 }
  0xc9   : > { %v466_v59 = vsel %vm465_vm2, %v1964_v56, %v1965_v55  ;;  %v471_v46 = vsel %vm465_vm2, %v1965_v55, %v1964_v56  ;;  %1074 = vmatpush1.bf16.msra.mxu1 %v747_v54 }
  0xca   : > { %v460_v47 = vpop.permute.xlu1 %459  ;;  %v458_v60 = vpop.permute.xlu0 %457  ;;  %v485_v6 = vmul.f32 %v483_v58, %v466_v59  ;;  %v484_v13 = vmul.f32 %v479_v57, %v471_v46 }
  0xcb   : > { %v467_v61 = vsel %vm465_vm2, %v448_v40, %v458_v60  ;;  %v472_v62 = vsel %vm465_vm2, %v458_v60, %v448_v40  ;;  %v468_v24 = vsel %vm465_vm2, %v450_v51, %v460_v47  ;;  %v473_v25 = vsel %vm465_vm2, %v460_v47, %v450_v51 }
  0xcc   : > { %v486_v63 = vmul.f32 %v479_v57, %v472_v62  ;;  %v487_v0 = vmul.f32 %v483_v58, %v467_v61  ;;  %v488_v34 = vmul.f32 %v479_v57, %v473_v25  ;;  %v489_v35 = vmul.f32 %v483_v58, %v468_v24 }
  0xce   : > { %v454_v15 = vpop.permute.xlu1 %453  ;;  %v452_v17 = vpop.permute.xlu0 %451  ;;  %v750_v19 = vpack.c.bf16 %v487_v0, %v485_v6  ;;  %v749_v20 = vpack.c.bf16 %v486_v63, %v484_v13 }
  0xd0   : > { %1075 = vmatprep.subr.bf16.mxu1 %v750_v19 }
  0xd1   : > { %1076 = vmatpush1.bf16.msra.mxu1 %v749_v20 }
  0xd2   : > { %v1968_v26 = vpop.permute.xlu1 %1967  ;;  %v462_v27 = vpop.permute.xlu0 %461 }
  0xd3   : > { %v1970_v30 = vunpack.i.h.bf16 %v1968_v26  ;;  %v1969_v31 = vunpack.i.l.bf16 %v1968_v26  ;;  %v469_v32 = vsel %vm465_vm2, %v452_v17, %v462_v27  ;;  %v474_v33 = vsel %vm465_vm2, %v462_v27, %v452_v17 }
  0xd4   : > { %v490_v36 = vmul.f32 %v479_v57, %v474_v33  ;;  %v491_v37 = vmul.f32 %v483_v58, %v469_v32  ;;  %v625_v26 = vsub.s32 6, %v2547_v14 }
  0xd5   : > { %v515_v38 = vsel %vm514_vm3, %v1969_v31, %v1970_v30  ;;  %v520_v39 = vsel %vm514_vm3, %v1970_v30, %v1969_v31 }
  0xd6   : > { %v499_v40 = vpop.permute.xlu1 %498  ;;  %v464_v41 = vpop.permute.xlu0 %463  ;;  %v752_v42 = vpack.c.bf16 %v491_v37, %v489_v35  ;;  %v751_v43 = vpack.c.bf16 %v490_v36, %v488_v34  ;;  %v534_v44 = vmul.f32 %v532_v29, %v515_v38  ;;  %v533_v45 = vmul.f32 %v528_v28, %v520_v39 }
  0xd7   : > { %v470_v48 = vsel %vm465_vm2, %v454_v15, %v464_v41  ;;  %v475_v49 = vsel %vm465_vm2, %v464_v41, %v454_v15  ;;  %v760_v37 = vpack.c.bf16 %v2436_v1, %v332_v4  ;;  %v2713_v38 = vrot.slane %v2559_v18, %v625_v26 }
  0xd8   : > { %v492_v50 = vmul.f32 %v479_v57, %v475_v49  ;;  %v493_v51 = vmul.f32 %v483_v58, %v470_v48  ;;  %1077 = vmatprep.subr.bf16.mxu1 %v752_v42  ;;  %v2716_v39 = vrot.slane %v2564_v21, %v625_v26  ;;  %v762_v4 = vpack.c.bf16 %v2469_v11, %v2453_v7  ;;  %v817_v7 = vld [vmem:[%s3183_s3] sm:$0xff] }
  0xd9   : > { %1078 = vmatpush1.bf16.msra.mxu1 %v751_v43  ;;  %v761_v11 = vpack.c.bf16 %v2464_v10, %v2444_v5  ;;  %835 = vperm.xlu0 %1991, %v817_v7   ;;  %v576_v5 = vsub.s32 5, %v2547_v14  ;;  %v827_v7 = vld [vmem:[%s3183_s3 + $0x50] sm:$0xff] }
  0xda   : > { %v509_v52 = vpop.permute.xlu1 %508  ;;  %v497_v53 = vpop.permute.xlu0 %496  ;;  %v754_v54 = vpack.c.bf16 %v534_v44, %v493_v51  ;;  %v753_v55 = vpack.c.bf16 %v533_v45, %v492_v50 }
  0xdb   : > { %v517_v56 = vsel %vm514_vm3, %v499_v40, %v509_v52  ;;  %v522_v59 = vsel %vm514_vm3, %v509_v52, %v499_v40  ;;  %v759_v40 = vpack.c.bf16 %v2456_v8, %v331_v3  ;;  %v818_v8 = vld [vmem:[%s3183_s3 + $0x8] sm:$0xff]  ;;  %v819_v52 = vld [vmem:[%s3183_s3 + $0x10] sm:$0xff] }
  0xdc   : > { %1079 = vmatprep.subr.bf16.mxu1 %v754_v54  ;;  %v537_v60 = vmul.f32 %v528_v28, %v522_v59  ;;  %v538_v61 = vmul.f32 %v532_v29, %v517_v56  ;;  %840 = vperm.xlu1 %1992, %v818_v8   ;;  %v674_v54 = vsub.s32 7, %v2547_v14  ;;  %v822_v14 = vld [vmem:[%s3183_s3 + $0x28] sm:$0xff] }
  0xdd   : > { %1080 = vmatpush1.bf16.msra.mxu1 %v753_v55 }
  0xde   : > { %v503_v46 = vpop.permute.xlu1 %502  ;;  %v507_v47 = vpop.permute.xlu0 %506 }
  0xdf   : > { %v516_v57 = vsel %vm514_vm3, %v497_v53, %v507_v47  ;;  %v521_v58 = vsel %vm514_vm3, %v507_v47, %v497_v53  ;;  %v820_v53 = vld [vmem:[%s3183_s3 + $0x18] sm:$0xff] }
  0xe0   : > { %v535_v62 = vmul.f32 %v528_v28, %v521_v58  ;;  %v536_v63 = vmul.f32 %v532_v29, %v516_v57  ;;  %845 = vperm.xlu1 %1992, %v819_v52   ;;  %850 = vperm.xlu0 %1991, %v820_v53   ;;  %v821_v57 = vld [vmem:[%s3183_s3 + $0x20] sm:$0xff]  ;;  %v2763_v58 = vrot.slane %v2559_v18, %v674_v54 }
  0xe1   : > { %v829_v52 = vld [vmem:[%s3183_s3 + $0x60] sm:$0xff] }
  0xe2   : > { %v513_v0 = vpop.permute.xlu1 %512  ;;  %v501_v6 = vpop.permute.xlu0 %500  ;;  %v756_v13 = vpack.c.bf16 %v538_v61, %v536_v63  ;;  %v755_v15 = vpack.c.bf16 %v537_v60, %v535_v62  ;;  %v2766_v60 = vrot.slane %v2564_v21, %v674_v54  ;;  %v2769_v61 = vrot.slane %v2564_v21, %v576_v5 }
  0xe3   : > { %v519_v17 = vsel %vm514_vm3, %v503_v46, %v513_v0  ;;  %v524_v19 = vsel %vm514_vm3, %v513_v0, %v503_v46 }
  0xe4   : > { %1081 = vmatprep.subr.bf16.mxu1 %v756_v13  ;;  %v541_v27 = vmul.f32 %v528_v28, %v524_v19  ;;  %v542_v30 = vmul.f32 %v532_v29, %v519_v17  ;;  %855 = vperm.xlu1 %1992, %v821_v57   ;;  %v831_v57 = vld [vmem:[%s3183_s3 + $0x70] sm:$0xff] }
  0xe5   : > { %1082 = vmatpush1.bf16.msra.mxu1 %v755_v15  ;;  %860 = vperm.xlu0 %1991, %v822_v14   ;;  %v832_v14 = vld [vmem:[%s3183_s3 + $0x78] sm:$0xff] }
  0xe6   : > { %v599_v20 = vpop.permute.xlu1 %598  ;;  %v511_v22 = vpop.permute.xlu0 %510 }
  0xe7   : > { %v518_v24 = vsel %vm514_vm3, %v501_v6, %v511_v22  ;;  %v523_v25 = vsel %vm514_vm3, %v511_v22, %v501_v6  ;;  %v2777_v6 = vrot.slane %v2559_v18, %v576_v5  ;;  %v823_v18 = vld [vmem:[%s3183_s3 + $0x30] sm:$0xff] }
  0xe8   : > { %v539_v31 = vmul.f32 %v528_v28, %v523_v25  ;;  %v540_v32 = vmul.f32 %v532_v29, %v518_v24  ;;  %865 = vperm.xlu1 %1992, %v823_v18  }
  0xea   : > { %v609_v33 = vpop.permute.xlu1 %608  ;;  %v597_v34 = vpop.permute.xlu0 %596  ;;  %v758_v35 = vpack.c.bf16 %v542_v30, %v540_v32  ;;  %v757_v36 = vpack.c.bf16 %v541_v27, %v539_v31  ;;  %v824_v30 = vld [vmem:[%s3183_s3 + $0x38] sm:$0xff] }
  0xeb   : > { %v616_v28 = vsel %vm612_vm4, %v599_v20, %v609_v33  ;;  %v621_v29 = vsel %vm612_vm4, %v609_v33, %v599_v20  ;;  %870 = vperm.xlu0 %1991, %v824_v30  }
  0xec   : > { %1083 = vmatprep.subr.bf16.mxu1 %v758_v35  ;;  %v637_v44 = vmul.f32 %v2713_v38, %v616_v28  ;;  %v638_v3 = vmul.f32 %v2716_v39, %v621_v29 }
  0xed   : > { %1084 = vmatpush1.bf16.msra.mxu1 %v757_v36 }
  0xee   : > { %v611_v41 = vpop.permute.xlu1 %610  ;;  %v607_v1 = vpop.permute.xlu0 %606  ;;  %1085 = vmatprep.subr.bf16.mxu1 %v760_v37 }
  0xef   : > { %v615_v42 = vsel %vm612_vm4, %v597_v34, %v607_v1  ;;  %v620_v43 = vsel %vm612_vm4, %v607_v1, %v597_v34 }
  0xf0   : > { %v635_v45 = vmul.f32 %v2713_v38, %v615_v42  ;;  %v636_v2 = vmul.f32 %v2716_v39, %v620_v43 }
  0xf1   : > { %1086 = vmatpush1.bf16.msra.mxu1 %v759_v40 }
  0xf2   : > { %v644_v48 = vpop.permute.xlu1 %643  ;;  %v601_v49 = vpop.permute.xlu0 %600  ;;  %v772_v50 = vpack.c.bf16 %v638_v3, %v636_v2  ;;  %v771_v51 = vpack.c.bf16 %v637_v44, %v635_v45  ;;  %1087 = vmatprep.subr.bf16.mxu1 %v762_v4  ;;  %v826_v44 = vld [vmem:[%s3183_s3 + $0x48] sm:$0xff] }
  0xf3   : > { %v617_v10 = vsel %vm612_vm4, %v601_v49, %v611_v41  ;;  %v622_v59 = vsel %vm612_vm4, %v611_v41, %v601_v49  ;;  %v825_v41 = vld [vmem:[%s3183_s3 + $0x40] sm:$0xff]  ;;  %880 = vperm.xlu0 %1991, %v826_v44  }
  0xf4   : > { %1178 = vmatprep.subr.bf16.mxu0 %v772_v50  ;;  %v639_v62 = vmul.f32 %v2713_v38, %v617_v10  ;;  %v640_v13 = vmul.f32 %v2716_v39, %v622_v59  ;;  %875 = vperm.xlu1 %1992, %v825_v41  }
  0xf5   : > { %1179 = vmatpush1.bf16.msra.mxu0 %v771_v51  ;;  %1088 = vmatpush1.bf16.msra.mxu1 %v761_v11 }
  0xf6   : > { %v654_v55 = vpop.permute.xlu1 %653  ;;  %v1973_v56 = vpop.permute.xlu0 %1972 }
  0xf7   : > { %v1975_v46 = vunpack.i.h.bf16 %v1973_v56  ;;  %v1974_v47 = vunpack.i.l.bf16 %v1973_v56  ;;  %v663_v20 = vsel %vm661_vm5, %v644_v48, %v654_v55  ;;  %v668_v25 = vsel %vm661_vm5, %v654_v55, %v644_v48  ;;  %v830_v55 = vld [vmem:[%s3183_s3 + $0x68] sm:$0xff] }
  0xf8   : > { %v682_v33 = vmul.f32 %v2763_v58, %v663_v20  ;;  %v683_v28 = vmul.f32 %v2766_v60, %v668_v25  ;;  %885 = vperm.xlu1 %1992, %v827_v7  }
  0xf9   : > { %v662_v63 = vsel %vm661_vm5, %v1974_v47, %v1975_v46  ;;  %v667_v0 = vsel %vm661_vm5, %v1975_v46, %v1974_v47 }
  0xfa   : > { %v1978_v15 = vpop.permute.xlu1 %1977  ;;  %v646_v17 = vpop.permute.xlu0 %645  ;;  %v681_v21 = vmul.f32 %v2766_v60, %v667_v0  ;;  %v680_v19 = vmul.f32 %v2763_v58, %v662_v63 }
  0xfb   : > { %v1980_v22 = vunpack.i.h.bf16 %v1978_v15  ;;  %v1979_v24 = vunpack.i.l.bf16 %v1978_v15 }
  0xfc   : > { %v774_v26 = vpack.c.bf16 %v681_v21, %v640_v13  ;;  %v773_v27 = vpack.c.bf16 %v680_v19, %v639_v62  ;;  %895 = vperm.xlu1 %1992, %v829_v52  }
  0xfd   : > { %v564_v31 = vsel %vm563_vm6, %v1979_v24, %v1980_v22  ;;  %v569_v32 = vsel %vm563_vm6, %v1980_v22, %v1979_v24 }
  0xfe   : > { %v650_v34 = vpop.permute.xlu1 %649  ;;  %v656_v35 = vpop.permute.xlu0 %655  ;;  %1180 = vmatprep.subr.bf16.mxu0 %v774_v26  ;;  %v583_v36 = vmul.f32 %v2769_v61, %v569_v32  ;;  %v582_v37 = vmul.f32 %v2777_v6, %v564_v31  ;;  %v2865_v31 = vld [vmem:[%s3181_s1 + $0x10] ss:$0 sm:$0xff]  ;;  %v2870_v32 = vld [vmem:[%s3181_s1 + $0x18] ss:$0 sm:$0xff] }
  0xff   : > { %v664_v29 = vsel %vm661_vm5, %v646_v17, %v656_v35  ;;  %v669_v40 = vsel %vm661_vm5, %v656_v35, %v646_v17  ;;  %1181 = vmatpush1.bf16.msra.mxu0 %v773_v27 }
 0x100   : > { %v684_v1 = vmul.f32 %v2763_v58, %v664_v29  ;;  %v685_v4 = vmul.f32 %v2766_v60, %v669_v40  ;;  %v764_v42 = vpack.c.bf16 %v583_v36, %v2477_v12  ;;  %v763_v43 = vpack.c.bf16 %v582_v37, %v2461_v9  ;;  %v828_v9 = vld [vmem:[%s3183_s3 + $0x58] sm:$0xff]  ;;  %905 = vperm.xlu1 %1992, %v831_v57  }
 0x101   : > { %890 = vperm.xlu0 %1991, %v828_v9  }
 0x102   : > { %v660_v45 = vpop.permute.xlu1 %659  ;;  %v648_v2 = vpop.permute.xlu0 %647  ;;  %v776_v3 = vpack.c.bf16 %v685_v4, %v683_v28  ;;  %1089 = vmatprep.subr.bf16.mxu1 %v764_v42  ;;  %v775_v8 = vpack.c.bf16 %v684_v1, %v682_v33 }
 0x103   : > { %1090 = vmatpush1.bf16.msra.mxu1 %v763_v43  ;;  %v666_v12 = vsel %vm661_vm5, %v650_v34, %v660_v45  ;;  %v671_v11 = vsel %vm661_vm5, %v660_v45, %v650_v34 }
 0x104   : > { %1182 = vmatprep.subr.bf16.mxu0 %v776_v3  ;;  %v688_v53 = vmul.f32 %v2763_v58, %v666_v12  ;;  %v689_v54 = vmul.f32 %v2766_v60, %v671_v11 }
 0x105   : > { %1183 = vmatpush1.bf16.msra.mxu0 %v775_v8  ;;  %900 = vperm.xlu0 %1991, %v830_v55  }
 0x106   : > { %v548_v48 = vpop.permute.xlu1 %547  ;;  %v658_v49 = vpop.permute.xlu0 %657 }
 0x107   : > { %v665_v50 = vsel %vm661_vm5, %v648_v2, %v658_v49  ;;  %v670_v51 = vsel %vm661_vm5, %v658_v49, %v648_v2 }
 0x108   : > { %v686_v5 = vmul.f32 %v2763_v58, %v665_v50  ;;  %v687_v10 = vmul.f32 %v2766_v60, %v670_v51 }
 0x109   : > { %910 = vperm.xlu0 %1991, %v832_v14  }
 0x10a   : > { %v558_v56 = vpop.permute.xlu1 %557  ;;  %v546_v59 = vpop.permute.xlu0 %545  ;;  %v778_v46 = vpack.c.bf16 %v689_v54, %v687_v10  ;;  %v777_v47 = vpack.c.bf16 %v688_v53, %v686_v5 }
 0x10b   : > { %v566_v58 = vsel %vm563_vm6, %v548_v48, %v558_v56  ;;  %v571_v60 = vsel %vm563_vm6, %v558_v56, %v548_v48 }
 0x10c   : > { %1184 = vmatprep.subr.bf16.mxu0 %v778_v46  ;;  %v586_v15 = vmul.f32 %v2777_v6, %v566_v58  ;;  %v587_v17 = vmul.f32 %v2769_v61, %v571_v60 }
 0x10d   : > { %1185 = vmatpush1.bf16.msra.mxu0 %v777_v47 }
 0x10e   : > { %v693_v62 = vpop.permute.xlu1 %692  ;;  %v556_v63 = vpop.permute.xlu0 %555 }
 0x10f   : > { %v565_v0 = vsel %vm563_vm6, %v546_v59, %v556_v63  ;;  %v570_v13 = vsel %vm563_vm6, %v556_v63, %v546_v59 }
 0x110   : > { %v584_v21 = vmul.f32 %v2777_v6, %v565_v0  ;;  %v585_v19 = vmul.f32 %v2769_v61, %v570_v13 }
 0x112   : > { %v550_v20 = vpop.permute.xlu1 %549  ;;  %v1983_v22 = vpop.permute.xlu0 %1982  ;;  %v766_v24 = vpack.c.bf16 %v587_v17, %v585_v19  ;;  %v765_v18 = vpack.c.bf16 %v586_v15, %v584_v21 }
 0x113   : > { %v1985_v25 = vunpack.i.h.bf16 %v1983_v22  ;;  %v1984_v26 = vunpack.i.l.bf16 %v1983_v22 }
 0x114   : > { %1091 = vmatprep.subr.bf16.mxu1 %v766_v24 }
 0x115   : > { %v711_v27 = vsel %vm710_vm7, %v1984_v26, %v1985_v25  ;;  %v716_v30 = vsel %vm710_vm7, %v1985_v25, %v1984_v26  ;;  %1092 = vmatpush1.bf16.msra.mxu1 %v765_v18 }
 0x116   : > { %v560_v33 = vpop.permute.xlu1 %559  ;;  %v703_v34 = vpop.permute.xlu0 %702  ;;  %v730_v29 = vmul.f32 %v2870_v32, %v716_v30  ;;  %v729_v40 = vmul.f32 %v2865_v31, %v711_v27 }
 0x117   : > { %v712_v35 = vsel %vm710_vm7, %v693_v62, %v703_v34  ;;  %v717_v36 = vsel %vm710_vm7, %v703_v34, %v693_v62  ;;  %v567_v43 = vsel %vm563_vm6, %v550_v20, %v560_v33  ;;  %v572_v44 = vsel %vm563_vm6, %v560_v33, %v550_v20  ;;  %v2001_v34 = vld [vmem:[%s3182_s2 + $0x34] ss:$12 sps:$4 sm:$0xff]  }
 0x118   : > { %v731_v37 = vmul.f32 %v2865_v31, %v712_v35  ;;  %v732_v28 = vmul.f32 %v2870_v32, %v717_v36  ;;  %v588_v7 = vmul.f32 %v2777_v6, %v567_v43  ;;  %v589_v9 = vmul.f32 %v2769_v61, %v572_v44  ;;  %v2000_v35 = vld [vmem:[%s3182_s2 + $0x20] ss:$12 sps:$4 sm:$0xff]   ;;  %v2003_v36 = vld [vmem:[%s3182_s2 + $0x30] ss:$12 sps:$4 sm:$0xff]   ;;  %v2015_v43 = vld [vmem:[%s3182_s2 + $0x78] ss:$12 sps:$4 sm:$0xff]  }
 0x119   : > { %v2017_v44 = vld [vmem:[%s3182_s2 + $0x94] ss:$12 sps:$4 sm:$0xff]  }
 0x11a   : > { %v695_v41 = vpop.permute.xlu1 %694  ;;  %v552_v1 = vpop.permute.xlu0 %551  ;;  %v780_v4 = vpack.c.bf16 %v732_v28, %v730_v29  ;;  %v779_v42 = vpack.c.bf16 %v731_v37, %v729_v40  ;;  %v2005_v37 = vld [vmem:[%s3182_s2 + $0x4c] ss:$12 sps:$4 sm:$0xff]   ;;  %v2007_v29 = vld [vmem:[%s3182_s2 + $0x48] ss:$12 sps:$4 sm:$0xff]   ;;  %v2009_v40 = vld [vmem:[%s3182_s2 + $0x64] ss:$12 sps:$4 sm:$0xff]  }
 0x11b   : > { %v2004_v28 = vld [vmem:[%s3182_s2 + $0x38] ss:$12 sps:$4 sm:$0xff]  }
 0x11c   : > { %1186 = vmatprep.subr.bf16.mxu0 %v780_v4  ;;  %v2013_v4 = vld [vmem:[%s3182_s2 + $0x7c] ss:$12 sps:$4 sm:$0xff]  }
 0x11d   : > { %1187 = vmatpush1.bf16.msra.mxu0 %v779_v42  ;;  %v2012_v42 = vld [vmem:[%s3182_s2 + $0x68] ss:$12 sps:$4 sm:$0xff]  }
 0x11e   : > { %v705_v45 = vpop.permute.xlu1 %704  ;;  %v562_v2 = vpop.permute.xlu0 %561 }
 0x11f   : > { %v568_v3 = vsel %vm563_vm6, %v552_v1, %v562_v2  ;;  %v573_v8 = vsel %vm563_vm6, %v562_v2, %v552_v1  ;;  %v713_v52 = vsel %vm710_vm7, %v695_v41, %v705_v45  ;;  %v718_v53 = vsel %vm710_vm7, %v705_v45, %v695_v41  ;;  %v2008_v41 = vld [vmem:[%s3182_s2 + $0x50] ss:$12 sps:$4 sm:$0xff]   ;;  %v2011_v1 = vld [vmem:[%s3182_s2 + $0x60] ss:$12 sps:$4 sm:$0xff]  }
 0x120   : > { %v590_v12 = vmul.f32 %v2777_v6, %v568_v3  ;;  %v591_v11 = vmul.f32 %v2769_v61, %v573_v8  ;;  %v733_v56 = vmul.f32 %v2865_v31, %v713_v52  ;;  %v734_v59 = vmul.f32 %v2870_v32, %v718_v53  ;;  %v2016_v45 = vld [vmem:[%s3182_s2 + $0x80] ss:$12 sps:$4 sm:$0xff]   ;;  %v2019_v2 = vld [vmem:[%s3182_s2 + $0x90] ss:$12 sps:$4 sm:$0xff]   ;;  %v2020_v8 = vld [vmem:[%s3182_s2 + $0x98] ss:$12 sps:$4 sm:$0xff]  }
 0x121   : > { %v2021_v3 = vld [vmem:[%s3182_s2 + $0xac] ss:$12 sps:$4 sm:$0xff]  }
 0x122   : > { %v697_v48 = vpop.permute.xlu0 %696  ;;  %v768_v49 = vpack.c.bf16 %v591_v11, %v589_v9  ;;  %v767_v50 = vpack.c.bf16 %v590_v12, %v588_v7  ;;  %v1988_v51 = vpop.permute.xlu1 %1987  ;;  %v2023_v7 = vld [vmem:[%s3182_s2 + $0xa8] ss:$12 sps:$4 sm:$0xff]   ;;  %v2024_v9 = vld [vmem:[%s3182_s2 + $0xb0] ss:$12 sps:$4 sm:$0xff]  }
 0x123   : > { %v1990_v54 = vunpack.i.h.bf16 %v1988_v51  ;;  %v1989_v5 = vunpack.i.l.bf16 %v1988_v51 }
 0x124   : > { %1093 = vmatprep.subr.bf16.mxu1 %v768_v49 }
 0x125   : > { %1094 = vmatpush1.bf16.msra.mxu1 %v767_v50  ;;  %v613_v57 = vsel %vm612_vm4, %v1989_v5, %v1990_v54  ;;  %v618_v14 = vsel %vm612_vm4, %v1990_v54, %v1989_v5 }
 0x126   : > { %v707_v10 = vpop.permute.xlu0 %706  ;;  %v632_v21 = vmul.f32 %v2716_v39, %v618_v14  ;;  %v631_v19 = vmul.f32 %v2713_v38, %v613_v57 }
 0x127   : > { %v714_v6 = vsel %vm710_vm7, %v697_v48, %v707_v10  ;;  %v719_v61 = vsel %vm710_vm7, %v707_v10, %v697_v48  ;;  %v605_v55 = vpop.permute.xlu1 %604 }
 0x128   : > { %v735_v46 = vmul.f32 %v2865_v31, %v714_v6  ;;  %v736_v47 = vmul.f32 %v2870_v32, %v719_v61 }
 0x12a   : > { %v595_v58 = vpop.permute.xlu0 %594  ;;  %v782_v60 = vpack.c.bf16 %v736_v47, %v734_v59  ;;  %v781_v62 = vpack.c.bf16 %v735_v46, %v733_v56 }
 0x12b   : > { %v614_v63 = vsel %vm612_vm4, %v595_v58, %v605_v55  ;;  %v619_v0 = vsel %vm612_vm4, %v605_v55, %v595_v58  ;;  %v709_v17 = vpop.permute.xlu1 %708 }
 0x12c   : > { %v633_v13 = vmul.f32 %v2713_v38, %v614_v63  ;;  %v634_v15 = vmul.f32 %v2716_v39, %v619_v0  ;;  %1188 = vmatprep.subr.bf16.mxu0 %v782_v60  ;;  %v1993_v39 = vld [vmem:[%s3182_s2] ss:$12 sps:$4 sm:$0xff]   ;;  %v1997_v38 = vld [vmem:[%s3182_s2 + $0x1c] ss:$12 sps:$4 sm:$0xff]  }
 0x12d   : > { %1189 = vmatpush1.bf16.msra.mxu0 %v781_v62 }
 0x12e   : > { %v699_v20 = vpop.permute.xlu0 %698  ;;  %v770_v22 = vpack.c.bf16 %v634_v15, %v632_v21  ;;  %v769_v24 = vpack.c.bf16 %v633_v13, %v631_v19 }
 0x12f   : > { %v715_v18 = vsel %vm710_vm7, %v699_v20, %v709_v17  ;;  %v720_v25 = vsel %vm710_vm7, %v709_v17, %v699_v20 }
 0x130   : > { %v737_v26 = vmul.f32 %v2865_v31, %v715_v18  ;;  %v738_v27 = vmul.f32 %v2870_v32, %v720_v25  ;;  %1095 = vmatprep.subr.bf16.mxu1 %v770_v22  ;;  %v1996_v31 = vld [vmem:[%s3182_s2 + $0x8] ss:$12 sps:$4 sm:$0xff]   ;;  %v1999_v32 = vld [vmem:[%s3182_s2 + $0x18] ss:$12 sps:$4 sm:$0xff]  }
 0x131   : > { %1096 = vmatpush1.bf16.msra.mxu1 %v769_v24 }
 0x132   : > { %v783_v30 = vpack.c.bf16 %v737_v26, %v737_v26  ;;  %v784_v33 = vpack.c.bf16 %v738_v27, %v738_v27 }
 0x134   : > { %1098 = vmatmul.mubr.bf16.vlgmr.msra.gmra.mrb[0].mxu1 %v1993_v39  ;;  %1757 = vmatprep.subr.msk.bf16.mxu0 %vm1058_vm8, %v784_v33  ;;  %v1060_v16 = vsel %vm1058_vm8, %v783_v30, 0 }
 0x135   : > { %1191 = vmatpush1.bf16.msra.mxu0 %v1060_v16  ;;  %1107 = vmatprep.mubr.bf16.mxu1 %v1997_v38 }
 0x138   : > { %1758 = vmatmul.mubr.msk.bf16.vlgmr.msra.gmra.mrb[0].mxu0 %vm1033_vm9, %v1996_v31 }
 0x139   : > { %1220 = vmatprep.mubr.bf16.mxu0 %v2290_v23 }
 0x13c   : > { %1108 = vmatmul.mubr.bf16.gmra.mrb[4].mxu1 %v1999_v32 }
 0x13d   : > { %1117 = vmatprep.mubr.bf16.mxu1 %v2001_v34 }
 0x140   : > { %1759 = vmatmul.mubr.msk.bf16.gmra.mrb[4].mxu0 %vm1033_vm9, %v2000_v35 }
 0x141   : > { %1230 = vmatprep.mubr.bf16.mxu0 %v2290_v23 }
 0x144   : > { %1118 = vmatmul.mubr.bf16.gmra.mrb[8].mxu1 %v2003_v36 }
 0x145   : > { %1127 = vmatprep.mubr.bf16.mxu1 %v2005_v37 }
 0x148   : > { %1760 = vmatmul.mubr.msk.bf16.gmra.mrb[8].mxu0 %vm1033_vm9, %v2004_v28 }
 0x149   : > { %1240 = vmatprep.mubr.bf16.mxu0 %v2290_v23 }
 0x14c   : > { %1128 = vmatmul.mubr.bf16.gmra.mrb[12].mxu1 %v2007_v29 }
 0x14d   : > { %1137 = vmatprep.mubr.bf16.mxu1 %v2009_v40 }
 0x150   : > { %1761 = vmatmul.mubr.msk.bf16.gmra.mrb[12].mxu0 %vm1033_vm9, %v2008_v41 }
 0x151   : > { %1250 = vmatprep.mubr.bf16.mxu0 %v2290_v23 }
 0x154   : > { %1138 = vmatmul.mubr.bf16.gmra.mrb[16].mxu1 %v2011_v1 }
 0x155   : > { %1147 = vmatprep.mubr.bf16.mxu1 %v2013_v4 }
 0x158   : > { %1762 = vmatmul.mubr.msk.bf16.gmra.mrb[16].mxu0 %vm1033_vm9, %v2012_v42  ;;  %v836_v12 = vpop.permute.xlu0 %835 }
 0x159   : > { %1260 = vmatprep.mubr.bf16.mxu0 %v2290_v23 }
 0x15b   : > { %v841_v50 = vpop.permute.xlu1 %840 }
 0x15c   : > { %1148 = vmatmul.mubr.bf16.gmra.mrb[20].mxu1 %v2015_v43 }
 0x15d   : > { %1157 = vmatprep.mubr.bf16.mxu1 %v2017_v44 }
 0x15f   : > { %v846_v56 = vpop.permute.xlu1 %845  ;;  %v851_v60 = vpop.permute.xlu0 %850 }
 0x160   : > { %1763 = vmatmul.mubr.msk.bf16.gmra.mrb[20].mxu0 %vm1033_vm9, %v2016_v45 }
 0x161   : > { %1270 = vmatprep.mubr.bf16.mxu0 %v2290_v23 }
 0x163   : > { %v856_v39 = vpop.permute.xlu1 %855 }
 0x164   : > { %1158 = vmatmul.mubr.bf16.gmra.mrb[24].mxu1 %v2019_v2  ;;  %v861_v37 = vpop.permute.xlu0 %860 }
 0x165   : > { %1167 = vmatprep.mubr.bf16.mxu1 %v2021_v3 }
 0x168   : > { %1764 = vmatmul.mubr.msk.bf16.gmra.mrb[24].mxu0 %vm1033_vm9, %v2020_v8  ;;  %v866_v8 = vpop.permute.xlu1 %865 }
 0x169   : > { %1280 = vmatprep.mubr.bf16.mxu0 %v2290_v23 }
 0x16c   : > { %1168 = vmatmul.mubr.bf16.gmra.mrb[28].mxu1 %v2023_v7 }
 0x170   : > { %1765 = vmatmul.mubr.msk.bf16.gmra.mrb[28].mxu0 %vm1033_vm9, %v2024_v9 }
 0x207   : > { %v1099_v11 = vpop.f32.mrb[0].mxu1 }
 0x208   : > { %v1101_v48 = vpop.f32.mrb[1].mxu1  ;;  %v1100_v49 = vadd.f32 %v1099_v11, %v836_v12 }
 0x209   : > { %v1102_v51 = vadd.f32 %v1101_v48, %v836_v12  ;;  %v1103_v52 = vpop.f32.mrb[2].mxu1 }
 0x20a   : > { %v1105_v53 = vpop.f32.mrb[3].mxu1  ;;  %v1104_v5 = vadd.f32 %v1103_v52, %v841_v50 }
 0x20b   : > { %v1212_v54 = vpop.f32.mrb[0].mxu0  ;;  %v1106_v23 = vadd.f32 %v1105_v53, %v841_v50 }
 0x20c   : > { %v1213_v10 = vadd.f32 %v1212_v54, %v1100_v49  ;;  %v1214_v6 = vpop.f32.mrb[1].mxu0 }
 0x20d   : > { %v1215_v61 = vadd.f32 %v1214_v6, %v1102_v51  ;;  %v1216_v55 = vpop.f32.mrb[2].mxu0 }
 0x20e   : > { %v1217_v59 = vadd.f32 %v1216_v55, %v1104_v5  ;;  %v1218_v46 = vpop.f32.mrb[3].mxu0  ;;  %v1766_v13 = vmul.f32 -1.442695, %v1213_v10 }
 0x20f   : > { %v1219_v47 = vadd.f32 %v1218_v46, %v1106_v23  ;;  %v1109_v57 = vpop.f32.mrb[4].mxu1  ;;  %v1767_v17 = vmul.f32 -1.442695, %v1215_v61  ;;  %v871_v23 = vpop.permute.xlu0 %870 }
 0x210   : > { %v1110_v14 = vadd.f32 %v1109_v57, %v846_v56  ;;  %v1111_v58 = vpop.f32.mrb[5].mxu1  ;;  %v1768_v22 = vmul.f32 -1.442695, %v1217_v59  ;;  %2025 = vpow2.f32 %v1766_v13  ;;  %v876_v13 = vpop.permute.xlu1 %875 }
 0x211   : > { %v1112_v62 = vadd.f32 %v1111_v58, %v846_v56  ;;  %v1113_v63 = vpop.f32.mrb[6].mxu1  ;;  %2027 = vpow2.f32 %v1767_v17  ;;  %v1769_v33 = vmul.f32 -1.442695, %v1219_v47 }
 0x212   : > { %v1115_v0 = vpop.f32.mrb[7].mxu1  ;;  %v1114_v21 = vadd.f32 %v1113_v63, %v851_v60  ;;  %2029 = vpow2.f32 %v1768_v22 }
 0x213   : > { %v1222_v15 = vpop.f32.mrb[4].mxu0  ;;  %v1116_v24 = vadd.f32 %v1115_v0, %v851_v60  ;;  %2031 = vpow2.f32 %v1769_v33  ;;  %v881_v33 = vpop.permute.xlu0 %880 }
 0x214   : > { %v1223_v19 = vadd.f32 %v1222_v15, %v1110_v14  ;;  %v1224_v20 = vpop.f32.mrb[5].mxu0 }
 0x215   : > { %v1225_v18 = vadd.f32 %v1224_v20, %v1112_v62  ;;  %v1226_v25 = vpop.f32.mrb[6].mxu0 }
 0x216   : > { %v1227_v26 = vadd.f32 %v1226_v25, %v1114_v21  ;;  %v1228_v27 = vpop.f32.mrb[7].mxu0  ;;  %v1770_v35 = vmul.f32 -1.442695, %v1223_v19 }
 0x217   : > { %v1229_v38 = vadd.f32 %v1228_v27, %v1116_v24  ;;  %v1119_v30 = vpop.f32.mrb[8].mxu1  ;;  %v1771_v29 = vmul.f32 -1.442695, %v1225_v18 }
 0x218   : > { %v1120_v16 = vadd.f32 %v1119_v30, %v856_v39  ;;  %v1121_v31 = vpop.f32.mrb[9].mxu1  ;;  %v1772_v4 = vmul.f32 -1.442695, %v1227_v26  ;;  %2033 = vpow2.f32 %v1770_v35 }
 0x219   : > { %v1122_v32 = vadd.f32 %v1121_v31, %v856_v39  ;;  %v1123_v34 = vpop.f32.mrb[10].mxu1  ;;  %v1773_v45 = vmul.f32 -1.442695, %v1229_v38  ;;  %2035 = vpow2.f32 %v1771_v29 }
 0x21a   : > { %v1125_v36 = vpop.f32.mrb[11].mxu1  ;;  %v1124_v40 = vadd.f32 %v1123_v34, %v861_v37  ;;  %v2026_v50 = vpop.eup %2025  ;;  %2037 = vpow2.f32 %v1772_v4 }
 0x21b   : > { %v1232_v28 = vpop.f32.mrb[8].mxu0  ;;  %v1126_v42 = vadd.f32 %v1125_v36, %v861_v37  ;;  %v2028_v54 = vpop.eup %2027  ;;  %2039 = vpow2.f32 %v1773_v45  ;;  %v1315_v55 = vadd.f32 1.0, %v2026_v50 }
 0x21c   : > { %v1233_v41 = vadd.f32 %v1232_v28, %v1120_v16  ;;  %v1234_v1 = vpop.f32.mrb[9].mxu0  ;;  %v2030_v6 = vpop.eup %2029  ;;  %v1316_v47 = vadd.f32 1.0, %v2028_v54 }
 0x21d   : > { %v1235_v43 = vadd.f32 %v1234_v1, %v1122_v32  ;;  %v1236_v44 = vpop.f32.mrb[10].mxu0  ;;  %v2032_v60 = vpop.eup %2031  ;;  %v1317_v62 = vadd.f32 1.0, %v2030_v6 }
 0x21e   : > { %v1237_v2 = vadd.f32 %v1236_v44, %v1124_v40  ;;  %v1238_v3 = vpop.f32.mrb[11].mxu0  ;;  %v1774_v7 = vmul.f32 -1.442695, %v1233_v41  ;;  %v1318_v18 = vadd.f32 1.0, %v2032_v60 }
 0x21f   : > { %v1239_v9 = vadd.f32 %v1238_v3, %v1126_v42  ;;  %v1129_v12 = vpop.f32.mrb[12].mxu1  ;;  %v1775_v11 = vmul.f32 -1.442695, %v1235_v43 }
 0x220   : > { %v1130_v48 = vadd.f32 %v1129_v12, %v866_v8  ;;  %v1131_v49 = vpop.f32.mrb[13].mxu1  ;;  %v1776_v51 = vmul.f32 -1.442695, %v1237_v2  ;;  %2041 = vpow2.f32 %v1774_v7 }
 0x221   : > { %v1132_v52 = vadd.f32 %v1131_v49, %v866_v8  ;;  %v1133_v53 = vpop.f32.mrb[14].mxu1  ;;  %v1777_v5 = vmul.f32 -1.442695, %v1239_v9  ;;  %2043 = vpow2.f32 %v1775_v11 }
 0x222   : > { %v1135_v10 = vpop.f32.mrb[15].mxu1  ;;  %v1134_v56 = vadd.f32 %v1133_v53, %v871_v23  ;;  %2045 = vpow2.f32 %v1776_v51  ;;  %v2034_v19 = vpop.eup %2033 }
 0x223   : > { %v1242_v61 = vpop.f32.mrb[12].mxu0  ;;  %v1136_v57 = vadd.f32 %v1135_v10, %v871_v23  ;;  %2047 = vpow2.f32 %v1777_v5  ;;  %v2036_v26 = vpop.eup %2035  ;;  %v1319_v30 = vadd.f32 1.0, %v2034_v19 }
 0x224   : > { %v1243_v59 = vadd.f32 %v1242_v61, %v1130_v48  ;;  %v1244_v46 = vpop.f32.mrb[13].mxu0  ;;  %2049 = vrcp.f32 %v1315_v55  ;;  %v2038_v38 = vpop.eup %2037  ;;  %v1320_v29 = vadd.f32 1.0, %v2036_v26 }
 0x225   : > { %v1245_v14 = vadd.f32 %v1244_v46, %v1132_v52  ;;  %v1246_v58 = vpop.f32.mrb[14].mxu0  ;;  %2051 = vrcp.f32 %v1316_v47  ;;  %v2040_v32 = vpop.eup %2039  ;;  %v1321_v42 = vadd.f32 1.0, %v2038_v38 }
 0x226   : > { %v1247_v63 = vadd.f32 %v1246_v58, %v1134_v56  ;;  %v1248_v0 = vpop.f32.mrb[15].mxu0  ;;  %v1778_v15 = vmul.f32 -1.442695, %v1243_v59  ;;  %2053 = vrcp.f32 %v1317_v62  ;;  %v1322_v2 = vadd.f32 1.0, %v2040_v32  ;;  %v886_v48 = vpop.permute.xlu1 %885 }
 0x227   : > { %v1249_v17 = vadd.f32 %v1248_v0, %v1136_v57  ;;  %v1139_v21 = vpop.f32.mrb[16].mxu1  ;;  %v1779_v20 = vmul.f32 -1.442695, %v1245_v14  ;;  %v891_v10 = vpop.permute.xlu0 %890 }
 0x228   : > { %v1140_v22 = vadd.f32 %v1139_v21, %v876_v13  ;;  %v1141_v24 = vpop.f32.mrb[17].mxu1  ;;  %v1780_v27 = vmul.f32 -1.442695, %v1247_v63  ;;  %2055 = vpow2.f32 %v1778_v15 }
 0x229   : > { %v1143_v25 = vpop.f32.mrb[18].mxu1  ;;  %v1142_v16 = vadd.f32 %v1141_v24, %v876_v13  ;;  %2057 = vpow2.f32 %v1779_v20  ;;  %v1781_v34 = vmul.f32 -1.442695, %v1249_v17 }
 0x22a   : > { %v1145_v39 = vpop.f32.mrb[19].mxu1  ;;  %v1144_v35 = vadd.f32 %v1143_v25, %v881_v33  ;;  %v2042_v28 = vpop.eup %2041  ;;  %2059 = vrcp.f32 %v1318_v18 }
 0x22b   : > { %v1252_v31 = vpop.f32.mrb[16].mxu0  ;;  %v1146_v40 = vadd.f32 %v1145_v39, %v881_v33  ;;  %v2044_v4 = vpop.eup %2043  ;;  %2061 = vpow2.f32 %v1780_v27  ;;  %v1363_v9 = vadd.f32 1.0, %v2042_v28 }
 0x22c   : > { %v1253_v36 = vadd.f32 %v1252_v31, %v1140_v22  ;;  %v1254_v37 = vpop.f32.mrb[17].mxu0  ;;  %v2046_v45 = vpop.eup %2045  ;;  %2063 = vrcp.f32 %v1319_v30  ;;  %v1364_v11 = vadd.f32 1.0, %v2044_v4 }
 0x22d   : > { %v1255_v41 = vadd.f32 %v1254_v37, %v1142_v16  ;;  %v1256_v1 = vpop.f32.mrb[18].mxu0  ;;  %v2048_v7 = vpop.eup %2047  ;;  %2065 = vpow2.f32 %v1781_v34  ;;  %v1365_v51 = vadd.f32 1.0, %v2046_v45 }
 0x22e   : > { %v1257_v43 = vadd.f32 %v1256_v1, %v1144_v35  ;;  %v1258_v44 = vpop.f32.mrb[19].mxu0  ;;  %2067 = vrcp.f32 %v1320_v29  ;;  %v3006_v50 = vpop.eup %2049  ;;  %v1366_v5 = vadd.f32 1.0, %v2048_v7  ;;  %v1782_v55 = vmul.f32 -1.442695, %v1253_v36 }
 0x22f   : > { %v1259_v3 = vadd.f32 %v1258_v44, %v1146_v40  ;;  %v1149_v8 = vpop.f32.mrb[20].mxu1  ;;  %2069 = vrcp.f32 %v1321_v42  ;;  %v3008_v54 = vpop.eup %2051  ;;  %v1783_v57 = vmul.f32 -1.442695, %v1255_v41 }
 0x230   : > { %v1151_v12 = vpop.f32.mrb[21].mxu1  ;;  %v1150_v52 = vadd.f32 %v1149_v8, %v886_v48  ;;  %2071 = vrcp.f32 %v1322_v2  ;;  %v3010_v61 = vpop.eup %2053  ;;  %v1784_v63 = vmul.f32 -1.442695, %v1257_v43 }
 0x231   : > { %v1153_v49 = vpop.f32.mrb[22].mxu1  ;;  %v1152_v6 = vadd.f32 %v1151_v12, %v886_v48  ;;  %2073 = vrcp.f32 %v1363_v9  ;;  %v1785_v17 = vmul.f32 -1.442695, %v1259_v3  ;;  %v896_v25 = vpop.permute.xlu1 %895 }
 0x232   : > { %v1155_v53 = vpop.f32.mrb[23].mxu1  ;;  %v1154_v56 = vadd.f32 %v1153_v49, %v891_v10  ;;  %v2056_v47 = vpop.eup %2055  ;;  %2075 = vrcp.f32 %v1364_v11 }
 0x233   : > { %v1262_v23 = vpop.f32.mrb[20].mxu0  ;;  %v1156_v14 = vadd.f32 %v1155_v53, %v891_v10  ;;  %v2058_v62 = vpop.eup %2057  ;;  %2077 = vrcp.f32 %v1365_v51  ;;  %v1367_v22 = vadd.f32 1.0, %v2056_v47 }
 0x234   : > { %v1263_v59 = vadd.f32 %v1262_v23, %v1150_v52  ;;  %v1264_v46 = vpop.f32.mrb[21].mxu0  ;;  %v3012_v15 = vpop.eup %2059  ;;  %2079 = vrcp.f32 %v1366_v5  ;;  %v1368_v26 = vadd.f32 1.0, %v2058_v62 }
 0x235   : > { %v1265_v58 = vadd.f32 %v1264_v46, %v1152_v6  ;;  %v1266_v60 = vpop.f32.mrb[22].mxu0  ;;  %v2062_v20 = vpop.eup %2061  ;;  %2081 = vpow2.f32 %v1782_v55 }
 0x236   : > { %v1267_v0 = vadd.f32 %v1266_v60, %v1154_v56  ;;  %v1268_v13 = vpop.f32.mrb[23].mxu0  ;;  %v3014_v18 = vpop.eup %2063  ;;  %2083 = vpow2.f32 %v1783_v57  ;;  %v1369_v31 = vadd.f32 1.0, %v2062_v20  ;;  %v1786_v36 = vmul.f32 -1.442695, %v1263_v59 }
 0x237   : > { %v1269_v21 = vadd.f32 %v1268_v13, %v1156_v14  ;;  %v1159_v19 = vpop.f32.mrb[24].mxu1  ;;  %v2066_v39 = vpop.eup %2065  ;;  %2085 = vpow2.f32 %v1784_v63  ;;  %v1787_v44 = vmul.f32 -1.442695, %v1265_v58 }
 0x238   : > { %v1161_v24 = vpop.f32.mrb[25].mxu1  ;;  %v1160_v38 = vadd.f32 %v1159_v19, %v896_v25  ;;  %v3016_v33 = vpop.eup %2067  ;;  %2087 = vpow2.f32 %v1785_v17  ;;  %v1370_v41 = vadd.f32 1.0, %v2066_v39  ;;  %v1788_v6 = vmul.f32 -1.442695, %v1267_v0  ;;  %v1443_v17 = vld [vmem:[%s2416_s21] sm:$0xff] }
 0x239   : > { %v1163_v27 = vpop.f32.mrb[26].mxu1  ;;  %v901_v16 = vpop.permute.xlu0 %900  ;;  %v1162_v32 = vadd.f32 %v1161_v24, %v896_v25  ;;  %2089 = vrcp.f32 %v1367_v22  ;;  %v1789_v59 = vmul.f32 -1.442695, %v1269_v21 }
 0x23a   : > { %v1165_v30 = vpop.f32.mrb[27].mxu1  ;;  %v3018_v35 = vpop.eup %2069  ;;  %v1164_v37 = vadd.f32 %v1163_v27, %v901_v16  ;;  %2091 = vrcp.f32 %v1368_v26 }
 0x23b   : > { %v1272_v34 = vpop.f32.mrb[24].mxu0  ;;  %v3020_v40 = vpop.eup %2071  ;;  %v1166_v1 = vadd.f32 %v1165_v30, %v901_v16  ;;  %v1444_v30 = vld [vmem:[%s2416_s21 + $0x8] sm:$0xff] }
 0x23c   : > { %v1273_v28 = vadd.f32 %v1272_v34, %v1160_v38  ;;  %v1274_v29 = vpop.f32.mrb[25].mxu0  ;;  %v2074_v43 = vpop.eup %2073  ;;  %v1445_v34 = vld [vmem:[%s2416_s21 + $0x10] sm:$0xff] }
 0x23d   : > { %v1275_v4 = vadd.f32 %v1274_v29, %v1162_v32  ;;  %v1276_v42 = vpop.f32.mrb[26].mxu0  ;;  %v3022_v3 = vpop.eup %2075  ;;  %v1451_v26 = vmul.f32 %v2074_v43, %v1443_v17 }
 0x23e   : > { %2093 = vtanh.f32 %v1273_v28  ;;  %v1277_v45 = vadd.f32 %v1276_v42, %v1164_v37  ;;  %v1278_v2 = vpop.f32.mrb[27].mxu0  ;;  %v3024_v9 = vpop.eup %2077  ;;  %v1446_v28 = vld [vmem:[%s2416_s21 + $0x18] sm:$0xff] }
 0x23f   : > { %2095 = vrcp.f32 %v1369_v31  ;;  %v1279_v8 = vadd.f32 %v1278_v2, %v1166_v1  ;;  %v1169_v7 = vpop.f32.mrb[28].mxu1  ;;  %v3026_v11 = vpop.eup %2079  ;;  %v1447_v1 = vld [vmem:[%s2416_s21 + $0x20] sm:$0xff]  ;;  %v1453_v43 = vmul.f32 %v3024_v9, %v1445_v34 }
 0x240   : > { %2097 = vpow2.f32 %v1786_v36  ;;  %v1171_v12 = vpop.f32.mrb[29].mxu1  ;;  %v906_v48 = vpop.permute.xlu1 %905  ;;  %v1454_v2 = vmul.f32 %v3026_v11, %v1446_v28  ;;  %v1448_v11 = vld [vmem:[%s2416_s21 + $0x28] sm:$0xff] }
 0x241   : > { %2099 = vrcp.f32 %v1370_v41  ;;  %v1173_v49 = vpop.f32.mrb[30].mxu1  ;;  %v2082_v51 = vpop.eup %2081  ;;  %v1170_v52 = vadd.f32 %v1169_v7, %v906_v48  ;;  %v1172_v23 = vadd.f32 %v1171_v12, %v906_v48  ;;  %v1452_v41 = vmul.f32 %v3022_v3, %v1444_v30 }
 0x242   : > { %2101 = vpow2.f32 %v1787_v44  ;;  %v1175_v53 = vpop.f32.mrb[31].mxu1  ;;  %v2084_v5 = vpop.eup %2083  ;;  %v1411_v58 = vadd.f32 1.0, %v2082_v51 }
 0x243   : > { %v911_v10 = vpop.permute.xlu0 %910  ;;  %2103 = vtanh.f32 %v1275_v4  ;;  %v1282_v55 = vpop.f32.mrb[28].mxu0  ;;  %v1412_v19 = vadd.f32 1.0, %v2084_v5 }
 0x244   : > { %v2086_v56 = vpop.eup %2085  ;;  %2105 = vtanh.f32 %v1277_v45  ;;  %v1174_v46 = vadd.f32 %v1173_v49, %v911_v10  ;;  %v1283_v47 = vadd.f32 %v1282_v55, %v1170_v52  ;;  %v1284_v57 = vpop.f32.mrb[29].mxu0  ;;  %v1176_v60 = vadd.f32 %v1175_v53, %v911_v10  ;;  %v1449_v52 = vld [vmem:[%s2416_s21 + $0x30] sm:$0xff] }
 0x245   : > { %v2088_v14 = vpop.eup %2087  ;;  %2107 = vtanh.f32 %v1279_v8  ;;  %v1285_v62 = vadd.f32 %v1284_v57, %v1172_v23  ;;  %v1286_v63 = vpop.f32.mrb[30].mxu0  ;;  %v1413_v16 = vadd.f32 1.0, %v2086_v56  ;;  %v1450_v23 = vld [vmem:[%s2416_s21 + $0x38] sm:$0xff] }
 0x246   : > { %v2090_v13 = vpop.eup %2089  ;;  %2109 = vtanh.f32 %v1283_v47  ;;  %v1287_v0 = vadd.f32 %v1286_v63, %v1174_v46  ;;  %v1288_v20 = vpop.f32.mrb[31].mxu0  ;;  %v1414_v36 = vadd.f32 1.0, %v2088_v14 }
 0x247   : > { %v3029_v22 = vpop.eup %2091  ;;  %2111 = vpow2.f32 %v1788_v6  ;;  %v1289_v21 = vadd.f32 %v1288_v20, %v1176_v60 }
 0x248   : > { %v2094_v24 = vpop.eup %2093  ;;  %2113 = vpow2.f32 %v1789_v59  ;;  %v1456_v6 = vmul.f32 %v3029_v22, %v1448_v11 }
 0x249   : > { %v2096_v25 = vpop.eup %2095  ;;  %2115 = vrcp.f32 %v1411_v58  ;;  %v1459_v27 = vmul.f32 %v2094_v24, %v3006_v50 }
 0x24a   : > { %v2098_v39 = vpop.eup %2097  ;;  %2117 = vrcp.f32 %v1412_v19  ;;  %v1457_v59 = vmul.f32 %v2096_v25, %v1449_v52 }
 0x24b   : > { %v3032_v38 = vpop.eup %2099  ;;  %v1467_v31 = vadd.f32 %v1459_v27, %v1451_v26  ;;  %2119 = vtanh.f32 %v1285_v62  ;;  %v1415_v29 = vadd.f32 1.0, %v2098_v39 }
 0x24c   : > { %v2102_v32 = vpop.eup %2101  ;;  %2121 = vtanh.f32 %v1287_v0  ;;  %v1458_v62 = vmul.f32 %v3032_v38, %v1450_v23 }
 0x24d   : > { %v2104_v37 = vpop.eup %2103  ;;  %2123 = vtanh.f32 %v1467_v31  ;;  %1499 = vst [vmem:[%s2416_s21] sm:$0xff] %v1467_v31  ;;  %v1416_v53 = vadd.f32 1.0, %v2102_v32 }
 0x24e   : > { %v2106_v50 = vpop.eup %2105  ;;  %v1460_v4 = vmul.f32 %v2104_v37, %v3008_v54  ;;  %2125 = vtanh.f32 %v1289_v21  ;;  %v1455_v54 = vmul.f32 %v2090_v13, %v1447_v1 }
 0x24f   : > { %v2108_v42 = vpop.eup %2107  ;;  %2127 = vrcp.f32 %v1413_v16  ;;  %v1461_v44 = vmul.f32 %v2106_v50, %v3010_v61 }
 0x250   : > { %v2110_v45 = vpop.eup %2109  ;;  %2129 = vrcp.f32 %v1414_v36  ;;  %v1468_v8 = vadd.f32 %v1460_v4, %v1452_v41  ;;  %v1462_v3 = vmul.f32 %v2108_v42, %v3012_v15 }
 0x251   : > { %v2112_v7 = vpop.eup %2111  ;;  %2131 = vrcp.f32 %v1415_v29  ;;  %v1469_v12 = vadd.f32 %v1461_v44, %v1453_v43  ;;  %v1463_v9 = vmul.f32 %v2110_v45, %v3014_v18 }
 0x252   : > { %v2114_v48 = vpop.eup %2113  ;;  %2133 = vtanh.f32 %v1468_v8  ;;  %1500 = vst [vmem:[%s2416_s21 + $0x8] sm:$0xff] %v1468_v8  ;;  %v1470_v61 = vadd.f32 %v1462_v3, %v1454_v2  ;;  %v1417_v10 = vadd.f32 1.0, %v2112_v7 }
 0x253   : > { %v2116_v49 = vpop.eup %2115  ;;  %2135 = vtanh.f32 %v1469_v12  ;;  %1501 = vst [vmem:[%s2416_s21 + $0x10] sm:$0xff] %v1469_v12  ;;  %v1471_v51 = vadd.f32 %v1463_v9, %v1455_v54  ;;  %v1418_v57 = vadd.f32 1.0, %v2114_v48 }
 0x254   : > { %v2118_v15 = vpop.eup %2117  ;;  %2137 = vtanh.f32 %v1470_v61  ;;  %1502 = vst [vmem:[%s2416_s21 + $0x18] sm:$0xff] %v1470_v61 }
 0x255   : > { %v2120_v5 = vpop.eup %2119  ;;  %2139 = vtanh.f32 %v1471_v51  ;;  %1503 = vst [vmem:[%s2416_s21 + $0x20] sm:$0xff] %v1471_v51 }
 0x256   : > { %v2122_v18 = vpop.eup %2121  ;;  %v1464_v55 = vmul.f32 %v2120_v5, %v3016_v33  ;;  %2141 = vrcp.f32 %v1416_v53 }
 0x257   : > { %v2124_v56 = vpop.eup %2123  ;;  %v1465_v46 = vmul.f32 %v2122_v18, %v3018_v35  ;;  %2143 = vrcp.f32 %v1417_v10 }
 0x258   : > { %v2126_v47 = vpop.eup %2125  ;;  %v1483_v14 = vmul.f32 %v2124_v56, %v2116_v49  ;;  %v1472_v58 = vadd.f32 %v1464_v55, %v1456_v6 }
 0x259   : > { %v2128_v60 = vpop.eup %2127  ;;  %v1473_v33 = vadd.f32 %v1465_v46, %v1457_v59  ;;  %v1466_v63 = vmul.f32 %v2126_v47, %v3020_v40 }
 0x25a   : > { %v2130_v13 = vpop.eup %2129  ;;  %1491 = vst [vmem:[%s2414_s10] sm:$0xff] %v1483_v14  ;;  %1507 = vst [vmem:[%s2412_s22] sm:$0xff] %v1483_v14  ;;  %2145 = vtanh.f32 %v1472_v58 }
 0x25b   : > { %1504 = vst [vmem:[%s2416_s21 + $0x28] sm:$0xff] %v1472_v58  ;;  %v2132_v35 = vpop.eup %2131  ;;  %2147 = vtanh.f32 %v1473_v33  ;;  %1505 = vst [vmem:[%s2416_s21 + $0x30] sm:$0xff] %v1473_v33  ;;  %v1474_v17 = vadd.f32 %v1466_v63, %v1458_v62 }
 0x25c   : > { %v2134_v40 = vpop.eup %2133  ;;  %2149 = vrcp.f32 %v1418_v57 }
 0x25d   : > { %v2136_v19 = vpop.eup %2135  ;;  %v1484_v0 = vmul.f32 %v2134_v40, %v2118_v15  ;;  %2151 = vtanh.f32 %v1474_v17  ;;  %1506 = vst [vmem:[%s2416_s21 + $0x38] sm:$0xff] %v1474_v17 }
 0x25e   : > { %v2138_v20 = vpop.eup %2137  ;;  %v1485_v22 = vmul.f32 %v2136_v19, %v2128_v60 }
 0x25f   : > { %2166 = shalt.err (!%p2163_p8)
}
 0x260   : > { %s2167_s21 = scalar_lea.hbm %s3069_s7, 1024  ;;  %s2171_s20 = scalar_lea.hbm %s3186_s6, 2048 }
 0x261   : > { %p2168_p10 = scmp.ne.s32.totalorder %s3069_s7, %s2167_s21  ;;  %p2172_p13 = scmp.lt.u32.totalorder %s3069_s7, %s3186_s6 }
 0x262   : > { %p2173_p0 = scmp.lt.u32.totalorder %s2171_s20, %s2167_s21  ;;  %p2175_p2 = scmp.lt.u32.totalorder %s2167_s21, %s3069_s7 }
 0x263   : > { %p2169_p11 = pnand %p2168_p10, %p2378_p3 }
 0x264   : > { %p2174_p1 = por %p2173_p0, %p2172_p13 }
 0x265   : > { %p2170_p12 = pneg %p2169_p11 }
 0x266   : > { %p2176_p4 = por %p2175_p2, %p2174_p1 }
 0x268   : > { %p2177_p5 = pnand %p2176_p4, %p2170_p12 }
 0x26a   : > { %2180 = shalt.err (!%p2177_p5)
}
 0x26b   : > { %s2292_s11 = smov 256   ;;  %v2140_v21 = vpop.eup %2139  ;;  %1492 = vst [vmem:[%s2414_s10 + $0x8] sm:$0xff] %v1484_v0  ;;  %1508 = vst [vmem:[%s2412_s22 + $0x8] sm:$0xff] %v1484_v0  ;;  %v1486_v24 = vmul.f32 %v2138_v20, %v2130_v13  ;;  %s2293_s15 = smov [#allocation2]  }
 0x26c   : > { %1865 = dma.vmem_to_hbm [thread:$0]  (%p2378_p3), %s3071_s23, 1024, %s3069_s7, %s1530_s8, %s2292_s11, %s2292_s11, %s2283_s24   ;;  %v1487_v25 = vmul.f32 %v2140_v21, %v2132_v35  ;;  %v2142_v26 = vpop.eup %2141 }
 0x26d   : > { %1493 = vst [vmem:[%s2414_s10 + $0x10] sm:$0xff] %v1485_v22  ;;  %1509 = vst [vmem:[%s2412_s22 + $0x10] sm:$0xff] %v1485_v22  ;;  %v2144_v27 = vpop.eup %2143  ;;  %s1546_s23 = sshll.u32 %s2414_s10, 4  ;;  %s3119_s7 = scalar_lea.hbm %s3185_s5, %s1798_s12  ;;  %s3121_s23 = int_to_ptr.vmem [resolvable:$true] %s1546_s23 }
 0x26e   : > { %1494 = vst [vmem:[%s2414_s10 + $0x18] sm:$0xff] %v1486_v24  ;;  %1510 = vst [vmem:[%s2412_s22 + $0x18] sm:$0xff] %v1486_v24  ;;  %v2146_v39 = vpop.eup %2145  ;;  %s1525_s8 = scalar_lea.sflag [#allocation3], %s2399_s14  ;;  %s2181_s13 = scalar_lea.vmem %s3121_s23, 1024 }
 0x26f   : > { %1495 = vst [vmem:[%s2414_s10 + $0x20] sm:$0xff] %v1487_v25  ;;  %1511 = vst [vmem:[%s2412_s22 + $0x20] sm:$0xff] %v1487_v25  ;;  %v2148_v38 = vpop.eup %2147  ;;  %v1488_v30 = vmul.f32 %v2146_v39, %v2142_v26  ;;  %p2182_p6 = scmp.ne.s32.totalorder %s3121_s23, %s2181_s13  ;;  %s2185_s25 = sshll.u32 %s2293_s15, 4  ;;  %s2186_s25 = int_to_ptr.vmem [resolvable:$false] %s2185_s25 }
 0x270   : > { %v2150_v16 = vpop.eup %2149  ;;  %v1489_v31 = vmul.f32 %v2148_v38, %v2144_v27  ;;  %s2187_s16 = scalar_lea.vmem %s2186_s25, 2048  ;;  %p2188_p10 = scmp.lt.s32.totalorder %s3121_s23, %s2186_s25 }
 0x271   : > { %v2152_v32 = vpop.eup %2151  ;;  %1496 = vst [vmem:[%s2414_s10 + $0x28] sm:$0xff] %v1488_v30  ;;  %1512 = vst [vmem:[%s2412_s22 + $0x28] sm:$0xff] %v1488_v30  ;;  %p2183_p7 = pnand %p2182_p6, %p2378_p3  ;;  %p2189_p11 = scmp.lt.s32.totalorder %s2187_s16, %s2181_s13 }
 0x272   : > { %1497 = vst [vmem:[%s2414_s10 + $0x30] sm:$0xff] %v1489_v31  ;;  %1513 = vst [vmem:[%s2412_s22 + $0x30] sm:$0xff] %v1489_v31  ;;  %v1490_v34 = vmul.f32 %v2152_v32, %v2150_v16 }
 0x273   : > { %p2184_p8 = pneg %p2183_p7  ;;  %p2190_p12 = por %p2189_p11, %p2188_p10 }
 0x274   : > { %1498 = vst [vmem:[%s2414_s10 + $0x38] sm:$0xff] %v1490_v34  ;;  %1514 = vst [vmem:[%s2412_s22 + $0x38] sm:$0xff] %v1490_v34 }
 0x275   : > { %p2191_p13 = pnand %p2190_p12, %p2184_p8 }
 0x277   : > { %2194 = shalt.err (!%p2191_p13)
}
 0x278   : > { %s2195_s22 = scalar_lea.hbm %s3119_s7, 1024  ;;  %s2199_s17 = scalar_lea.hbm %s3185_s5, 2048 }
 0x279   : > { %p2196_p0 = scmp.ne.s32.totalorder %s3119_s7, %s2195_s22  ;;  %p2200_p4 = scmp.lt.u32.totalorder %s3119_s7, %s3185_s5 }
 0x27a   : > { %p2201_p5 = scmp.lt.u32.totalorder %s2199_s17, %s2195_s22  ;;  %p2203_p7 = scmp.lt.u32.totalorder %s2195_s22, %s3119_s7 }
 0x27b   : > { %p2197_p1 = pnand %p2196_p0, %p2378_p3 }
 0x27c   : > { %p2202_p6 = por %p2201_p5, %p2200_p4 }
 0x27d   : > { %p2198_p2 = pneg %p2197_p1 }
 0x27e   : > { %p2204_p8 = por %p2203_p7, %p2202_p6 }
 0x280   : > { %p2205_p10 = pnand %p2204_p8, %p2198_p2 }
 0x282   : > { %2208 = shalt.err (!%p2205_p10)
}
 0x283   : > { %1864 = dma.vmem_to_hbm [thread:$0]  (%p2378_p3), %s3121_s23, 1024, %s3119_s7, %s1525_s8, %s2292_s11, %s2292_s11, %s2283_s24  }
 0x284 PF: > { %s3205_s19 = sld [smem:[#allocation8_spill]]  ;;  %p1875_p11 = scmp.ge.s32.totalorder %s2279_s28, 2 }
 0x286   : > { %p1869_p12 = pnand %p1875_p11, %p2388_p9 }
 0x28a   : > { %s1589_s29 = sand.u32 1, %s3205_s19  }
 0x28b   : > { %s1590_s30 = scalar_lea.sflag [#allocation3], %s1589_s29 }
 0x28c   : > { %2242 = dma.done.wait (!%p1869_p12), %s1590_s30, 1024  }
 0x28d   : > { %2244 = vsyncadd (!%p1869_p12), %s1590_s30, 4294966272  ;;  %s1599_s9 = scalar_lea.sflag [#allocation5], %s1589_s29 }
 0x28e   : > { %2246 = dma.done.wait (!%p1869_p12), %s1599_s9, 1024  }
 0x28f   : > { %2248 = vsyncadd (!%p1869_p12), %s1599_s9, 4294966272  ;;  %s23_s28 = sadd.s32 1, %s2279_s28   ;;  %s3207_s21 = sld [smem:[#allocation9_spill]] }
 0x290   : > { %p20_p13 = scmp.ge.s32.totalorder %s23_s28, 18   ;;  %s3208_s22 = sld [smem:[#allocation10_spill]] }
 0x291   : > { %s3209_s23 = sld [smem:[#allocation16_spill]]  ;;  %s3210_s24 = sld [smem:[#allocation11_spill]] }
 0x292   : > { %s3211_s25 = sld [smem:[#allocation12_spill]]  ;;  %s3212_s26 = sld [smem:[#allocation13_spill]] }
 0x293   : > { %s3213_s27 = sld [smem:[#allocation14_spill]]  ;;  %22 = sbr.rel (!%p20_p13) target bundleno = 7 (0x7), region = 104 }
 0x29a   :  { %1604 = vsyncpa [#allocation3], 1 }
 0x29b   :  { %1606 = vsyncpa [#allocation3 + $0x1], 1 }
 0x29c   :  { %1607 = vsyncpa [#allocation5], 1 }
 0x29d   :  { %1609 = vsyncpa [#allocation5 + $0x1], 1 }

</bundles_post_ra>
